<compile_context>
chip_gen: v5e
topology: v5e:2x2
jax: 0.10.0
libtpu: 0.0.40
codegen_flags: <defaults>
</compile_context>

<pallas_src>
import numpy as np
import jax
import jax.numpy as jnp
from jax.experimental import pallas as pl
from jax.experimental.pallas import tpu as pltpu

# ---------------- small config consistent with the module ----------------
N_NEWS = 8            # number of browsed news == GRU sequence length
TITLE_LEN = 16        # title_word_size
WORD_DIM = 32         # word_dim
CATEGORY_DIM = 16
SUBCATEGORY_DIM = 16
QUERY_DIM = 32        # query_vector_dim
NUM_FILTERS = 32      # num_filters -> news_rep dim = 3 * 32 = 96
WINDOW = 3            # window_sizes (odd, 'same' padding)
CATEGORY_SIZE = 10
SUBCATEGORY_SIZE = 20
USER_SIZE = 5
HIDDEN = 3 * NUM_FILTERS   # GRU hidden size for 'ini' (= 96)
HP = 128                   # lane-padded hidden size / per-gate slot width


# -------- fused Pallas kernel: news encoder + additive attn + GRU --------
def lstur_user_kernel(xwin_ref, catsub_ref,
                      wconv_ref, bconv_ref,
                      watt_ref, batt_ref, qatt_ref,
                      wcs_ref, bcs_ref,
                      h0_ref, wih_ref, whh_ref, bih_ref, bhhn_ref,
                      out_ref):
    f32 = jnp.float32
    NT = xwin_ref.shape[0]          # N * T = 128
    F = wconv_ref.shape[1]          # 32
    N = catsub_ref.shape[0]         # 8
    T = NT // N                     # 16
    Q = watt_ref.shape[1]           # 32
    hp = wih_ref.shape[0]           # 128 (padded hidden / gate slot width)

    # ---- title CNN: 'same' window-3 conv folded into ONE stacked matmul ----
    h2 = jnp.dot(xwin_ref[...], wconv_ref[...],
                 preferred_element_type=f32) + bconv_ref[...]
    h2 = jnp.maximum(h2, 0.0)                                   # ReLU, [N*T, F]

    # ---- additive attention over title positions ----
    temp = jnp.tanh(jnp.dot(h2, watt_ref[...],
                            preferred_element_type=f32) + batt_ref[...])   # [N*T, Q]
    temp3 = temp.reshape(N, T, Q)
    q_row = qatt_ref[...].reshape(1, 1, Q)
    scores = jnp.sum(temp3 * q_row, axis=-1)                    # [N, T]: VPU mul + XLU reduce
    scores = scores - jnp.max(scores, axis=-1, keepdims=True)
    e = jnp.exp(scores)
    attn = e * pl.reciprocal(jnp.sum(e, axis=-1, keepdims=True), approx=True)
    h3 = h2.reshape(N, T, F)
    word_rep = jnp.sum(attn[:, :, None] * h3, axis=1)           # [N, F]

    # ---- category / subcategory linears fused via block-diagonal weight ----
    cs_rep = jnp.dot(catsub_ref[...], wcs_ref[...],
                     preferred_element_type=f32) + bcs_ref[...]  # [N, 2F]

    # ---- news_rep, padded out to 128 lanes (padded lanes are exactly zero) ----
    pad_w = hp - (F + cs_rep.shape[1])
    news = jnp.concatenate([word_rep, cs_rep,
                            jnp.zeros((N, pad_w), f32)], axis=1)  # [N, 128]

    # ---- GRU, gate order (r, z, n), 128-aligned gate slots ----
    # Input-side gates for ALL timesteps in one matmul.  bih_ref already has
    # the hidden-side biases for the r/z gates folded in (pack time), so the
    # per-step hidden matmul needs no [1,384] bias add.
    gi_all = jnp.dot(news, wih_ref[...],
                     preferred_element_type=f32) + bih_ref[...]  # [N, 3*128]
    whh = whh_ref[...]
    bhh_n = bhhn_ref[...]                                        # [1, 128] (n-gate only)
    h = h0_ref[...]                                              # [1, 128]
    # Static unroll (N = 8): one [1,128]x[128,384] matmul per step; gate
    # slices are 128-lane aligned -> no masked loads/stores.
    for t in range(N):
        gi = gi_all[t:t + 1, :]
        gh = jnp.dot(h, whh, preferred_element_type=f32)         # [1, 3*128]
        r = jax.nn.sigmoid(gi[:, 0:hp] + gh[:, 0:hp])
        z = jax.nn.sigmoid(gi[:, hp:2 * hp] + gh[:, hp:2 * hp])
        n = jnp.tanh(gi[:, 2 * hp:3 * hp] + r * (gh[:, 2 * hp:3 * hp] + bhh_n))
        h = (1.0 - z) * n + z * h
        # Padded lanes: gi = gh = bhh_n = 0 there -> r = z = 0.5, n = 0,
        # so h stays exactly 0 in the pad (h0 pad is 0).
    out_ref[...] = h                                             # [1, 128]


# ---------------- wrapper ----------------
_VMEM = pl.BlockSpec(memory_space=pltpu.MemorySpace.VMEM)


def pallas_user_encoder(xwin, catsub, h0, kp):
    return pl.pallas_call(
        lstur_user_kernel,
        out_shape=jax.ShapeDtypeStruct((1, HP), jnp.float32),
        in_specs=[_VMEM] * 14,
        out_specs=_VMEM,
    )(xwin, catsub,
      kp["w_conv"], kp["b_conv"],
      kp["w_att"], kp["b_att"], kp["q_att"],
      kp["w_catsub"], kp["b_catsub"],
      h0, kp["gru_wih"], kp["gru_whh"], kp["gru_bih"], kp["gru_bhh_n"])


def user_encoder_forward(user_index, word_embedding, category_index,
                         subcategory_index, params, kernel_params):
    n, t, d = word_embedding.shape
    pad = (WINDOW - 1) // 2
    # tiny glue: im2col of the 'same'-padded title + embedding gathers
    xp = jnp.pad(word_embedding, ((0, 0), (pad, pad), (0, 0)))
    xwin = jnp.concatenate([xp[:, dw:dw + t, :] for dw in range(WINDOW)], axis=-1)
    xwin = xwin.reshape(n * t, WINDOW * d)                          # [N*T, 3D]
    catsub = jnp.concatenate([params["cat_table"][category_index],
                              params["subcat_table"][subcategory_index]], axis=1)
    user_emb = params["user_table"][user_index]                     # dropout2d: eval -> id
    h0 = jnp.zeros((1, HP), jnp.float32).at[0, :HIDDEN].set(user_emb)
    out = pallas_user_encoder(xwin, catsub, h0, kernel_params)
    # 'ini': GRU(news_rep.unsqueeze(0), h0=user_emb) -> last hidden, [1, 3F]
    return out[:, :HIDDEN]
    # TODO(synk): the 'con' branch (half-size user embedding concatenated with
    # the GRU final state) is not exercised here.


# ---------------- kernel-layout parameter packing (done once) ----------------
def pack_params(p):
    f32 = jnp.float32
    kp = {
        "w_conv": p["w_conv"].reshape(WINDOW * WORD_DIM, NUM_FILTERS),  # stacked [3D, F]
        "b_conv": p["b_conv"],
        "w_att": p["w_att"],
        "b_att": p["b_att"],
        "q_att": p["q_att"][:, 0][None, :],                             # [1, Q]
    }
    # block-diagonal fused category/subcategory linear
    wcs = jnp.zeros((CATEGORY_DIM + SUBCATEGORY_DIM, 2 * NUM_FILTERS), f32)
    wcs = wcs.at[:CATEGORY_DIM, :NUM_FILTERS].set(p["w_fc1"])
    wcs = wcs.at[CATEGORY_DIM:, NUM_FILTERS:].set(p["w_fc2"])
    kp["w_catsub"] = wcs
    kp["b_catsub"] = jnp.concatenate([p["b_fc1"], p["b_fc2"]], axis=1)

    # GRU weights packed with 128-aligned gate slots and zero padding
    def pack_w(w3):   # [3, 96, 96] -> [128, 384]
        out = jnp.zeros((HP, 3 * HP), f32)
        for g in range(3):
            out = out.at[:HIDDEN, g * HP:g * HP + HIDDEN].set(w3[g])
        return out

    kp["gru_wih"] = pack_w(p["gru_wih"])
    kp["gru_whh"] = pack_w(p["gru_whh"])

    # Input-side bias, with the hidden-side r/z biases folded in (valid: they
    # appear outside the r*(...) term in the GRU equations).
    bih = jnp.zeros((1, 3 * HP), f32)
    for g in range(3):
        bih = bih.at[:, g * HP:g * HP + HIDDEN].set(p["gru_bih"][g, 0])
    bih = bih.at[:, 0 * HP:0 * HP + HIDDEN].add(p["gru_bhh"][0, 0])   # + bhh_r
    bih = bih.at[:, 1 * HP:1 * HP + HIDDEN].add(p["gru_bhh"][1, 0])   # + bhh_z
    kp["gru_bih"] = bih
    # n-gate hidden bias must stay inside r*(h@Whh_n + bhh_n)
    kp["gru_bhh_n"] = jnp.zeros((1, HP), f32).at[:, :HIDDEN].set(p["gru_bhh"][2, 0])
    return kp


# -------- pure-JAX reference (same math) for a sanity check --------
def reference_forward(user_index, word_embedding, category_index,
                      subcategory_index, p):
    x = word_embedding
    n, t, d = x.shape
    pad = (WINDOW - 1) // 2
    xp = jnp.pad(x, ((0, 0), (pad, pad), (0, 0)))
    conv = sum(jnp.einsum("ntd,df->ntf", xp[:, dw:dw + t, :], p["w_conv"][dw])
               for dw in range(WINDOW)) + p["b_conv"][0]
    h = jnp.maximum(conv, 0.0)
    temp = jnp.tanh(jnp.einsum("ntf,fq->ntq", h, p["w_att"]) + p["b_att"][0])
    scores = jnp.einsum("ntq,q->nt", temp, p["q_att"][:, 0])
    attn = jax.nn.softmax(scores, axis=-1)
    word_rep = jnp.einsum("nt,ntf->nf", attn, h)
    cat_rep = p["cat_table"][category_index] @ p["w_fc1"] + p["b_fc1"][0]
    sub_rep = p["subcat_table"][subcategory_index] @ p["w_fc2"] + p["b_fc2"][0]
    news_rep = jnp.concatenate([word_rep, cat_rep, sub_rep], axis=1)

    h_t = p["user_table"][user_index][None, :]
    for i in range(n):
        x_t = news_rep[i][None, :]
        r = jax.nn.sigmoid(x_t @ p["gru_wih"][0] + p["gru_bih"][0]
                           + h_t @ p["gru_whh"][0] + p["gru_bhh"][0])
        z = jax.nn.sigmoid(x_t @ p["gru_wih"][1] + p["gru_bih"][1]
                           + h_t @ p["gru_whh"][1] + p["gru_bhh"][1])
        nn_ = jnp.tanh(x_t @ p["gru_wih"][2] + p["gru_bih"][2]
                       + r * (h_t @ p["gru_whh"][2] + p["gru_bhh"][2]))
        h_t = (1.0 - z) * nn_ + z * h_t
    return h_t


# ---------------- deterministic parameter init ----------------
def init_params(key):
    ks = jax.random.split(key, 16)
    f32 = jnp.float32
    p = {
        "cat_table": 0.1 * jax.random.normal(ks[0], (CATEGORY_SIZE, CATEGORY_DIM), f32),
        "subcat_table": 0.1 * jax.random.normal(ks[1], (SUBCATEGORY_SIZE, SUBCATEGORY_DIM), f32),
        "w_fc1": 0.1 * jax.random.normal(ks[2], (CATEGORY_DIM, NUM_FILTERS), f32),
        "b_fc1": 0.1 * jax.random.normal(ks[3], (1, NUM_FILTERS), f32),
        "w_fc2": 0.1 * jax.random.normal(ks[4], (SUBCATEGORY_DIM, NUM_FILTERS), f32),
        "b_fc2": 0.1 * jax.random.normal(ks[5], (1, NUM_FILTERS), f32),
        "w_conv": 0.1 * jax.random.normal(ks[6], (WINDOW, WORD_DIM, NUM_FILTERS), f32),
        "b_conv": 0.1 * jax.random.normal(ks[7], (1, NUM_FILTERS), f32),
        "w_att": 0.1 * jax.random.normal(ks[8], (NUM_FILTERS, QUERY_DIM), f32),
        "b_att": 0.1 * jax.random.normal(ks[9], (1, QUERY_DIM), f32),
        "q_att": 0.1 * jax.random.normal(ks[10], (QUERY_DIM, 1), f32),
        "gru_wih": 0.1 * jax.random.normal(ks[11], (3, HIDDEN, HIDDEN), f32),
        "gru_whh": 0.1 * jax.random.normal(ks[12], (3, HIDDEN, HIDDEN), f32),
        "gru_bih": 0.1 * jax.random.normal(ks[13], (3, 1, HIDDEN), f32),
        "gru_bhh": 0.1 * jax.random.normal(ks[14], (3, 1, HIDDEN), f32),
    }
    user_table = 0.1 * jax.random.normal(ks[15], (USER_SIZE, HIDDEN), f32)
    p["user_table"] = user_table.at[0].set(0.0)          # padding_idx=0
    return p


if __name__ == "__main__":
    key = jax.random.PRNGKey(0)
    k_in, k_p = jax.random.split(key)
    ki = jax.random.split(k_in, 4)

    params = init_params(k_p)
    kernel_params = pack_params(params)

    user_index = jnp.int32(2)
    word_embedding = jax.random.normal(ki[0], (N_NEWS, TITLE_LEN, WORD_DIM), jnp.float32)
    category_index = jax.random.randint(ki[1], (N_NEWS,), 0, CATEGORY_SIZE, jnp.int32)
    subcategory_index = jax.random.randint(ki[2], (N_NEWS,), 0, SUBCATEGORY_SIZE, jnp.int32)

    out = user_encoder_forward(user_index, word_embedding, category_index,
                               subcategory_index, params, kernel_params)
    out = jax.block_until_ready(out)
    assert out.shape == (1, HIDDEN)

    ref = jax.block_until_ready(
        reference_forward(user_index, word_embedding, category_index,
                          subcategory_index, params))
    np.testing.assert_allclose(np.asarray(out), np.asarray(ref), rtol=2e-2, atol=2e-2)

    print("KERNEL_OK")
</pallas_src>

<mosaic_0001>
module attributes {stable_mosaic.version = 11 : i64} {
  func.func @lstur_user_kernel(%arg0: memref<128x96xf32, #tpu.memory_space<vmem>>, %arg1: memref<8x32xf32, #tpu.memory_space<vmem>>, %arg2: memref<96x32xf32, #tpu.memory_space<vmem>>, %arg3: memref<1x32xf32, #tpu.memory_space<vmem>>, %arg4: memref<32x32xf32, #tpu.memory_space<vmem>>, %arg5: memref<1x32xf32, #tpu.memory_space<vmem>>, %arg6: memref<1x32xf32, #tpu.memory_space<vmem>>, %arg7: memref<32x64xf32, #tpu.memory_space<vmem>>, %arg8: memref<1x64xf32, #tpu.memory_space<vmem>>, %arg9: memref<1x128xf32, #tpu.memory_space<vmem>>, %arg10: memref<128x384xf32, #tpu.memory_space<vmem>>, %arg11: memref<128x384xf32, #tpu.memory_space<vmem>>, %arg12: memref<1x384xf32, #tpu.memory_space<vmem>>, %arg13: memref<1x128xf32, #tpu.memory_space<vmem>>, %arg14: memref<1x128xf32, #tpu.memory_space<vmem>>) attributes {dimension_semantics = [], scalar_prefetch = 0 : i64, scratch_operands = 0 : i64, tpu.core_type = #tpu.core_type<tc>} {
    %c0 = arith.constant 0 : index
    %c0_0 = arith.constant 0 : index
    %0 = vector.load %arg0[%c0, %c0_0] : memref<128x96xf32, #tpu.memory_space<vmem>>, vector<128x96xf32>
    %c0_1 = arith.constant 0 : index
    %c0_2 = arith.constant 0 : index
    %1 = vector.load %arg2[%c0_1, %c0_2] : memref<96x32xf32, #tpu.memory_space<vmem>>, vector<96x32xf32>
    %cst = arith.constant dense<0.000000e+00> : vector<128x32xf32>
    %2 = tpu.matmul %0, %1, %cst {dimension_numbers = #tpu.dot_dimension_numbers<[1], [0], [0], [1], [0, 0, 1, 1], [], []>} : vector<128x96xf32>, vector<96x32xf32>, vector<128x32xf32> -> vector<128x32xf32>
    %c0_3 = arith.constant 0 : index
    %c0_4 = arith.constant 0 : index
    %3 = vector.load %arg3[%c0_3, %c0_4] : memref<1x32xf32, #tpu.memory_space<vmem>>, vector<1x32xf32>
    %4 = vector.broadcast %3 : vector<1x32xf32> to vector<128x32xf32>
    %5 = arith.addf %2, %4 : vector<128x32xf32>
    %cst_5 = arith.constant 0.000000e+00 : f32
    %6 = vector.broadcast %cst_5 : f32 to vector<128x32xf32>
    %7 = arith.maximumf %5, %6 : vector<128x32xf32>
    %c0_6 = arith.constant 0 : index
    %c0_7 = arith.constant 0 : index
    %8 = vector.load %arg4[%c0_6, %c0_7] : memref<32x32xf32, #tpu.memory_space<vmem>>, vector<32x32xf32>
    %cst_8 = arith.constant dense<0.000000e+00> : vector<128x32xf32>
    %9 = tpu.matmul %7, %8, %cst_8 {dimension_numbers = #tpu.dot_dimension_numbers<[1], [0], [0], [1], [0, 0, 1, 1], [], []>} : vector<128x32xf32>, vector<32x32xf32>, vector<128x32xf32> -> vector<128x32xf32>
    %c0_9 = arith.constant 0 : index
    %c0_10 = arith.constant 0 : index
    %10 = vector.load %arg5[%c0_9, %c0_10] : memref<1x32xf32, #tpu.memory_space<vmem>>, vector<1x32xf32>
    %11 = vector.broadcast %10 : vector<1x32xf32> to vector<128x32xf32>
    %12 = arith.addf %9, %11 : vector<128x32xf32>
    %13 = math.tanh %12 : vector<128x32xf32>
    %14 = vector.shape_cast %13 : vector<128x32xf32> to vector<8x16x32xf32>
    %c0_11 = arith.constant 0 : index
    %c0_12 = arith.constant 0 : index
    %15 = vector.load %arg6[%c0_11, %c0_12] : memref<1x32xf32, #tpu.memory_space<vmem>>, vector<1x32xf32>
    %16 = vector.shape_cast %15 : vector<1x32xf32> to vector<1x1x32xf32>
    %17 = vector.broadcast %16 : vector<1x1x32xf32> to vector<8x16x32xf32>
    %18 = arith.mulf %14, %17 : vector<8x16x32xf32>
    %cst_13 = arith.constant dense<0.000000e+00> : vector<8x16xf32>
    %19 = vector.multi_reduction <add>, %18, %cst_13 [2] : vector<8x16x32xf32> to vector<8x16xf32>
    %cst_14 = arith.constant dense<0xFF800000> : vector<8xf32>
    %20 = vector.multi_reduction <maximumf>, %19, %cst_14 [1] : vector<8x16xf32> to vector<8xf32>
    %21 = vector.shape_cast %20 : vector<8xf32> to vector<8x1xf32>
    %22 = vector.broadcast %21 : vector<8x1xf32> to vector<8x16xf32>
    %23 = arith.subf %19, %22 : vector<8x16xf32>
    %24 = math.exp %23 : vector<8x16xf32>
    %cst_15 = arith.constant dense<0.000000e+00> : vector<8xf32>
    %25 = vector.multi_reduction <add>, %24, %cst_15 [1] : vector<8x16xf32> to vector<8xf32>
    %26 = vector.shape_cast %25 : vector<8xf32> to vector<8x1xf32>
    %27 = tpu.reciprocal %26 {approx = true} : vector<8x1xf32> -> vector<8x1xf32>
    %28 = vector.broadcast %27 : vector<8x1xf32> to vector<8x16xf32>
    %29 = arith.mulf %24, %28 : vector<8x16xf32>
    %30 = vector.shape_cast %7 : vector<128x32xf32> to vector<8x16x32xf32>
    %31 = vector.shape_cast %29 : vector<8x16xf32> to vector<8x16x1xf32>
    %32 = vector.broadcast %31 : vector<8x16x1xf32> to vector<8x16x32xf32>
    %33 = arith.mulf %32, %30 : vector<8x16x32xf32>
    %cst_16 = arith.constant dense<0.000000e+00> : vector<8x32xf32>
    %34 = vector.multi_reduction <add>, %33, %cst_16 [1] : vector<8x16x32xf32> to vector<8x32xf32>
    %c0_17 = arith.constant 0 : index
    %c0_18 = arith.constant 0 : index
    %35 = vector.load %arg1[%c0_17, %c0_18] : memref<8x32xf32, #tpu.memory_space<vmem>>, vector<8x32xf32>
    %c0_19 = arith.constant 0 : index
    %c0_20 = arith.constant 0 : index
    %36 = vector.load %arg7[%c0_19, %c0_20] : memref<32x64xf32, #tpu.memory_space<vmem>>, vector<32x64xf32>
    %cst_21 = arith.constant dense<0.000000e+00> : vector<8x64xf32>
    %37 = tpu.matmul %35, %36, %cst_21 {dimension_numbers = #tpu.dot_dimension_numbers<[1], [0], [0], [1], [0, 0, 1, 1], [], []>} : vector<8x32xf32>, vector<32x64xf32>, vector<8x64xf32> -> vector<8x64xf32>
    %c0_22 = arith.constant 0 : index
    %c0_23 = arith.constant 0 : index
    %38 = vector.load %arg8[%c0_22, %c0_23] : memref<1x64xf32, #tpu.memory_space<vmem>>, vector<1x64xf32>
    %39 = vector.broadcast %38 : vector<1x64xf32> to vector<8x64xf32>
    %40 = arith.addf %37, %39 : vector<8x64xf32>
    %cst_24 = arith.constant 0.000000e+00 : f32
    %41 = vector.broadcast %cst_24 : f32 to vector<8x32xf32>
    %42 = tpu.concatenate %34, %40, %41 in 1 : vector<8x32xf32>, vector<8x64xf32>, vector<8x32xf32> -> vector<8x128xf32>
    %c0_25 = arith.constant 0 : index
    %c0_26 = arith.constant 0 : index
    %43 = vector.load %arg10[%c0_25, %c0_26] : memref<128x384xf32, #tpu.memory_space<vmem>>, vector<128x384xf32>
    %cst_27 = arith.constant dense<0.000000e+00> : vector<8x384xf32>
    %44 = tpu.matmul %42, %43, %cst_27 {dimension_numbers = #tpu.dot_dimension_numbers<[1], [0], [0], [1], [0, 0, 1, 1], [], []>} : vector<8x128xf32>, vector<128x384xf32>, vector<8x384xf32> -> vector<8x384xf32>
    %c0_28 = arith.constant 0 : index
    %c0_29 = arith.constant 0 : index
    %45 = vector.load %arg12[%c0_28, %c0_29] : memref<1x384xf32, #tpu.memory_space<vmem>>, vector<1x384xf32>
    %46 = vector.broadcast %45 : vector<1x384xf32> to vector<8x384xf32>
    %47 = arith.addf %44, %46 : vector<8x384xf32>
    %c0_30 = arith.constant 0 : index
    %c0_31 = arith.constant 0 : index
    %48 = vector.load %arg11[%c0_30, %c0_31] : memref<128x384xf32, #tpu.memory_space<vmem>>, vector<128x384xf32>
    %c0_32 = arith.constant 0 : index
    %c0_33 = arith.constant 0 : index
    %49 = vector.load %arg13[%c0_32, %c0_33] : memref<1x128xf32, #tpu.memory_space<vmem>>, vector<1x128xf32>
    %c0_34 = arith.constant 0 : index
    %c0_35 = arith.constant 0 : index
    %50 = vector.load %arg9[%c0_34, %c0_35] : memref<1x128xf32, #tpu.memory_space<vmem>>, vector<1x128xf32>
    %51 = vector.extract_strided_slice %47 {offsets = [0, 0], sizes = [1, 384], strides = [1, 1]} : vector<8x384xf32> to vector<1x384xf32>
    %cst_36 = arith.constant dense<0.000000e+00> : vector<1x384xf32>
    %52 = tpu.matmul %50, %48, %cst_36 {dimension_numbers = #tpu.dot_dimension_numbers<[1], [0], [0], [1], [0, 0, 1, 1], [], []>} : vector<1x128xf32>, vector<128x384xf32>, vector<1x384xf32> -> vector<1x384xf32>
    %53 = vector.extract_strided_slice %51 {offsets = [0, 0], sizes = [1, 128], strides = [1, 1]} : vector<1x384xf32> to vector<1x128xf32>
    %54 = vector.extract_strided_slice %52 {offsets = [0, 0], sizes = [1, 128], strides = [1, 1]} : vector<1x384xf32> to vector<1x128xf32>
    %55 = arith.addf %53, %54 : vector<1x128xf32>
    %56 = arith.negf %55 : vector<1x128xf32>
    %57 = math.exp %56 : vector<1x128xf32>
    %cst_37 = arith.constant 1.000000e+00 : f32
    %58 = vector.broadcast %cst_37 : f32 to vector<1x128xf32>
    %59 = arith.addf %58, %57 : vector<1x128xf32>
    %60 = arith.divf %58, %59 : vector<1x128xf32>
    %61 = vector.extract_strided_slice %51 {offsets = [0, 128], sizes = [1, 128], strides = [1, 1]} : vector<1x384xf32> to vector<1x128xf32>
    %62 = vector.extract_strided_slice %52 {offsets = [0, 128], sizes = [1, 128], strides = [1, 1]} : vector<1x384xf32> to vector<1x128xf32>
    %63 = arith.addf %61, %62 : vector<1x128xf32>
    %64 = arith.negf %63 : vector<1x128xf32>
    %65 = math.exp %64 : vector<1x128xf32>
    %cst_38 = arith.constant 1.000000e+00 : f32
    %66 = vector.broadcast %cst_38 : f32 to vector<1x128xf32>
    %67 = arith.addf %66, %65 : vector<1x128xf32>
    %68 = arith.divf %66, %67 : vector<1x128xf32>
    %69 = vector.extract_strided_slice %51 {offsets = [0, 256], sizes = [1, 128], strides = [1, 1]} : vector<1x384xf32> to vector<1x128xf32>
    %70 = vector.extract_strided_slice %52 {offsets = [0, 256], sizes = [1, 128], strides = [1, 1]} : vector<1x384xf32> to vector<1x128xf32>
    %71 = arith.addf %70, %49 : vector<1x128xf32>
    %72 = arith.mulf %60, %71 : vector<1x128xf32>
    %73 = arith.addf %69, %72 : vector<1x128xf32>
    %74 = math.tanh %73 : vector<1x128xf32>
    %cst_39 = arith.constant 1.000000e+00 : f32
    %75 = vector.broadcast %cst_39 : f32 to vector<1x128xf32>
    %76 = arith.subf %75, %68 : vector<1x128xf32>
    %77 = arith.mulf %76, %74 : vector<1x128xf32>
    %78 = arith.mulf %68, %50 : vector<1x128xf32>
    %79 = arith.addf %77, %78 : vector<1x128xf32>
    %80 = vector.extract_strided_slice %47 {offsets = [1, 0], sizes = [1, 384], strides = [1, 1]} : vector<8x384xf32> to vector<1x384xf32>
    %cst_40 = arith.constant dense<0.000000e+00> : vector<1x384xf32>
    %81 = tpu.matmul %79, %48, %cst_40 {dimension_numbers = #tpu.dot_dimension_numbers<[1], [0], [0], [1], [0, 0, 1, 1], [], []>} : vector<1x128xf32>, vector<128x384xf32>, vector<1x384xf32> -> vector<1x384xf32>
    %82 = vector.extract_strided_slice %80 {offsets = [0, 0], sizes = [1, 128], strides = [1, 1]} : vector<1x384xf32> to vector<1x128xf32>
    %83 = vector.extract_strided_slice %81 {offsets = [0, 0], sizes = [1, 128], strides = [1, 1]} : vector<1x384xf32> to vector<1x128xf32>
    %84 = arith.addf %82, %83 : vector<1x128xf32>
    %85 = arith.negf %84 : vector<1x128xf32>
    %86 = math.exp %85 : vector<1x128xf32>
    %cst_41 = arith.constant 1.000000e+00 : f32
    %87 = vector.broadcast %cst_41 : f32 to vector<1x128xf32>
    %88 = arith.addf %87, %86 : vector<1x128xf32>
    %89 = arith.divf %87, %88 : vector<1x128xf32>
    %90 = vector.extract_strided_slice %80 {offsets = [0, 128], sizes = [1, 128], strides = [1, 1]} : vector<1x384xf32> to vector<1x128xf32>
    %91 = vector.extract_strided_slice %81 {offsets = [0, 128], sizes = [1, 128], strides = [1, 1]} : vector<1x384xf32> to vector<1x128xf32>
    %92 = arith.addf %90, %91 : vector<1x128xf32>
    %93 = arith.negf %92 : vector<1x128xf32>
    %94 = math.exp %93 : vector<1x128xf32>
    %cst_42 = arith.constant 1.000000e+00 : f32
    %95 = vector.broadcast %cst_42 : f32 to vector<1x128xf32>
    %96 = arith.addf %95, %94 : vector<1x128xf32>
    %97 = arith.divf %95, %96 : vector<1x128xf32>
    %98 = vector.extract_strided_slice %80 {offsets = [0, 256], sizes = [1, 128], strides = [1, 1]} : vector<1x384xf32> to vector<1x128xf32>
    %99 = vector.extract_strided_slice %81 {offsets = [0, 256], sizes = [1, 128], strides = [1, 1]} : vector<1x384xf32> to vector<1x128xf32>
    %100 = arith.addf %99, %49 : vector<1x128xf32>
    %101 = arith.mulf %89, %100 : vector<1x128xf32>
    %102 = arith.addf %98, %101 : vector<1x128xf32>
    %103 = math.tanh %102 : vector<1x128xf32>
    %cst_43 = arith.constant 1.000000e+00 : f32
    %104 = vector.broadcast %cst_43 : f32 to vector<1x128xf32>
    %105 = arith.subf %104, %97 : vector<1x128xf32>
    %106 = arith.mulf %105, %103 : vector<1x128xf32>
    %107 = arith.mulf %97, %79 : vector<1x128xf32>
    %108 = arith.addf %106, %107 : vector<1x128xf32>
    %109 = vector.extract_strided_slice %47 {offsets = [2, 0], sizes = [1, 384], strides = [1, 1]} : vector<8x384xf32> to vector<1x384xf32>
    %cst_44 = arith.constant dense<0.000000e+00> : vector<1x384xf32>
    %110 = tpu.matmul %108, %48, %cst_44 {dimension_numbers = #tpu.dot_dimension_numbers<[1], [0], [0], [1], [0, 0, 1, 1], [], []>} : vector<1x128xf32>, vector<128x384xf32>, vector<1x384xf32> -> vector<1x384xf32>
    %111 = vector.extract_strided_slice %109 {offsets = [0, 0], sizes = [1, 128], strides = [1, 1]} : vector<1x384xf32> to vector<1x128xf32>
    %112 = vector.extract_strided_slice %110 {offsets = [0, 0], sizes = [1, 128], strides = [1, 1]} : vector<1x384xf32> to vector<1x128xf32>
    %113 = arith.addf %111, %112 : vector<1x128xf32>
    %114 = arith.negf %113 : vector<1x128xf32>
    %115 = math.exp %114 : vector<1x128xf32>
    %cst_45 = arith.constant 1.000000e+00 : f32
    %116 = vector.broadcast %cst_45 : f32 to vector<1x128xf32>
    %117 = arith.addf %116, %115 : vector<1x128xf32>
    %118 = arith.divf %116, %117 : vector<1x128xf32>
    %119 = vector.extract_strided_slice %109 {offsets = [0, 128], sizes = [1, 128], strides = [1, 1]} : vector<1x384xf32> to vector<1x128xf32>
    %120 = vector.extract_strided_slice %110 {offsets = [0, 128], sizes = [1, 128], strides = [1, 1]} : vector<1x384xf32> to vector<1x128xf32>
    %121 = arith.addf %119, %120 : vector<1x128xf32>
    %122 = arith.negf %121 : vector<1x128xf32>
    %123 = math.exp %122 : vector<1x128xf32>
    %cst_46 = arith.constant 1.000000e+00 : f32
    %124 = vector.broadcast %cst_46 : f32 to vector<1x128xf32>
    %125 = arith.addf %124, %123 : vector<1x128xf32>
    %126 = arith.divf %124, %125 : vector<1x128xf32>
    %127 = vector.extract_strided_slice %109 {offsets = [0, 256], sizes = [1, 128], strides = [1, 1]} : vector<1x384xf32> to vector<1x128xf32>
    %128 = vector.extract_strided_slice %110 {offsets = [0, 256], sizes = [1, 128], strides = [1, 1]} : vector<1x384xf32> to vector<1x128xf32>
    %129 = arith.addf %128, %49 : vector<1x128xf32>
    %130 = arith.mulf %118, %129 : vector<1x128xf32>
    %131 = arith.addf %127, %130 : vector<1x128xf32>
    %132 = math.tanh %131 : vector<1x128xf32>
    %cst_47 = arith.constant 1.000000e+00 : f32
    %133 = vector.broadcast %cst_47 : f32 to vector<1x128xf32>
    %134 = arith.subf %133, %126 : vector<1x128xf32>
    %135 = arith.mulf %134, %132 : vector<1x128xf32>
    %136 = arith.mulf %126, %108 : vector<1x128xf32>
    %137 = arith.addf %135, %136 : vector<1x128xf32>
    %138 = vector.extract_strided_slice %47 {offsets = [3, 0], sizes = [1, 384], strides = [1, 1]} : vector<8x384xf32> to vector<1x384xf32>
    %cst_48 = arith.constant dense<0.000000e+00> : vector<1x384xf32>
    %139 = tpu.matmul %137, %48, %cst_48 {dimension_numbers = #tpu.dot_dimension_numbers<[1], [0], [0], [1], [0, 0, 1, 1], [], []>} : vector<1x128xf32>, vector<128x384xf32>, vector<1x384xf32> -> vector<1x384xf32>
    %140 = vector.extract_strided_slice %138 {offsets = [0, 0], sizes = [1, 128], strides = [1, 1]} : vector<1x384xf32> to vector<1x128xf32>
    %141 = vector.extract_strided_slice %139 {offsets = [0, 0], sizes = [1, 128], strides = [1, 1]} : vector<1x384xf32> to vector<1x128xf32>
    %142 = arith.addf %140, %141 : vector<1x128xf32>
    %143 = arith.negf %142 : vector<1x128xf32>
    %144 = math.exp %143 : vector<1x128xf32>
    %cst_49 = arith.constant 1.000000e+00 : f32
    %145 = vector.broadcast %cst_49 : f32 to vector<1x128xf32>
    %146 = arith.addf %145, %144 : vector<1x128xf32>
    %147 = arith.divf %145, %146 : vector<1x128xf32>
    %148 = vector.extract_strided_slice %138 {offsets = [0, 128], sizes = [1, 128], strides = [1, 1]} : vector<1x384xf32> to vector<1x128xf32>
    %149 = vector.extract_strided_slice %139 {offsets = [0, 128], sizes = [1, 128], strides = [1, 1]} : vector<1x384xf32> to vector<1x128xf32>
    %150 = arith.addf %148, %149 : vector<1x128xf32>
    %151 = arith.negf %150 : vector<1x128xf32>
    %152 = math.exp %151 : vector<1x128xf32>
    %cst_50 = arith.constant 1.000000e+00 : f32
    %153 = vector.broadcast %cst_50 : f32 to vector<1x128xf32>
    %154 = arith.addf %153, %152 : vector<1x128xf32>
    %155 = arith.divf %153, %154 : vector<1x128xf32>
    %156 = vector.extract_strided_slice %138 {offsets = [0, 256], sizes = [1, 128], strides = [1, 1]} : vector<1x384xf32> to vector<1x128xf32>
    %157 = vector.extract_strided_slice %139 {offsets = [0, 256], sizes = [1, 128], strides = [1, 1]} : vector<1x384xf32> to vector<1x128xf32>
    %158 = arith.addf %157, %49 : vector<1x128xf32>
    %159 = arith.mulf %147, %158 : vector<1x128xf32>
    %160 = arith.addf %156, %159 : vector<1x128xf32>
    %161 = math.tanh %160 : vector<1x128xf32>
    %cst_51 = arith.constant 1.000000e+00 : f32
    %162 = vector.broadcast %cst_51 : f32 to vector<1x128xf32>
    %163 = arith.subf %162, %155 : vector<1x128xf32>
    %164 = arith.mulf %163, %161 : vector<1x128xf32>
    %165 = arith.mulf %155, %137 : vector<1x128xf32>
    %166 = arith.addf %164, %165 : vector<1x128xf32>
    %167 = vector.extract_strided_slice %47 {offsets = [4, 0], sizes = [1, 384], strides = [1, 1]} : vector<8x384xf32> to vector<1x384xf32>
    %cst_52 = arith.constant dense<0.000000e+00> : vector<1x384xf32>
    %168 = tpu.matmul %166, %48, %cst_52 {dimension_numbers = #tpu.dot_dimension_numbers<[1], [0], [0], [1], [0, 0, 1, 1], [], []>} : vector<1x128xf32>, vector<128x384xf32>, vector<1x384xf32> -> vector<1x384xf32>
    %169 = vector.extract_strided_slice %167 {offsets = [0, 0], sizes = [1, 128], strides = [1, 1]} : vector<1x384xf32> to vector<1x128xf32>
    %170 = vector.extract_strided_slice %168 {offsets = [0, 0], sizes = [1, 128], strides = [1, 1]} : vector<1x384xf32> to vector<1x128xf32>
    %171 = arith.addf %169, %170 : vector<1x128xf32>
    %172 = arith.negf %171 : vector<1x128xf32>
    %173 = math.exp %172 : vector<1x128xf32>
    %cst_53 = arith.constant 1.000000e+00 : f32
    %174 = vector.broadcast %cst_53 : f32 to vector<1x128xf32>
    %175 = arith.addf %174, %173 : vector<1x128xf32>
    %176 = arith.divf %174, %175 : vector<1x128xf32>
    %177 = vector.extract_strided_slice %167 {offsets = [0, 128], sizes = [1, 128], strides = [1, 1]} : vector<1x384xf32> to vector<1x128xf32>
    %178 = vector.extract_strided_slice %168 {offsets = [0, 128], sizes = [1, 128], strides = [1, 1]} : vector<1x384xf32> to vector<1x128xf32>
    %179 = arith.addf %177, %178 : vector<1x128xf32>
    %180 = arith.negf %179 : vector<1x128xf32>
    %181 = math.exp %180 : vector<1x128xf32>
    %cst_54 = arith.constant 1.000000e+00 : f32
    %182 = vector.broadcast %cst_54 : f32 to vector<1x128xf32>
    %183 = arith.addf %182, %181 : vector<1x128xf32>
    %184 = arith.divf %182, %183 : vector<1x128xf32>
    %185 = vector.extract_strided_slice %167 {offsets = [0, 256], sizes = [1, 128], strides = [1, 1]} : vector<1x384xf32> to vector<1x128xf32>
    %186 = vector.extract_strided_slice %168 {offsets = [0, 256], sizes = [1, 128], strides = [1, 1]} : vector<1x384xf32> to vector<1x128xf32>
    %187 = arith.addf %186, %49 : vector<1x128xf32>
    %188 = arith.mulf %176, %187 : vector<1x128xf32>
    %189 = arith.addf %185, %188 : vector<1x128xf32>
    %190 = math.tanh %189 : vector<1x128xf32>
    %cst_55 = arith.constant 1.000000e+00 : f32
    %191 = vector.broadcast %cst_55 : f32 to vector<1x128xf32>
    %192 = arith.subf %191, %184 : vector<1x128xf32>
    %193 = arith.mulf %192, %190 : vector<1x128xf32>
    %194 = arith.mulf %184, %166 : vector<1x128xf32>
    %195 = arith.addf %193, %194 : vector<1x128xf32>
    %196 = vector.extract_strided_slice %47 {offsets = [5, 0], sizes = [1, 384], strides = [1, 1]} : vector<8x384xf32> to vector<1x384xf32>
    %cst_56 = arith.constant dense<0.000000e+00> : vector<1x384xf32>
    %197 = tpu.matmul %195, %48, %cst_56 {dimension_numbers = #tpu.dot_dimension_numbers<[1], [0], [0], [1], [0, 0, 1, 1], [], []>} : vector<1x128xf32>, vector<128x384xf32>, vector<1x384xf32> -> vector<1x384xf32>
    %198 = vector.extract_strided_slice %196 {offsets = [0, 0], sizes = [1, 128], strides = [1, 1]} : vector<1x384xf32> to vector<1x128xf32>
    %199 = vector.extract_strided_slice %197 {offsets = [0, 0], sizes = [1, 128], strides = [1, 1]} : vector<1x384xf32> to vector<1x128xf32>
    %200 = arith.addf %198, %199 : vector<1x128xf32>
    %201 = arith.negf %200 : vector<1x128xf32>
    %202 = math.exp %201 : vector<1x128xf32>
    %cst_57 = arith.constant 1.000000e+00 : f32
    %203 = vector.broadcast %cst_57 : f32 to vector<1x128xf32>
    %204 = arith.addf %203, %202 : vector<1x128xf32>
    %205 = arith.divf %203, %204 : vector<1x128xf32>
    %206 = vector.extract_strided_slice %196 {offsets = [0, 128], sizes = [1, 128], strides = [1, 1]} : vector<1x384xf32> to vector<1x128xf32>
    %207 = vector.extract_strided_slice %197 {offsets = [0, 128], sizes = [1, 128], strides = [1, 1]} : vector<1x384xf32> to vector<1x128xf32>
    %208 = arith.addf %206, %207 : vector<1x128xf32>
    %209 = arith.negf %208 : vector<1x128xf32>
    %210 = math.exp %209 : vector<1x128xf32>
    %cst_58 = arith.constant 1.000000e+00 : f32
    %211 = vector.broadcast %cst_58 : f32 to vector<1x128xf32>
    %212 = arith.addf %211, %210 : vector<1x128xf32>
    %213 = arith.divf %211, %212 : vector<1x128xf32>
    %214 = vector.extract_strided_slice %196 {offsets = [0, 256], sizes = [1, 128], strides = [1, 1]} : vector<1x384xf32> to vector<1x128xf32>
    %215 = vector.extract_strided_slice %197 {offsets = [0, 256], sizes = [1, 128], strides = [1, 1]} : vector<1x384xf32> to vector<1x128xf32>
    %216 = arith.addf %215, %49 : vector<1x128xf32>
    %217 = arith.mulf %205, %216 : vector<1x128xf32>
    %218 = arith.addf %214, %217 : vector<1x128xf32>
    %219 = math.tanh %218 : vector<1x128xf32>
    %cst_59 = arith.constant 1.000000e+00 : f32
    %220 = vector.broadcast %cst_59 : f32 to vector<1x128xf32>
    %221 = arith.subf %220, %213 : vector<1x128xf32>
    %222 = arith.mulf %221, %219 : vector<1x128xf32>
    %223 = arith.mulf %213, %195 : vector<1x128xf32>
    %224 = arith.addf %222, %223 : vector<1x128xf32>
    %225 = vector.extract_strided_slice %47 {offsets = [6, 0], sizes = [1, 384], strides = [1, 1]} : vector<8x384xf32> to vector<1x384xf32>
    %cst_60 = arith.constant dense<0.000000e+00> : vector<1x384xf32>
    %226 = tpu.matmul %224, %48, %cst_60 {dimension_numbers = #tpu.dot_dimension_numbers<[1], [0], [0], [1], [0, 0, 1, 1], [], []>} : vector<1x128xf32>, vector<128x384xf32>, vector<1x384xf32> -> vector<1x384xf32>
    %227 = vector.extract_strided_slice %225 {offsets = [0, 0], sizes = [1, 128], strides = [1, 1]} : vector<1x384xf32> to vector<1x128xf32>
    %228 = vector.extract_strided_slice %226 {offsets = [0, 0], sizes = [1, 128], strides = [1, 1]} : vector<1x384xf32> to vector<1x128xf32>
    %229 = arith.addf %227, %228 : vector<1x128xf32>
    %230 = arith.negf %229 : vector<1x128xf32>
    %231 = math.exp %230 : vector<1x128xf32>
    %cst_61 = arith.constant 1.000000e+00 : f32
    %232 = vector.broadcast %cst_61 : f32 to vector<1x128xf32>
    %233 = arith.addf %232, %231 : vector<1x128xf32>
    %234 = arith.divf %232, %233 : vector<1x128xf32>
    %235 = vector.extract_strided_slice %225 {offsets = [0, 128], sizes = [1, 128], strides = [1, 1]} : vector<1x384xf32> to vector<1x128xf32>
    %236 = vector.extract_strided_slice %226 {offsets = [0, 128], sizes = [1, 128], strides = [1, 1]} : vector<1x384xf32> to vector<1x128xf32>
    %237 = arith.addf %235, %236 : vector<1x128xf32>
    %238 = arith.negf %237 : vector<1x128xf32>
    %239 = math.exp %238 : vector<1x128xf32>
    %cst_62 = arith.constant 1.000000e+00 : f32
    %240 = vector.broadcast %cst_62 : f32 to vector<1x128xf32>
    %241 = arith.addf %240, %239 : vector<1x128xf32>
    %242 = arith.divf %240, %241 : vector<1x128xf32>
    %243 = vector.extract_strided_slice %225 {offsets = [0, 256], sizes = [1, 128], strides = [1, 1]} : vector<1x384xf32> to vector<1x128xf32>
    %244 = vector.extract_strided_slice %226 {offsets = [0, 256], sizes = [1, 128], strides = [1, 1]} : vector<1x384xf32> to vector<1x128xf32>
    %245 = arith.addf %244, %49 : vector<1x128xf32>
    %246 = arith.mulf %234, %245 : vector<1x128xf32>
    %247 = arith.addf %243, %246 : vector<1x128xf32>
    %248 = math.tanh %247 : vector<1x128xf32>
    %cst_63 = arith.constant 1.000000e+00 : f32
    %249 = vector.broadcast %cst_63 : f32 to vector<1x128xf32>
    %250 = arith.subf %249, %242 : vector<1x128xf32>
    %251 = arith.mulf %250, %248 : vector<1x128xf32>
    %252 = arith.mulf %242, %224 : vector<1x128xf32>
    %253 = arith.addf %251, %252 : vector<1x128xf32>
    %254 = vector.extract_strided_slice %47 {offsets = [7, 0], sizes = [1, 384], strides = [1, 1]} : vector<8x384xf32> to vector<1x384xf32>
    %cst_64 = arith.constant dense<0.000000e+00> : vector<1x384xf32>
    %255 = tpu.matmul %253, %48, %cst_64 {dimension_numbers = #tpu.dot_dimension_numbers<[1], [0], [0], [1], [0, 0, 1, 1], [], []>} : vector<1x128xf32>, vector<128x384xf32>, vector<1x384xf32> -> vector<1x384xf32>
    %256 = vector.extract_strided_slice %254 {offsets = [0, 0], sizes = [1, 128], strides = [1, 1]} : vector<1x384xf32> to vector<1x128xf32>
    %257 = vector.extract_strided_slice %255 {offsets = [0, 0], sizes = [1, 128], strides = [1, 1]} : vector<1x384xf32> to vector<1x128xf32>
    %258 = arith.addf %256, %257 : vector<1x128xf32>
    %259 = arith.negf %258 : vector<1x128xf32>
    %260 = math.exp %259 : vector<1x128xf32>
    %cst_65 = arith.constant 1.000000e+00 : f32
    %261 = vector.broadcast %cst_65 : f32 to vector<1x128xf32>
    %262 = arith.addf %261, %260 : vector<1x128xf32>
    %263 = arith.divf %261, %262 : vector<1x128xf32>
    %264 = vector.extract_strided_slice %254 {offsets = [0, 128], sizes = [1, 128], strides = [1, 1]} : vector<1x384xf32> to vector<1x128xf32>
    %265 = vector.extract_strided_slice %255 {offsets = [0, 128], sizes = [1, 128], strides = [1, 1]} : vector<1x384xf32> to vector<1x128xf32>
    %266 = arith.addf %264, %265 : vector<1x128xf32>
    %267 = arith.negf %266 : vector<1x128xf32>
    %268 = math.exp %267 : vector<1x128xf32>
    %cst_66 = arith.constant 1.000000e+00 : f32
    %269 = vector.broadcast %cst_66 : f32 to vector<1x128xf32>
    %270 = arith.addf %269, %268 : vector<1x128xf32>
    %271 = arith.divf %269, %270 : vector<1x128xf32>
    %272 = vector.extract_strided_slice %254 {offsets = [0, 256], sizes = [1, 128], strides = [1, 1]} : vector<1x384xf32> to vector<1x128xf32>
    %273 = vector.extract_strided_slice %255 {offsets = [0, 256], sizes = [1, 128], strides = [1, 1]} : vector<1x384xf32> to vector<1x128xf32>
    %274 = arith.addf %273, %49 : vector<1x128xf32>
    %275 = arith.mulf %263, %274 : vector<1x128xf32>
    %276 = arith.addf %272, %275 : vector<1x128xf32>
    %277 = math.tanh %276 : vector<1x128xf32>
    %cst_67 = arith.constant 1.000000e+00 : f32
    %278 = vector.broadcast %cst_67 : f32 to vector<1x128xf32>
    %279 = arith.subf %278, %271 : vector<1x128xf32>
    %280 = arith.mulf %279, %277 : vector<1x128xf32>
    %281 = arith.mulf %271, %253 : vector<1x128xf32>
    %282 = arith.addf %280, %281 : vector<1x128xf32>
    %c0_68 = arith.constant 0 : index
    %c0_69 = arith.constant 0 : index
    %283 = vector.load %arg14[%c0_68, %c0_69] : memref<1x128xf32, #tpu.memory_space<vmem>>, vector<1x128xf32>
    tpu.vector_store %arg14[%c0_68, %c0_69], %282 {strides = array<i32>} : memref<1x128xf32, #tpu.memory_space<vmem>>, vector<1x128xf32>,
    return
  }
}

</mosaic_0001>

<bundles_post_ra>
// kernel: tpu_custom_call.1
= control target key start
LH: loop header
LB: loop body
LE: loop exit
PB: predicated region body
PF: predicated region fallthrough
CT: control target
= control target key end

     0   :  { %19 = vsyncpa [#allocation3], 0  ;;  %s3722_s0 = inlined_call_operand.vmem [shape: f32[128,96], index: 0, kind: input, shape index: {}]   ;;  %s3723_s1 = inlined_call_operand.vmem [shape: f32[8,32], index: 1, kind: input, shape index: {}]   ;;  %s3724_s2 = inlined_call_operand.vmem [shape: f32[96,32], index: 2, kind: input, shape index: {}]   ;;  %s3725_s3 = inlined_call_operand.vmem [shape: f32[1,32], index: 3, kind: input, shape index: {}]   ;;  %s3726_s4 = inlined_call_operand.vmem [shape: f32[32,32], index: 4, kind: input, shape index: {}]   ;;  %s3727_s5 = inlined_call_operand.vmem [shape: f32[1,32], index: 5, kind: input, shape index: {}]   ;;  %s3728_s6 = inlined_call_operand.vmem [shape: f32[1,32], index: 6, kind: input, shape index: {}]   ;;  %s3729_s7 = inlined_call_operand.vmem [shape: f32[32,64], index: 7, kind: input, shape index: {}]   ;;  %s3730_s8 = inlined_call_operand.vmem [shape: f32[1,64], index: 8, kind: input, shape index: {}]   ;;  %s3731_s9 = inlined_call_operand.vmem [shape: f32[1,128], index: 9, kind: input, shape index: {}]   ;;  %s3732_s10 = inlined_call_operand.hbm [shape: f32[128,384], index: 10, kind: input, shape index: {}]   ;;  %s3733_s11 = inlined_call_operand.hbm [shape: f32[128,384], index: 11, kind: input, shape index: {}]   ;;  %s3734_s12 = inlined_call_operand.vmem [shape: f32[1,384], index: 12, kind: input, shape index: {}]   ;;  %s3735_s13 = inlined_call_operand.vmem [shape: f32[1,128], index: 13, kind: input, shape index: {}]   ;;  %s3736_s14 = inlined_call_operand.hbm [shape: f32[1,128], index: 14, kind: output, shape index: {}]  }
   0x1   :  { %20 = vsyncpa [#allocation6], 0 }
   0x2   :  { %21 = vsyncpa [#allocation4], 0  ;;  %s46_s15 = sshll.u32 %s3732_s10, 4  ;;  %s2415_s16 = smov [#allocation2]   ;;  %s47_s15 = int_to_ptr.hbm [resolvable:$true] %s46_s15 }
   0x3   :  { %s48_s17 = sshll.u32 %s2415_s16, 4  ;;  %s59_s20 = sshll.u32 %s3733_s11, 4  ;;  %s49_s17 = int_to_ptr.vmem [resolvable:$true] %s48_s17  ;;  %s60_s20 = int_to_ptr.hbm [resolvable:$true] %s59_s20 }
   0x4   :  { %s2416_s21 = smov 384   ;;  %s2417_s22 = smov 24  }
   0x5   :  { %54 = dma.hbm_to_vmem [thread:$0]  %s47_s15, 6144, %s49_s17, [#allocation3], %s2416_s21, %s2416_s21, %s2417_s22  }
   0x6   :  { %s2418_s23 = smov [#allocation5]  }
   0x7   :  { %s61_s24 = sshll.u32 %s2418_s23, 4  ;;  %s62_s24 = int_to_ptr.vmem [resolvable:$true] %s61_s24 }
   0x8   :  { %67 = dma.hbm_to_vmem [thread:$0]  %s60_s20, 6144, %s62_s24, [#allocation6], %s2416_s21, %s2416_s21, %s2417_s22  }
   0x9   :  { %2409 = dma.done.wait [#allocation3], 6144  }
   0xa   :  { %2410 = vsyncadd [#allocation3], 4294961152 }
   0xb   :  { %2411 = dma.done.wait [#allocation6], 6144  }
   0xc   :  { %2412 = vsyncadd [#allocation6], 4294961152  ;;  %v107_v0 = vld [vmem:[%s3724_s2 + $0x58] sm:$0xff]  ;;  %v106_v1 = vld [vmem:[%s3724_s2 + $0x50] sm:$0xff]  ;;  %vm112_vm0 = vcmask 785408   ;;  %vm250_vm1 = vcmask 261120  }
   0xd   :  { %165 = vmatpush.msra.mxu0 %v107_v0  ;;  %v105_v2 = vld [vmem:[%s3724_s2 + $0x48] sm:$0xff]  ;;  %v104_v3 = vld [vmem:[%s3724_s2 + $0x40] sm:$0xff]  ;;  %v103_v4 = vld [vmem:[%s3724_s2 + $0x38] sm:$0xff]  ;;  %vm469_vm2 = vcmask 130112   ;;  %vm492_vm3 = vcmask 1041409   ;;  %vm494_vm4 = vcmask 1042434  }
   0xe   :  { %v102_v5 = vld [vmem:[%s3724_s2 + $0x30] sm:$0xff]  ;;  %v101_v6 = vld [vmem:[%s3724_s2 + $0x28] sm:$0xff]  ;;  %v100_v7 = vld [vmem:[%s3724_s2 + $0x20] sm:$0xff]  ;;  %vm496_vm5 = vcmask 1043459   ;;  %vm498_vm6 = vcmask 1044484   ;;  %vm500_vm7 = vcmask 1045509  }
   0xf   :  { %166 = vmatpush.msra.mxu0 %v106_v1  ;;  %v99_v8 = vld [vmem:[%s3724_s2 + $0x18] sm:$0xff]  ;;  %v98_v9 = vld [vmem:[%s3724_s2 + $0x10] sm:$0xff]  ;;  %v97_v10 = vld [vmem:[%s3724_s2 + $0x8] sm:$0xff]  ;;  %vm502_vm8 = vcmask 1046534   ;;  %vm504_vm9 = vcmask 1047559   ;;  %vm507_vm10 = vcmask 130048  }
  0x10   :  { %v96_v11 = vld [vmem:[%s3724_s2] sm:$0xff]  ;;  %v81_v13 = vld [vmem:[%s3722_s0 + $0x8] sm:$0xff]  ;;  %v82_v14 = vld [vmem:[%s3722_s0 + $0x10] sm:$0xff]  ;;  %s2420_s10 = smov 32   ;;  %s2065_s15 = sshll.u32 %s3736_s14, 4  ;;  %s2066_s15 = int_to_ptr.hbm [resolvable:$true] %s2065_s15 }
  0x11   :  { %167 = vmatpush.msra.mxu0 %v105_v2  ;;  %v80_v12 = vld [vmem:[%s3722_s0] sm:$0xff]  ;;  %v83_v15 = vld [vmem:[%s3722_s0 + $0x18] sm:$0xff]  ;;  %v85_v17 = vld [vmem:[%s3722_s0 + $0x28] sm:$0xff] }
  0x12   :  { %v84_v16 = vld [vmem:[%s3722_s0 + $0x20] sm:$0xff]  ;;  %v86_v18 = vld [vmem:[%s3722_s0 + $0x30] sm:$0xff]  ;;  %v87_v19 = vld [vmem:[%s3722_s0 + $0x38] sm:$0xff] }
  0x13   :  { %168 = vmatpush.msra.mxu0 %v104_v3  ;;  %v88_v20 = vld [vmem:[%s3722_s0 + $0x40] sm:$0xff]  ;;  %v89_v21 = vld [vmem:[%s3722_s0 + $0x48] sm:$0xff]  ;;  %v90_v22 = vld [vmem:[%s3722_s0 + $0x50] sm:$0xff] }
  0x14   :  { %v91_v23 = vld [vmem:[%s3722_s0 + $0x58] sm:$0xff]  ;;  %v244_v25 = vld [vmem:[%s3726_s4 + $0x10] sm:$0xff]  ;;  %v92_v26 = vld [vmem:[%s3722_s0 + $0x60] sm:$0xff] }
  0x15   :  { %169 = vmatpush.msra.mxu0 %v103_v4  ;;  %v245_v24 = vld [vmem:[%s3726_s4 + $0x18] sm:$0xff]  ;;  %v243_v27 = vld [vmem:[%s3726_s4 + $0x8] sm:$0xff]  ;;  %v242_v28 = vld [vmem:[%s3726_s4] sm:$0xff] }
  0x16   :  { %311 = vmatpush.msra.mxu1 %v245_v24  ;;  %v93_v29 = vld [vmem:[%s3722_s0 + $0x68] sm:$0xff]  ;;  %v94_v30 = vld [vmem:[%s3722_s0 + $0x70] sm:$0xff]  ;;  %v95_v31 = vld [vmem:[%s3722_s0 + $0x78] sm:$0xff] }
  0x17   :  { %170 = vmatpush.msra.mxu0 %v102_v5  ;;  %v2618_v32 = vld [vmem:[%s3725_s3] ss:$0 sm:$0xff] }
  0x18   :  { %312 = vmatpush.msra.mxu1 %v244_v25 }
  0x19   :  { %171 = vmatpush.msra.mxu0 %v101_v6 }
  0x1a   :  { %313 = vmatpush.msra.mxu1 %v243_v27 }
  0x1b   :  { %172 = vmatpush.msra.mxu0 %v100_v7 }
  0x1c   :  { %314 = vmatpush.msra.mxu1 %v242_v28 }
  0x1d   :  { %173 = vmatpush.msra.mxu0 %v99_v8 }
  0x1f   :  { %174 = vmatpush.msra.mxu0 %v98_v9 }
  0x21   :  { %175 = vmatpush.msra.mxu0 %v97_v10 }
  0x23   :  { %176 = vmatpush.msra.mxu0 %v96_v11 }
  0x24   :  { %2076 = vmatmul.msk.f32.vlgmr.msra.gmra.mxu0 %vm112_vm0, %v80_v12 }
  0x2c   :  { %2077 = vmatmul.msk.f32.gmra.mxu0 %vm112_vm0, %v81_v13 }
  0x34   :  { %2078 = vmatmul.msk.f32.gmra.mxu0 %vm112_vm0, %v82_v14 }
  0x3c   :  { %2079 = vmatmul.msk.f32.gmra.mxu0 %vm112_vm0, %v83_v15 }
  0x44   :  { %2080 = vmatmul.msk.f32.gmra.mxu0 %vm112_vm0, %v84_v16 }
  0x4c   :  { %2081 = vmatmul.msk.f32.gmra.mxu0 %vm112_vm0, %v85_v17  ;;  %v2735_v17 = vld [vmem:[%s3727_s5] ss:$0 sm:$0xff] }
  0x54   :  { %2082 = vmatmul.msk.f32.gmra.mxu0 %vm112_vm0, %v86_v18 }
  0x5c   :  { %2083 = vmatmul.msk.f32.gmra.mxu0 %vm112_vm0, %v87_v19 }
  0x64   :  { %2084 = vmatmul.msk.f32.gmra.mxu0 %vm112_vm0, %v88_v20  ;;  %v2741_v20 = vld [vmem:[%s3728_s6] ss:$0 sm:$0xff] }
  0x6c   :  { %2085 = vmatmul.msk.f32.gmra.mxu0 %vm112_vm0, %v89_v21 }
  0x74   :  { %2086 = vmatmul.msk.f32.gmra.mxu0 %vm112_vm0, %v90_v22 }
  0x7c   :  { %2087 = vmatmul.msk.f32.gmra.mxu0 %vm112_vm0, %v91_v23 }
  0x84   :  { %2088 = vmatmul.msk.f32.gmra.mxu0 %vm112_vm0, %v92_v26 }
  0x8c   :  { %2089 = vmatmul.msk.f32.gmra.mxu0 %vm112_vm0, %v93_v29 }
  0x94   :  { %2090 = vmatmul.msk.f32.gmra.mxu0 %vm112_vm0, %v94_v30 }
  0x9c   :  { %2091 = vmatmul.msk.f32.gmra.mxu0 %vm112_vm0, %v95_v31 }
  0xa1   :  { %v178_v33 = vpop.f32.mrf.mxu0 }
  0xa2   :  { %v2621_v34 = vadd.f32 %v2618_v32, %v178_v33 }
  0xa4   :  { %v226_v35 = vmax.f32 %v2621_v34, 0.0 }
  0xa6   :  { %2092 = vmatmul.msk.f32.vlgmr.msra.gmra.mxu1 %vm250_vm1, %v226_v35 }
  0xa9   :  { %v181_v36 = vpop.f32.mrf.mxu0 }
  0xaa   :  { %v2628_v37 = vadd.f32 %v2618_v32, %v181_v36 }
  0xac   :  { %v3745_v38 = vmax.f32 %v2628_v37, 0.0  ;;  %v3768_v34 = vmax.f32 %v2628_v37, 0.0 }
  0xae   :  { %2093 = vmatmul.msk.f32.gmra.mxu1 %vm250_vm1, %v3745_v38 }
  0xb1   :  { %v184_v39 = vpop.f32.mrf.mxu0 }
  0xb2   :  { %v2635_v40 = vadd.f32 %v2618_v32, %v184_v39 }
  0xb4   :  { %v228_v41 = vmax.f32 %v2635_v40, 0.0 }
  0xb6   :  { %2094 = vmatmul.msk.f32.gmra.mxu1 %vm250_vm1, %v228_v41 }
  0xb9   :  { %v187_v42 = vpop.f32.mrf.mxu0 }
  0xba   :  { %v2642_v43 = vadd.f32 %v2618_v32, %v187_v42 }
  0xbc   :  { %v229_v44 = vmax.f32 %v2642_v43, 0.0 }
  0xbe   :  { %2095 = vmatmul.msk.f32.gmra.mxu1 %vm250_vm1, %v229_v44 }
  0xc1   :  { %v190_v45 = vpop.f32.mrf.mxu0 }
  0xc2   :  { %v2649_v46 = vadd.f32 %v2618_v32, %v190_v45 }
  0xc4   :  { %v230_v47 = vmax.f32 %v2649_v46, 0.0 }
  0xc6   :  { %2096 = vmatmul.msk.f32.gmra.mxu1 %vm250_vm1, %v230_v47 }
  0xc9   :  { %v193_v48 = vpop.f32.mrf.mxu0 }
  0xca   :  { %v2656_v49 = vadd.f32 %v2618_v32, %v193_v48 }
  0xcc   :  { %v231_v50 = vmax.f32 %v2656_v49, 0.0 }
  0xce   :  { %2097 = vmatmul.msk.f32.gmra.mxu1 %vm250_vm1, %v231_v50 }
  0xd1   :  { %v196_v51 = vpop.f32.mrf.mxu0 }
  0xd2   :  { %v2663_v52 = vadd.f32 %v2618_v32, %v196_v51 }
  0xd4   :  { %v232_v53 = vmax.f32 %v2663_v52, 0.0 }
  0xd6   :  { %2098 = vmatmul.msk.f32.gmra.mxu1 %vm250_vm1, %v232_v53 }
  0xd9   :  { %v199_v54 = vpop.f32.mrf.mxu0 }
  0xda   :  { %v2670_v55 = vadd.f32 %v2618_v32, %v199_v54 }
  0xdc   :  { %v3744_v56 = vmax.f32 %v2670_v55, 0.0 }
  0xde   :  { %2099 = vmatmul.msk.f32.gmra.mxu1 %vm250_vm1, %v3744_v56 }
  0xe1   :  { %v202_v57 = vpop.f32.mrf.mxu0 }
  0xe2   :  { %v2677_v58 = vadd.f32 %v2618_v32, %v202_v57 }
  0xe4   :  { %v3746_v59 = vmax.f32 %v2677_v58, 0.0 }
  0xe6   :  { %2100 = vmatmul.msk.f32.gmra.mxu1 %vm250_vm1, %v3746_v59 }
  0xe9   :  { %v205_v60 = vpop.f32.mrf.mxu0 }
  0xea   :  { %v2684_v61 = vadd.f32 %v2618_v32, %v205_v60 }
  0xec   :  { %v3743_v62 = vmax.f32 %v2684_v61, 0.0  ;;  %v3770_v49 = vmax.f32 %v2684_v61, 0.0 }
  0xee   :  { %2101 = vmatmul.msk.f32.gmra.mxu1 %vm250_vm1, %v3743_v62 }
  0xf1   :  { %v208_v63 = vpop.f32.mrf.mxu0 }
  0xf2   :  { %v2691_v0 = vadd.f32 %v2618_v32, %v208_v63 }
  0xf4   :  { %v3742_v1 = vmax.f32 %v2691_v0, 0.0 }
  0xf6   :  { %2102 = vmatmul.msk.f32.gmra.mxu1 %vm250_vm1, %v3742_v1 }
  0xf9   :  { %v211_v2 = vpop.f32.mrf.mxu0 }
  0xfa   :  { %v2698_v3 = vadd.f32 %v2618_v32, %v211_v2 }
  0xfc   :  { %v3741_v4 = vmax.f32 %v2698_v3, 0.0 }
  0xfe   :  { %2103 = vmatmul.msk.f32.gmra.mxu1 %vm250_vm1, %v3741_v4 }
 0x101   :  { %v214_v5 = vpop.f32.mrf.mxu0 }
 0x102   :  { %v2705_v6 = vadd.f32 %v2618_v32, %v214_v5 }
 0x104   :  { %v3740_v7 = vmax.f32 %v2705_v6, 0.0 }
 0x106   :  { %2104 = vmatmul.msk.f32.gmra.mxu1 %vm250_vm1, %v3740_v7 }
 0x109   :  { %v217_v8 = vpop.f32.mrf.mxu0 }
 0x10a   :  { %v2712_v9 = vadd.f32 %v2618_v32, %v217_v8 }
 0x10c   :  { %v3739_v10 = vmax.f32 %v2712_v9, 0.0 }
 0x10e   :  { %2105 = vmatmul.msk.f32.gmra.mxu1 %vm250_vm1, %v3739_v10 }
 0x111   :  { %v220_v11 = vpop.f32.mrf.mxu0 }
 0x112   :  { %v2719_v12 = vadd.f32 %v2618_v32, %v220_v11 }
 0x114   :  { %v3738_v13 = vmax.f32 %v2719_v12, 0.0 }
 0x116   :  { %2106 = vmatmul.msk.f32.gmra.mxu1 %vm250_vm1, %v3738_v13 }
 0x119   :  { %v223_v14 = vpop.f32.mrf.mxu0 }
 0x11a   :  { %v2726_v15 = vadd.f32 %v2618_v32, %v223_v14 }
 0x11c   :  { %v3737_v16 = vmax.f32 %v2726_v15, 0.0 }
 0x11e   :  { %2107 = vmatmul.msk.f32.gmra.mxu1 %vm250_vm1, %v3737_v16 }
 0x123   :  { %v316_v18 = vpop.f32.mrf.mxu1 }
 0x124   :  { %v317_v19 = vadd.f32 %v2735_v17, %v316_v18 }
 0x126   :  { %2142 = vtanh.f32 %v317_v19 }
 0x12b   :  { %v319_v21 = vpop.f32.mrf.mxu1 }
 0x12c   :  { %v2143_v22 = vpop.eup %2142  ;;  %v320_v23 = vadd.f32 %v2735_v17, %v319_v21 }
 0x12d   :  { %v384_v24 = vmul.f32 %v2143_v22, %v2741_v20 }
 0x12e   :  { %2144 = vtanh.f32 %v320_v23 }
 0x12f   :  { %v400_v25 = vsel %vm250_vm1, %v384_v24, 0.0 }
 0x130   :  { %401 = vadd.xlane.f32.xlu0 %v400_v25 }
 0x133   :  { %v322_v26 = vpop.f32.mrf.mxu1 }
 0x134   :  { %v2145_v27 = vpop.eup %2144  ;;  %v323_v28 = vadd.f32 %v2735_v17, %v322_v26 }
 0x135   :  { %v385_v29 = vmul.f32 %v2145_v27, %v2741_v20 }
 0x136   :  { %2146 = vtanh.f32 %v323_v28 }
 0x137   :  { %v403_v30 = vsel %vm250_vm1, %v385_v29, 0.0 }
 0x138   :  { %404 = vadd.xlane.f32.xlu0 %v403_v30 }
 0x13b   :  { %v325_v31 = vpop.f32.mrf.mxu1 }
 0x13c   :  { %v2147_v32 = vpop.eup %2146  ;;  %v326_v33 = vadd.f32 %v2735_v17, %v325_v31 }
 0x13d   :  { %v386_v36 = vmul.f32 %v2147_v32, %v2741_v20 }
 0x13e   :  { %2148 = vtanh.f32 %v326_v33 }
 0x13f   :  { %v406_v39 = vsel %vm250_vm1, %v386_v36, 0.0 }
 0x140   :  { %407 = vadd.xlane.f32.xlu1 %v406_v39 }
 0x143   :  { %v328_v42 = vpop.f32.mrf.mxu1 }
 0x144   :  { %v2149_v45 = vpop.eup %2148  ;;  %v329_v48 = vadd.f32 %v2735_v17, %v328_v42 }
 0x145   :  { %v387_v51 = vmul.f32 %v2149_v45, %v2741_v20 }
 0x146   :  { %2150 = vtanh.f32 %v329_v48 }
 0x147   :  { %v409_v54 = vsel %vm250_vm1, %v387_v51, 0.0 }
 0x148   :  { %410 = vadd.xlane.f32.xlu1 %v409_v54 }
 0x14b   :  { %v331_v57 = vpop.f32.mrf.mxu1 }
 0x14c   :  { %v2151_v60 = vpop.eup %2150  ;;  %v332_v63 = vadd.f32 %v2735_v17, %v331_v57 }
 0x14d   :  { %v388_v2 = vmul.f32 %v2151_v60, %v2741_v20 }
 0x14e   :  { %2152 = vtanh.f32 %v332_v63 }
 0x14f   :  { %v412_v5 = vsel %vm250_vm1, %v388_v2, 0.0 }
 0x150   :  { %413 = vadd.xlane.f32.xlu2 %v412_v5 }
 0x153   :  { %v334_v8 = vpop.f32.mrf.mxu1 }
 0x154   :  { %v2153_v11 = vpop.eup %2152  ;;  %v335_v14 = vadd.f32 %v2735_v17, %v334_v8 }
 0x155   :  { %v389_v18 = vmul.f32 %v2153_v11, %v2741_v20 }
 0x156   :  { %2154 = vtanh.f32 %v335_v14 }
 0x157   :  { %v415_v19 = vsel %vm250_vm1, %v389_v18, 0.0 }
 0x158   :  { %416 = vadd.xlane.f32.xlu2 %v415_v19 }
 0x15b   :  { %v337_v21 = vpop.f32.mrf.mxu1 }
 0x15c   :  { %v2155_v22 = vpop.eup %2154  ;;  %v338_v23 = vadd.f32 %v2735_v17, %v337_v21 }
 0x15d   :  { %v390_v24 = vmul.f32 %v2155_v22, %v2741_v20 }
 0x15e   :  { %2156 = vtanh.f32 %v338_v23 }
 0x15f   :  { %v418_v25 = vsel %vm250_vm1, %v390_v24, 0.0 }
 0x160   :  { %419 = vadd.xlane.f32.xlu0 %v418_v25 }
 0x163   :  { %v340_v26 = vpop.f32.mrf.mxu1 }
 0x164   :  { %v2157_v27 = vpop.eup %2156  ;;  %v341_v28 = vadd.f32 %v2735_v17, %v340_v26 }
 0x165   :  { %v391_v29 = vmul.f32 %v2157_v27, %v2741_v20 }
 0x166   :  { %2158 = vtanh.f32 %v341_v28 }
 0x167   :  { %v421_v30 = vsel %vm250_vm1, %v391_v29, 0.0 }
 0x168   :  { %422 = vadd.xlane.f32.xlu1 %v421_v30 }
 0x16b   :  { %v343_v31 = vpop.f32.mrf.mxu1 }
 0x16c   :  { %v2159_v32 = vpop.eup %2158  ;;  %v344_v33 = vadd.f32 %v2735_v17, %v343_v31 }
 0x16d   :  { %v392_v36 = vmul.f32 %v2159_v32, %v2741_v20 }
 0x16e   :  { %2160 = vtanh.f32 %v344_v33 }
 0x16f   :  { %v424_v39 = vsel %vm250_vm1, %v392_v36, 0.0 }
 0x170   :  { %425 = vadd.xlane.f32.xlu2 %v424_v39 }
 0x173   :  { %v346_v42 = vpop.f32.mrf.mxu1 }
 0x174   :  { %v2161_v45 = vpop.eup %2160  ;;  %v347_v48 = vadd.f32 %v2735_v17, %v346_v42 }
 0x175   :  { %v393_v51 = vmul.f32 %v2161_v45, %v2741_v20 }
 0x176   :  { %2162 = vtanh.f32 %v347_v48 }
 0x177   :  { %v427_v54 = vsel %vm250_vm1, %v393_v51, 0.0 }
 0x178   :  { %428 = vadd.xlane.f32.xlu0 %v427_v54 }
 0x17b   :  { %v349_v57 = vpop.f32.mrf.mxu1 }
 0x17c   :  { %v2163_v60 = vpop.eup %2162  ;;  %v350_v63 = vadd.f32 %v2735_v17, %v349_v57 }
 0x17d   :  { %v394_v2 = vmul.f32 %v2163_v60, %v2741_v20 }
 0x17e   :  { %2164 = vtanh.f32 %v350_v63 }
 0x17f   :  { %v430_v5 = vsel %vm250_vm1, %v394_v2, 0.0 }
 0x180   :  { %431 = vadd.xlane.f32.xlu1 %v430_v5 }
 0x183   :  { %v352_v8 = vpop.f32.mrf.mxu1 }
 0x184   :  { %v2165_v11 = vpop.eup %2164  ;;  %v353_v14 = vadd.f32 %v2735_v17, %v352_v8  ;;  %v464_v8 = vlaneseq }
 0x185   :  { %v395_v18 = vmul.f32 %v2165_v11, %v2741_v20 }
 0x186   :  { %2166 = vtanh.f32 %v353_v14 }
 0x187   :  { %v433_v19 = vsel %vm250_vm1, %v395_v18, 0.0  ;;  %v2812_v18 = vand.u32 127, %v464_v8 }
 0x188   :  { %434 = vadd.xlane.f32.xlu2 %v433_v19 }
 0x189   :  { %v2815_v19 = vadd.s32 4294967288, %v2812_v18 }
 0x18b   :  { %v355_v21 = vpop.f32.mrf.mxu1 }
 0x18c   :  { %v2167_v22 = vpop.eup %2166  ;;  %v356_v23 = vadd.f32 %v2735_v17, %v355_v21 }
 0x18d   :  { %v396_v24 = vmul.f32 %v2167_v22, %v2741_v20 }
 0x18e   :  { %2168 = vtanh.f32 %v356_v23 }
 0x18f   :  { %v436_v25 = vsel %vm250_vm1, %v396_v24, 0.0 }
 0x190   :  { %437 = vadd.xlane.f32.xlu0 %v436_v25 }
 0x193   :  { %v358_v26 = vpop.f32.mrf.mxu1 }
 0x194   :  { %v2169_v27 = vpop.eup %2168  ;;  %v359_v28 = vadd.f32 %v2735_v17, %v358_v26 }
 0x195   :  { %v397_v29 = vmul.f32 %v2169_v27, %v2741_v20 }
 0x196   :  { %2170 = vtanh.f32 %v359_v28 }
 0x197   :  { %v439_v30 = vsel %vm250_vm1, %v397_v29, 0.0 }
 0x198   :  { %440 = vadd.xlane.f32.xlu1 %v439_v30 }
 0x19b   :  { %v361_v31 = vpop.f32.mrf.mxu1 }
 0x19c   :  { %v2171_v32 = vpop.eup %2170  ;;  %v362_v33 = vadd.f32 %v2735_v17, %v361_v31 }
 0x19d   :  { %v398_v36 = vmul.f32 %v2171_v32, %v2741_v20 }
 0x19e   :  { %2172 = vtanh.f32 %v362_v33 }
 0x19f   :  { %v442_v39 = vsel %vm250_vm1, %v398_v36, 0.0 }
 0x1a0   :  { %443 = vadd.xlane.f32.xlu2 %v442_v39 }
 0x1a3   :  { %v2790_v51 = vpop.xlane.xlu0 %401 }
 0x1a4   :  { %v2173_v42 = vpop.eup %2172  ;;  %v466_v31 = vperm.slane %v2790_v51, %v2812_v18 }
 0x1a5   :  { %v399_v45 = vmul.f32 %v2173_v42, %v2741_v20 }
 0x1a7   :  { %v445_v48 = vsel %vm250_vm1, %v399_v45, 0.0 }
 0x1a8   :  { %446 = vadd.xlane.f32.xlu0 %v445_v48 }
 0x1ab   :  { %v2796_v60 = vpop.xlane.xlu0 %404 }
 0x1ac   :  { %v468_v25 = vperm.slane %v2796_v60, %v2815_v19 }
 0x1ae   :  { %v470_v48 = vsel %vm469_vm2, %v468_v25, %v466_v31 }
 0x1b3   :  { %v2792_v54 = vpop.xlane.xlu1 %407 }
 0x1b4   :  { %v471_v26 = vperm.slane %v2792_v54, %v2812_v18 }
 0x1bb   :  { %v2798_v17 = vpop.xlane.xlu1 %410 }
 0x1bc   :  { %v472_v22 = vperm.slane %v2798_v17, %v2815_v19 }
 0x1be   :  { %v473_v32 = vsel %vm469_vm2, %v472_v22, %v471_v26 }
 0x1bf   :  { %v493_v26 = vsel %vm492_vm3, %v473_v32, %v470_v48 }
 0x1c3   :  { %v2794_v57 = vpop.xlane.xlu2 %413 }
 0x1c4   :  { %v474_v29 = vperm.slane %v2794_v57, %v2812_v18 }
 0x1cb   :  { %v2800_v63 = vpop.xlane.xlu2 %416 }
 0x1cc   :  { %v475_v23 = vperm.slane %v2800_v63, %v2815_v19 }
 0x1ce   :  { %v476_v39 = vsel %vm469_vm2, %v475_v23, %v474_v29 }
 0x1cf   :  { %v495_v13 = vsel %vm494_vm4, %v476_v39, %v493_v26 }
 0x1d3   :  { %v2802_v2 = vpop.xlane.xlu0 %419 }
 0x1d4   :  { %v477_v33 = vperm.slane %v2802_v2, %v2812_v18 }
 0x1db   :  { %v2804_v5 = vpop.xlane.xlu1 %422 }
 0x1dc   :  { %v478_v27 = vperm.slane %v2804_v5, %v2815_v19 }
 0x1de   :  { %v479_v8 = vsel %vm469_vm2, %v478_v27, %v477_v33 }
 0x1df   :  { %v497_v27 = vsel %vm496_vm5, %v479_v8, %v495_v13  ;;  %v2419_v8 = vmov 0  }
 0x1e0   :  { %2137 = vset.pattern.permute.xlu1 %v2419_v8  ;;  %2136 = vset.pattern.permute.xlu0 %v2419_v8 }
 0x1e1   :  { %2135 = vset.pattern.permute.xlu2 %v2419_v8 }
 0x1e3   :  { %v2806_v20 = vpop.xlane.xlu2 %425 }
 0x1e4   :  { %v480_v42 = vperm.slane %v2806_v20, %v2812_v18 }
 0x1eb   :  { %v2808_v11 = vpop.xlane.xlu0 %428 }
 0x1ec   :  { %v481_v30 = vperm.slane %v2808_v11, %v2815_v19 }
 0x1ee   :  { %v482_v16 = vsel %vm469_vm2, %v481_v30, %v480_v42 }
 0x1ef   :  { %v499_v42 = vsel %vm498_vm6, %v482_v16, %v497_v27 }
 0x1f3   :  { %v2810_v14 = vpop.xlane.xlu1 %431 }
 0x1f4   :  { %v483_v22 = vperm.slane %v2810_v14, %v2812_v18 }
 0x1fb   :  { %v2817_v21 = vpop.xlane.xlu2 %434 }
 0x1fc   :  { %v484_v36 = vperm.slane %v2817_v21, %v2815_v19 }
 0x1fe   :  { %v485_v25 = vsel %vm469_vm2, %v484_v36, %v483_v22 }
 0x1ff   :  { %v501_v39 = vsel %vm500_vm7, %v485_v25, %v499_v42 }
 0x203   :  { %v2823_v24 = vpop.xlane.xlu0 %437 }
 0x204   :  { %v486_v23 = vperm.slane %v2823_v24, %v2812_v18 }
 0x20b   :  { %v2831_v28 = vpop.xlane.xlu1 %440 }
 0x20c   :  { %v487_v45 = vperm.slane %v2831_v28, %v2815_v19 }
 0x20e   :  { %v488_v33 = vsel %vm469_vm2, %v487_v45, %v486_v23 }
 0x20f   :  { %v503_v13 = vsel %vm502_vm8, %v488_v33, %v501_v39 }
 0x213   :  { %v2857_v29 = vpop.xlane.xlu2 %443 }
 0x214   :  { %v489_v30 = vperm.slane %v2857_v29, %v2812_v18 }
 0x21b   :  { %v2862_v31 = vpop.xlane.xlu0 %446 }
 0x21c   :  { %v490_v32 = vperm.slane %v2862_v31, %v2815_v19 }
 0x21e   :  { %v491_v36 = vsel %vm469_vm2, %v490_v32, %v489_v30 }
 0x21f   :  { %v505_v48 = vsel %vm504_vm9, %v491_v36, %v503_v13 }
 0x220   :  { %v508_v45 = vsel %vm507_vm10, %v505_v48, -inf }
 0x221   :  { %509 = vmax.xlane.f32.xlu1 %v508_v45 }
 0x294   :  { %v2875_v22 = vpop.xlane.xlu1 %509 }
 0x295   :  { %v513_v16 = vperm.slane %v2875_v22, 1  ;;  %v512_v26 = vperm.slane %v2875_v22, 0  ;;  %v514_v33 = vperm.slane %v2875_v22, 2  ;;  %v516_v30 = vperm.slane %v2875_v22, 4 }
 0x296   :  { %v517_v45 = vperm.slane %v2875_v22, 5 }
 0x297   :  { %v530_v23 = vsub.f32 %v2792_v54, %v513_v16  ;;  %v529_v25 = vsub.f32 %v2796_v60, %v512_v26  ;;  %v528_v27 = vsub.f32 %v2790_v51, %v512_v26  ;;  %v533_v36 = vsub.f32 %v2800_v63, %v514_v33 }
 0x298   :  { %v536_v13 = vsub.f32 %v2806_v20, %v516_v30  ;;  %v531_v54 = vsub.f32 %v2798_v17, %v513_v16  ;;  %v515_v60 = vperm.slane %v2875_v22, 3  ;;  %v539_v20 = vsub.f32 %v2817_v21, %v517_v45 }
 0x299   :  { %v548_v32 = vmul.f32 1.442695, %v530_v23  ;;  %v546_v42 = vmul.f32 1.442695, %v529_v25  ;;  %v544_v39 = vmul.f32 1.442695, %v528_v27  ;;  %v532_v16 = vsub.f32 %v2794_v57, %v514_v33 }
 0x29a   :  { %v554_v48 = vmul.f32 1.442695, %v533_v36  ;;  %v560_v51 = vmul.f32 1.442695, %v536_v13  ;;  %v550_v26 = vmul.f32 1.442695, %v531_v54  ;;  %v535_v17 = vsub.f32 %v2804_v5, %v515_v60 }
 0x29b   :  { %2174 = vpow2.f32 %v548_v32  ;;  %v566_v27 = vmul.f32 1.442695, %v539_v20  ;;  %v519_v32 = vperm.slane %v2875_v22, 7  ;;  %v538_v21 = vsub.f32 %v2810_v14, %v517_v45 }
 0x29c   :  { %2176 = vpow2.f32 %v546_v42  ;;  %v558_v25 = vmul.f32 1.442695, %v535_v17  ;;  %v534_v33 = vsub.f32 %v2802_v2, %v515_v60  ;;  %v518_v54 = vperm.slane %v2875_v22, 6 }
 0x29d   :  { %2178 = vpow2.f32 %v544_v39  ;;  %v552_v39 = vmul.f32 1.442695, %v532_v16  ;;  %v542_v57 = vsub.f32 %v2857_v29, %v519_v32  ;;  %v564_v13 = vmul.f32 1.442695, %v538_v21 }
 0x29e   :  { %2180 = vpow2.f32 %v554_v48  ;;  %v541_v29 = vsub.f32 %v2831_v28, %v518_v54  ;;  %v537_v2 = vsub.f32 %v2808_v11, %v516_v30  ;;  %v540_v28 = vsub.f32 %v2823_v24, %v518_v54 }
 0x29f   :  { %2182 = vpow2.f32 %v560_v51  ;;  %v572_v48 = vmul.f32 1.442695, %v542_v57 }
 0x2a0   :  { %2184 = vpow2.f32 %v550_v26  ;;  %v556_v26 = vmul.f32 1.442695, %v534_v33  ;;  %v570_v22 = vmul.f32 1.442695, %v541_v29  ;;  %v562_v45 = vmul.f32 1.442695, %v537_v2 }
 0x2a1   :  { %v2889_v8 = vpop.eup %2174  ;;  %2186 = vpow2.f32 %v558_v25  ;;  %v568_v11 = vmul.f32 1.442695, %v540_v28  ;;  %v878_v28 = vld [vmem:[%s3729_s7] sm:$0xff] }
 0x2a2   :  { %v2891_v23 = vpop.eup %2176  ;;  %599 = vperm.xlu1 %2137, %v2889_v8   ;;  %2188 = vpow2.f32 %v566_v27  ;;  %v543_v27 = vsub.f32 %v2862_v31, %v519_v32  ;;  %v881_v31 = vld [vmem:[%s3729_s7 + $0x18] sm:$0xff]  ;;  %v880_v32 = vld [vmem:[%s3729_s7 + $0x10] sm:$0xff] }
 0x2a3   :  { %v2894_v63 = vpop.eup %2178  ;;  %596 = vperm.xlu0 %2136, %v2891_v23   ;;  %2190 = vpow2.f32 %v552_v39  ;;  %901 = vmatpush.msra.mxu2 %v881_v31 }
 0x2a4   :  { %593 = vperm.xlu2 %2135, %v2894_v63   ;;  %v2902_v42 = vpop.eup %2180  ;;  %2192 = vpow2.f32 %v564_v13  ;;  %v574_v39 = vmul.f32 1.442695, %v543_v27 }
 0x2a5   :  { %v2904_v36 = vpop.eup %2182  ;;  %2194 = vpow2.f32 %v572_v48  ;;  %902 = vmatpush.msra.mxu2 %v880_v32 }
 0x2a6   :  { %v2907_v5 = vpop.eup %2184  ;;  %2196 = vpow2.f32 %v556_v26 }
 0x2a7   :  { %v2915_v51 = vpop.eup %2186  ;;  %2198 = vpow2.f32 %v570_v22  ;;  %v879_v22 = vld [vmem:[%s3729_s7 + $0x8] sm:$0xff] }
 0x2a8   :  { %v2917_v17 = vpop.eup %2188  ;;  %2200 = vpow2.f32 %v562_v45  ;;  %903 = vmatpush.msra.mxu2 %v879_v22 }
 0x2a9   :  { %v2920_v14 = vpop.eup %2190  ;;  %2202 = vpow2.f32 %v568_v11  ;;  %v877_v11 = vld [vmem:[%s3723_s1] sm:$0xff] }
 0x2aa   :  { %608 = vperm.xlu1 %2137, %v2902_v42   ;;  %v2926_v60 = vpop.eup %2192  ;;  %2204 = vpow2.f32 %v574_v39  ;;  %904 = vmatpush.msra.mxu2 %v878_v28 }
 0x2ab   :  { %617 = vperm.xlu0 %2136, %v2904_v36   ;;  %v2928_v20 = vpop.eup %2194  ;;  %2108 = vmatmul.msk.f32.vlgmr.msra.gmra.mxu2 %vm250_vm1, %v877_v11 }
 0x2ac   :  { %602 = vperm.xlu2 %2135, %v2907_v5   ;;  %v2931_v16 = vpop.eup %2196 }
 0x2ad   :  { %v2936_v25 = vpop.eup %2198 }
 0x2ae   :  { %v2939_v30 = vpop.eup %2200 }
 0x2af   :  { %v2943_v21 = vpop.eup %2202 }
 0x2b0   :  { %v2946_v57 = vpop.eup %2204 }
 0x2b2   :  { %614 = vperm.xlu1 %2137, %v2915_v51  }
 0x2b3   :  { %626 = vperm.xlu0 %2136, %v2917_v17  }
 0x2b4   :  { %605 = vperm.xlu2 %2135, %v2920_v14  }
 0x2ba   :  { %623 = vperm.xlu1 %2137, %v2926_v60  }
 0x2bb   :  { %635 = vperm.xlu0 %2136, %v2928_v20  }
 0x2bc   :  { %611 = vperm.xlu2 %2135, %v2931_v16  }
 0x2c2   :  { %632 = vperm.xlu1 %2137, %v2936_v25  }
 0x2c4   :  { %620 = vperm.xlu2 %2135, %v2939_v30  }
 0x2cc   :  { %629 = vperm.xlu2 %2135, %v2943_v21  }
 0x2d4   :  { %638 = vperm.xlu2 %2135, %v2946_v57  }
 0x2fe   :  { %v594_v24 = vpop.permute.xlu2 %593 }
 0x2ff   :  { %v640_v4 = vperm.slane %v594_v24, %v2812_v18 }
 0x306   :  { %v603_v33 = vpop.permute.xlu2 %602 }
 0x307   :  { %v644_v22 = vperm.slane %v603_v33, %v2815_v19 }
 0x30e   :  { %v606_v13 = vpop.permute.xlu2 %605 }
 0x30f   :  { %v646_v28 = vperm.slane %v606_v13, %v2812_v18 }
 0x314   :  { %v600_v54 = vpop.permute.xlu1 %599 }
 0x315   :  { %v597_v48 = vpop.permute.xlu0 %596  ;;  %v643_v10 = vperm.slane %v600_v54, %v2812_v18 }
 0x316   :  { %v612_v26 = vpop.permute.xlu2 %611  ;;  %v641_v7 = vperm.slane %v597_v48, %v2815_v19 }
 0x317   :  { %v645_v11 = vsel %vm469_vm2, %v644_v22, %v643_v10  ;;  %v649_v38 = vperm.slane %v612_v26, %v2812_v18 }
 0x318   :  { %v642_v56 = vsel %vm469_vm2, %v641_v7, %v640_v4 }
 0x319   :  { %v664_v24 = vsel %vm492_vm3, %v645_v11, %v642_v56 }
 0x31c   :  { %v609_v29 = vpop.permute.xlu1 %608 }
 0x31d   :  { %v618_v2 = vpop.permute.xlu0 %617  ;;  %v647_v32 = vperm.slane %v609_v29, %v2815_v19 }
 0x31e   :  { %v621_v45 = vpop.permute.xlu2 %620  ;;  %v652_v33 = vperm.slane %v618_v2, %v2812_v18 }
 0x31f   :  { %v648_v54 = vsel %vm469_vm2, %v647_v32, %v646_v28 }
 0x320   :  { %v665_v10 = vsel %vm494_vm4, %v648_v54, %v664_v24 }
 0x324   :  { %v615_v27 = vpop.permute.xlu1 %614 }
 0x325   :  { %v627_v39 = vpop.permute.xlu0 %626  ;;  %v650_v1 = vperm.slane %v615_v27, %v2815_v19  ;;  %v653_v27 = vperm.slane %v621_v45, %v2815_v19 }
 0x326   :  { %v630_v31 = vpop.permute.xlu2 %629  ;;  %v656_v4 = vperm.slane %v627_v39, %v2815_v19 }
 0x327   :  { %v651_v48 = vsel %vm469_vm2, %v650_v1, %v649_v38  ;;  %v654_v56 = vsel %vm469_vm2, %v653_v27, %v652_v33  ;;  %v658_v2 = vperm.slane %v630_v31, %v2812_v18 }
 0x328   :  { %v666_v7 = vsel %vm496_vm5, %v651_v48, %v665_v10 }
 0x329   :  { %v667_v32 = vsel %vm498_vm6, %v654_v56, %v666_v7 }
 0x32c   :  { %v624_v62 = vpop.permute.xlu1 %623 }
 0x32d   :  { %v655_v29 = vperm.slane %v624_v62, %v2812_v18  ;;  %v636_v59 = vpop.permute.xlu0 %635 }
 0x32e   :  { %v639_v13 = vpop.permute.xlu2 %638  ;;  %v661_v38 = vperm.slane %v636_v59, %v2812_v18  ;;  %v906_v56 = vpop.f32.mrf.mxu2 }
 0x32f   :  { %v657_v26 = vsel %vm469_vm2, %v656_v4, %v655_v29  ;;  %v662_v62 = vperm.slane %v639_v13, %v2815_v19 }
 0x330   :  { %v668_v39 = vsel %vm500_vm7, %v657_v26, %v667_v32  ;;  %v967_v32 = vld [vmem:[#allocation2 + $0x120] sm:$0xff] }
 0x331   :  { %v663_v28 = vsel %vm469_vm2, %v662_v62, %v661_v38 }
 0x334   :  { %v633_v1 = vpop.permute.xlu1 %632 }
 0x335   :  { %v659_v45 = vperm.slane %v633_v1, %v2815_v19 }
 0x337   :  { %v660_v22 = vsel %vm469_vm2, %v659_v45, %v658_v2  ;;  %v976_v2 = vld [vmem:[#allocation2 + $0x168] sm:$0xff]  ;;  %v973_v45 = vld [vmem:[#allocation2 + $0x150] sm:$0xff] }
 0x338   :  { %v669_v11 = vsel %vm502_vm8, %v660_v22, %v668_v39  ;;  %987 = vmatpush.msra.mxu3 %v976_v2  ;;  %v974_v39 = vld [vmem:[#allocation2 + $0x158] sm:$0xff]  ;;  %v972_v2 = vld [vmem:[#allocation2 + $0x148] sm:$0xff] }
 0x339   :  { %v670_v59 = vsel %vm504_vm9, %v663_v28, %v669_v11  ;;  %v964_v28 = vld [vmem:[#allocation2 + $0x108] sm:$0xff]  ;;  %v971_v11 = vld [vmem:[#allocation2 + $0x140] sm:$0xff] }
 0x33a   :  { %v672_v54 = vsel %vm507_vm10, %v670_v59, 0.0  ;;  %988 = vmatpush.msra.mxu3 %v973_v45  ;;  %v961_v59 = vld [vmem:[#allocation2 + $0xf0] sm:$0xff]  ;;  %v3024_v45 = vld [vmem:[#allocation5 + $0x168] sm:$0xff] }
 0x33b   :  { %673 = vadd.xlane.f32.xlu1 %v672_v54  ;;  %v968_v54 = vld [vmem:[#allocation2 + $0x128] sm:$0xff]  ;;  %1328 = vmatpush.msrb.mxu0 %v3024_v45 }
 0x3ae   :  { %v674_v48 = vpop.xlane.xlu1 %673 }
 0x3af   :  { %2206 = vrcp.f32 %v674_v48  ;;  %v958_v48 = vld [vmem:[#allocation2 + $0xd8] sm:$0xff] }
 0x3b5   :  { %v2207_v18 = vpop.eup %2206 }
 0x3b6   :  { %v682_v31 = vperm.slane %v2207_v18, 5  ;;  %v677_v19 = vperm.slane %v2207_v18, 0  ;;  %v678_v27 = vperm.slane %v2207_v18, 1  ;;  %v679_v4 = vperm.slane %v2207_v18, 2 }
 0x3b7   :  { %v681_v38 = vperm.slane %v2207_v18, 4  ;;  %v683_v62 = vperm.slane %v2207_v18, 6  ;;  %v684_v1 = vperm.slane %v2207_v18, 7 }
 0x3b8   :  { %v703_v29 = vmul.f32 %v2926_v60, %v682_v31  ;;  %v694_v24 = vmul.f32 %v2891_v23, %v677_v19  ;;  %v693_v33 = vmul.f32 %v2894_v63, %v677_v19  ;;  %v696_v13 = vmul.f32 %v2907_v5, %v678_v27  ;;  %v955_v19 = vld [vmem:[#allocation2 + $0xc0] sm:$0xff] }
 0x3b9   :  { %v695_v10 = vmul.f32 %v2889_v8, %v678_v27  ;;  %v698_v7 = vmul.f32 %v2902_v42, %v679_v4  ;;  %v697_v26 = vmul.f32 %v2920_v14, %v679_v4  ;;  %v680_v23 = vperm.slane %v2207_v18, 3  ;;  %v949_v27 = vld [vmem:[#allocation2 + $0x90] sm:$0xff]  ;;  %v946_v4 = vld [vmem:[#allocation2 + $0x78] sm:$0xff] }
 0x3ba   :  { %761 = vperm.xlu1 %2137, %v703_v29   ;;  %716 = vperm.xlu2 %2135, %v694_v24   ;;  %v702_v5 = vmul.f32 %v2939_v30, %v681_v38  ;;  %v701_v8 = vmul.f32 %v2904_v36, %v681_v38  ;;  %v705_v42 = vmul.f32 %v2943_v21, %v683_v62  ;;  %v2141_v36 = vld [vmem:[%s3730_s8] ss:$0 sm:$0xff]  ;;  %v962_v29 = vld [vmem:[#allocation2 + $0xf8] sm:$0xff]  ;;  %v952_v24 = vld [vmem:[#allocation2 + $0xa8] sm:$0xff] }
 0x3bb   :  { %711 = vperm.xlu0 %2136, %v693_v33   ;;  %v700_v63 = vmul.f32 %v2915_v51, %v680_v23  ;;  %v699_v60 = vmul.f32 %v2931_v16, %v680_v23  ;;  %v704_v14 = vmul.f32 %v2917_v17, %v682_v31  ;;  %v707_v51 = vmul.f32 %v2928_v20, %v684_v1  ;;  %v970_v20 = vld [vmem:[#allocation2 + $0x138] sm:$0xff]  ;;  %v965_v31 = vld [vmem:[#allocation2 + $0x110] sm:$0xff]  ;;  %v959_v33 = vld [vmem:[#allocation2 + $0xe0] sm:$0xff] }
 0x3bc   :  { %v706_v16 = vmul.f32 %v2936_v25, %v683_v62  ;;  %v708_v30 = vmul.f32 %v2946_v57, %v684_v1  ;;  %v907_v21 = vadd.f32 %v2141_v36, %v906_v56  ;;  %989 = vmatpush.msra.mxu3 %v970_v20  ;;  %v977_v57 = vld [vmem:[#allocation2 + $0x170] sm:$0xff]  ;;  %v943_v23 = vld [vmem:[#allocation2 + $0x60] sm:$0xff]  ;;  %v944_v62 = vld [vmem:[#allocation2 + $0x68] sm:$0xff] }
 0x3bd   :  { %1007 = vmatpush.msrb.mxu2 %v977_v57  ;;  %v947_v38 = vld [vmem:[#allocation2 + $0x80] sm:$0xff]  ;;  %v941_v1 = vld [vmem:[#allocation2 + $0x50] sm:$0xff] }
 0x3be   :  { %990 = vmatpush.msra.mxu3 %v967_v32  ;;  %v935_v36 = vld [vmem:[#allocation2 + $0x20] sm:$0xff]  ;;  %v969_v32 = vld [vmem:[#allocation2 + $0x130] sm:$0xff] }
 0x3bf   :  { %1008 = vmatpush.msrb.mxu2 %v974_v39  ;;  %v975_v56 = vld [vmem:[#allocation2 + $0x160] sm:$0xff]  ;;  %v3027_v39 = vld [vmem:[#allocation5 + $0x150] sm:$0xff] }
 0x3c0   :  { %991 = vmatpush.msra.mxu3 %v964_v28  ;;  %v966_v28 = vld [vmem:[#allocation2 + $0x118] sm:$0xff]  ;;  %1329 = vmatpush.msrb.mxu0 %v3027_v39 }
 0x3c1   :  { %1009 = vmatpush.msrb.mxu2 %v971_v11 }
 0x3c2   :  { %726 = vperm.xlu2 %2135, %v696_v13   ;;  %992 = vmatpush.msra.mxu3 %v961_v59  ;;  %v3032_v59 = vld [vmem:[#allocation5 + $0x138] sm:$0xff] }
 0x3c3   :  { %721 = vperm.xlu0 %2136, %v695_v10   ;;  %1010 = vmatpush.msrb.mxu2 %v968_v54  ;;  %v956_v10 = vld [vmem:[#allocation2 + $0xc8] sm:$0xff] }
 0x3c4   :  { %993 = vmatpush.msra.mxu3 %v958_v48  ;;  %v963_v48 = vld [vmem:[#allocation2 + $0x100] sm:$0xff]  ;;  %1330 = vmatpush.msrb.mxu0 %v3032_v59 }
 0x3c5   :  { %1011 = vmatpush.msrb.mxu2 %v965_v31 }
 0x3c6   :  { %994 = vmatpush.msra.mxu3 %v955_v19  ;;  %v3767_v19 = vmax.f32 %v2677_v58, 0.0 }
 0x3c7   :  { %1012 = vmatpush.msrb.mxu2 %v962_v29  ;;  %v957_v29 = vld [vmem:[#allocation2 + $0xd0] sm:$0xff] }
 0x3c8   :  { %995 = vmatpush.msra.mxu3 %v952_v24 }
 0x3c9   :  { %1013 = vmatpush.msrb.mxu2 %v959_v33  ;;  %v3073_v33 = vld [vmem:[#allocation5 + $0xf0] sm:$0xff] }
 0x3ca   :  { %736 = vperm.xlu2 %2135, %v698_v7   ;;  %996 = vmatpush.msra.mxu3 %v949_v27 }
 0x3cb   :  { %731 = vperm.xlu0 %2136, %v697_v26   ;;  %1014 = vmatpush.msrb.mxu2 %v956_v10  ;;  %v953_v26 = vld [vmem:[#allocation2 + $0xb0] sm:$0xff] }
 0x3cc   :  { %997 = vmatpush.msra.mxu3 %v946_v4 }
 0x3cd   :  { %1015 = vmatpush.msrb.mxu2 %v953_v26 }
 0x3ce   :  { %998 = vmatpush.msra.mxu3 %v943_v23 }
 0x3d2   :  { %746 = vperm.xlu2 %2135, %v700_v63   ;;  %v950_v63 = vld [vmem:[#allocation2 + $0x98] sm:$0xff] }
 0x3d3   :  { %741 = vperm.xlu0 %2136, %v699_v60   ;;  %v940_v60 = vld [vmem:[#allocation2 + $0x48] sm:$0xff]  ;;  %1016 = vmatpush.msrb.mxu2 %v950_v63  ;;  %v3772_v63 = vmax.f32 %v2698_v3, 0.0  ;;  %v3090_v3 = vld [vmem:[#allocation5 + $0xc0] sm:$0xff] }
 0x3d4   :  { %999 = vmatpush.msra.mxu3 %v940_v60 }
 0x3d5   :  { %1017 = vmatpush.msrb.mxu2 %v947_v38  ;;  %v3083_v38 = vld [vmem:[#allocation5 + $0xd8] sm:$0xff] }
 0x3d7   :  { %1018 = vmatpush.msrb.mxu2 %v944_v62 }
 0x3d9   :  { %1019 = vmatpush.msrb.mxu2 %v941_v1 }
 0x3da   :  { %756 = vperm.xlu2 %2135, %v702_v5   ;;  %v937_v5 = vld [vmem:[#allocation2 + $0x30] sm:$0xff] }
 0x3db   :  { %751 = vperm.xlu0 %2136, %v701_v8   ;;  %1000 = vmatpush.msra.mxu3 %v937_v5 }
 0x3e2   :  { %771 = vperm.xlu2 %2135, %v705_v42   ;;  %v934_v42 = vld [vmem:[#allocation2 + $0x18] sm:$0xff] }
 0x3e3   :  { %766 = vperm.xlu0 %2136, %v704_v14   ;;  %1001 = vmatpush.msra.mxu3 %v934_v42 }
 0x3ea   :  { %781 = vperm.xlu2 %2135, %v707_v51   ;;  %v931_v51 = vld [vmem:[#allocation2] sm:$0xff] }
 0x3eb   :  { %776 = vperm.xlu0 %2136, %v706_v16   ;;  %v938_v16 = vld [vmem:[#allocation2 + $0x38] sm:$0xff]  ;;  %1002 = vmatpush.msra.mxu3 %v931_v51 }
 0x3ec   :  { %1020 = vmatpush.msrb.mxu2 %v938_v16 }
 0x3ee   :  { %1021 = vmatpush.msrb.mxu2 %v935_v36 }
 0x3f2   :  { %926 = vrot.lane.b32.xlu2 %v907_v21, %s2420_s10  ;;  %v932_v21 = vld [vmem:[#allocation2 + $0x8] sm:$0xff] }
 0x3f3   :  { %786 = vperm.xlu0 %2136, %v708_v30   ;;  %v978_v30 = vld [vmem:[#allocation2 + $0x178] sm:$0xff]  ;;  %1022 = vmatpush.msrb.mxu2 %v932_v21  ;;  %v3093_v21 = vld [vmem:[#allocation5 + $0x170] sm:$0xff] }
 0x3f4   :  { %1027 = vmatpush.msrb.mxu3 %v978_v30  ;;  %1225 = vmatpush.msrb.mxu1 %v3093_v21 }
 0x3f5   :  { %1097 = vmatpush.msra.mxu2 %v3024_v45 }
 0x3f6   :  { %1028 = vmatpush.msrb.mxu3 %v975_v56  ;;  %v948_v56 = vld [vmem:[#allocation2 + $0x88] sm:$0xff] }
 0x3f7   :  { %1098 = vmatpush.msra.mxu2 %v3027_v39 }
 0x3f8   :  { %1029 = vmatpush.msrb.mxu3 %v972_v2 }
 0x3f9   :  { %1099 = vmatpush.msra.mxu2 %v3032_v59 }
 0x3fa   :  { %1030 = vmatpush.msrb.mxu3 %v969_v32 }
 0x3fc   :  { %1031 = vmatpush.msrb.mxu3 %v966_v28  ;;  %v945_v28 = vld [vmem:[#allocation2 + $0x70] sm:$0xff] }
 0x3fe   :  { %1032 = vmatpush.msrb.mxu3 %v963_v48 }
 0x414   :  { %v3016_v17 = vpop.permute.xlu2 %716 }
 0x41c   :  { %v3020_v22 = vpop.permute.xlu2 %726 }
 0x41d   :  { %v792_v31 = vmul.f32 %v3020_v22, %v229_v44  ;;  %v3769_v44 = vmax.f32 %v2670_v55, 0.0  ;;  %v3065_v22 = vld [vmem:[#allocation5 + $0x108] sm:$0xff]  ;;  %v3771_v55 = vmax.f32 %v2691_v0, 0.0 }
 0x41f   :  { %v815_v37 = vsel %vm250_vm1, %v792_v31, 0.0 }
 0x424   :  { %v3022_v13 = vpop.permute.xlu2 %736 }
 0x425   :  { %v794_v46 = vmul.f32 %v3022_v13, %v231_v50 }
 0x427   :  { %v824_v27 = vsel %vm250_vm1, %v794_v46, 0.0 }
 0x42c   :  { %v747_v8 = vpop.permute.xlu2 %746 }
 0x42d   :  { %v3018_v25 = vpop.permute.xlu0 %711  ;;  %v796_v52 = vmul.f32 %v747_v8, %v3769_v44  ;;  %v3114_v44 = vld [vmem:[#allocation5 + $0x78] sm:$0xff] }
 0x42e   :  { %v789_v40 = vmul.f32 %v3018_v25, %v226_v35  ;;  %v790_v35 = vmul.f32 %v3016_v17, %v3768_v34  ;;  %v960_v25 = vld [vmem:[#allocation2 + $0xe8] sm:$0xff] }
 0x42f   :  { %1033 = vmatpush.msrb.mxu3 %v960_v25  ;;  %v833_v26 = vsel %vm250_vm1, %v796_v52, 0.0 }
 0x430   :  { %v805_v24 = vsel %vm250_vm1, %v789_v40, 0.0  ;;  %v806_v0 = vsel %vm250_vm1, %v790_v35, 0.0  ;;  %v3105_v40 = vld [vmem:[#allocation5 + $0x90] sm:$0xff] }
 0x431   :  { %1034 = vmatpush.msrb.mxu3 %v957_v29  ;;  %v807_v5 = vadd.f32 %v806_v0, %v805_v24  ;;  %v3123_v29 = vld [vmem:[#allocation5 + $0x60] sm:$0xff] }
 0x434   :  { %v757_v20 = vpop.permute.xlu2 %756 }
 0x435   :  { %v722_v18 = vpop.permute.xlu0 %721  ;;  %v798_v50 = vmul.f32 %v757_v20, %v3770_v49  ;;  %v3096_v20 = vld [vmem:[#allocation5 + $0xa8] sm:$0xff]  ;;  %v939_v49 = vld [vmem:[#allocation2 + $0x40] sm:$0xff] }
 0x436   :  { %v791_v11 = vmul.f32 %v722_v18, %v228_v41  ;;  %v3046_v18 = vld [vmem:[#allocation5 + $0x120] sm:$0xff] }
 0x437   :  { %1100 = vmatpush.msra.mxu2 %v3046_v18  ;;  %1331 = vmatpush.msrb.mxu0 %v3046_v18  ;;  %v842_v8 = vsel %vm250_vm1, %v798_v50, 0.0  ;;  %v3118_v50 = vld [vmem:[#allocation5 + $0x128] sm:$0xff] }
 0x439   :  { %1101 = vmatpush.msra.mxu2 %v3065_v22  ;;  %1332 = vmatpush.msrb.mxu0 %v3065_v22 }
 0x43b   :  { %1102 = vmatpush.msra.mxu2 %v3073_v33  ;;  %1333 = vmatpush.msrb.mxu0 %v3073_v33 }
 0x43c   :  { %v772_v62 = vpop.permute.xlu2 %771 }
 0x43d   :  { %v732_v7 = vpop.permute.xlu0 %731  ;;  %1103 = vmatpush.msra.mxu2 %v3083_v38  ;;  %1334 = vmatpush.msrb.mxu0 %v3083_v38 }
 0x43e   :  { %v793_v54 = vmul.f32 %v732_v7, %v230_v47  ;;  %v762_v47 = vpop.permute.xlu1 %761  ;;  %v954_v7 = vld [vmem:[#allocation2 + $0xb8] sm:$0xff] }
 0x43f   :  { %v799_v17 = vmul.f32 %v762_v47, %v3771_v55  ;;  %1035 = vmatpush.msrb.mxu3 %v954_v7  ;;  %1104 = vmatpush.msra.mxu2 %v3090_v3 }
 0x440   :  { %v823_v58 = vsel %vm250_vm1, %v793_v54, 0.0  ;;  %1335 = vmatpush.msrb.mxu0 %v3090_v3  ;;  %v3773_v54 = vmax.f32 %v2705_v6, 0.0  ;;  %v3774_v6 = vmax.f32 %v2712_v9, 0.0 }
 0x441   :  { %v825_v23 = vadd.f32 %v824_v27, %v823_v58  ;;  %v850_v1 = vsel %vm250_vm1, %v799_v17, 0.0  ;;  %1105 = vmatpush.msra.mxu2 %v3096_v20  ;;  %v3127_v27 = vld [vmem:[#allocation5 + $0x110] sm:$0xff] }
 0x442   :  { %v801_v48 = vmul.f32 %v772_v62, %v3773_v54  ;;  %1336 = vmatpush.msrb.mxu0 %v3096_v20 }
 0x443   :  { %v826_v2 = vrot.slane %v825_v23, 4  ;;  %1106 = vmatpush.msra.mxu2 %v3105_v40 }
 0x444   :  { %1337 = vmatpush.msrb.mxu0 %v3105_v40  ;;  %v859_v58 = vsel %vm250_vm1, %v801_v48, 0.0  ;;  %v782_v55 = vpop.permute.xlu2 %781  ;;  %v3157_v48 = vld [vmem:[#allocation5] sm:$0xff] }
 0x445   :  { %v742_v14 = vpop.permute.xlu0 %741  ;;  %v827_v34 = vadd.f32 %v826_v2, %v825_v23  ;;  %1107 = vmatpush.msra.mxu2 %v3114_v44  ;;  %v3134_v23 = vld [vmem:[#allocation5 + $0xf8] sm:$0xff]  ;;  %3779 = vst [vmem:[#allocation13_spill] sm:$0xff] %v3157_v48 }
 0x446   :  { %v795_v41 = vmul.f32 %v742_v14, %v232_v53  ;;  %v814_v53 = vsel %vm250_vm1, %v791_v11, 0.0  ;;  %v951_v14 = vld [vmem:[#allocation2 + $0xa0] sm:$0xff]  ;;  %v3100_v11 = vld [vmem:[#allocation5 + $0x158] sm:$0xff]  ;;  %1338 = vmatpush.msrb.mxu0 %v3114_v44 }
 0x447   :  { %v816_v13 = vadd.f32 %v815_v37, %v814_v53  ;;  %1036 = vmatpush.msrb.mxu3 %v951_v14  ;;  %1226 = vmatpush.msrb.mxu1 %v3100_v11 }
 0x448   :  { %v832_v61 = vsel %vm250_vm1, %v795_v41, 0.0  ;;  %1108 = vmatpush.msra.mxu2 %v3123_v29  ;;  %1339 = vmatpush.msrb.mxu0 %v3123_v29 }
 0x449   :  { %v834_v42 = vadd.f32 %v833_v26, %v832_v61  ;;  %v817_v30 = vrot.slane %v816_v13, 4  ;;  %1037 = vmatpush.msrb.mxu3 %v948_v56  ;;  %v936_v61 = vld [vmem:[#allocation2 + $0x28] sm:$0xff]  ;;  %v933_v26 = vld [vmem:[#allocation2 + $0x10] sm:$0xff] }
 0x44b   :  { %v835_v32 = vrot.slane %v834_v42, 4  ;;  %v818_v41 = vadd.f32 %v817_v30, %v816_v13  ;;  %1038 = vmatpush.msrb.mxu3 %v945_v28  ;;  %v828_v13 = vrot.slane %v827_v34, 2 }
 0x44d   :  { %v752_v57 = vpop.permute.xlu0 %751  ;;  %v836_v53 = vadd.f32 %v835_v32, %v834_v42  ;;  %v819_v37 = vrot.slane %v818_v41, 2  ;;  %v3152_v32 = vld [vmem:[#allocation5 + $0xc8] sm:$0xff] }
 0x44e   :  { %v797_v43 = vmul.f32 %v752_v57, %v3767_v19  ;;  %v808_v57 = vrot.slane %v807_v5, 4  ;;  %v942_v19 = vld [vmem:[#allocation2 + $0x58] sm:$0xff] }
 0x44f   :  { %1039 = vmatpush.msrb.mxu3 %v942_v19  ;;  %v837_v7 = vrot.slane %v836_v53, 2  ;;  %v820_v62 = vadd.f32 %v819_v37, %v818_v41  ;;  %v3171_v37 = vld [vmem:[#allocation5 + $0x80] sm:$0xff] }
 0x450   :  { %v841_v10 = vsel %vm250_vm1, %v797_v43, 0.0  ;;  %v3109_v43 = vld [vmem:[#allocation5 + $0x140] sm:$0xff]  ;;  %v809_v52 = vadd.f32 %v808_v57, %v807_v5 }
 0x451   :  { %v843_v51 = vadd.f32 %v842_v8, %v841_v10  ;;  %1227 = vmatpush.msrb.mxu1 %v3109_v43  ;;  %1040 = vmatpush.msrb.mxu3 %v939_v49  ;;  %v3130_v10 = vld [vmem:[#allocation5 + $0x48] sm:$0xff]  ;;  %v3139_v8 = vld [vmem:[#allocation5 + $0x30] sm:$0xff]  ;;  %v838_v2 = vadd.f32 %v837_v7, %v836_v53  ;;  %v3166_v53 = vld [vmem:[#allocation5 + $0x98] sm:$0xff] }
 0x452   :  { %3776 = vst [vmem:[#allocation11_spill] sm:$0xff] %v3139_v8  ;;  %1109 = vmatpush.msra.mxu2 %v3130_v10  ;;  %1340 = vmatpush.msrb.mxu0 %v3130_v10 }
 0x453   :  { %v844_v31 = vrot.slane %v843_v51, 4  ;;  %1228 = vmatpush.msrb.mxu1 %v3118_v50  ;;  %1041 = vmatpush.msrb.mxu3 %v936_v61 }
 0x454   :  { %1110 = vmatpush.msra.mxu2 %v3139_v8  ;;  %1341 = vmatpush.msrb.mxu0 %v3139_v8 }
 0x455   :  { %v767_v4 = vpop.permute.xlu0 %766  ;;  %v845_v25 = vadd.f32 %v844_v31, %v843_v51  ;;  %1229 = vmatpush.msrb.mxu1 %v3127_v27  ;;  %v3143_v51 = vld [vmem:[#allocation5 + $0xe0] sm:$0xff]  ;;  %1042 = vmatpush.msrb.mxu3 %v933_v26  ;;  %v821_v31 = vrot.slane %v820_v62, 1 }
 0x456   :  { %v800_v60 = vmul.f32 %v767_v4, %v3772_v63  ;;  %v810_v4 = vrot.slane %v809_v52, 2  ;;  %v3775_v63 = vmax.f32 %v2719_v12, 0.0  ;;  %v3777_v12 = vmax.f32 %v2726_v15, 0.0 }
 0x457   :  { %v846_v5 = vrot.slane %v845_v25, 2  ;;  %1230 = vmatpush.msrb.mxu1 %v3134_v23 }
 0x458   :  { %v851_v16 = vsel %vm250_vm1, %v800_v60, 0.0  ;;  %v803_v60 = vmul.f32 %v782_v55, %v3775_v63  ;;  %v811_v56 = vadd.f32 %v810_v4, %v809_v52  ;;  %v3175_v4 = vld [vmem:[#allocation5 + $0x68] sm:$0xff] }
 0x459   :  { %v852_v36 = vadd.f32 %v851_v16, %v850_v1  ;;  %v829_v16 = vadd.f32 %v828_v13, %v827_v34  ;;  %1231 = vmatpush.msrb.mxu1 %v3143_v51  ;;  %v847_v54 = vadd.f32 %v846_v5, %v845_v25 }
 0x45a   :  { %v868_v28 = vsel %vm250_vm1, %v803_v60, 0.0  ;;  %v3180_v60 = vld [vmem:[#allocation5 + $0x50] sm:$0xff] }
 0x45b   :  { %v853_v46 = vrot.slane %v852_v36, 4  ;;  %1232 = vmatpush.msrb.mxu1 %v3152_v32  ;;  %v830_v19 = vrot.slane %v829_v16, 1  ;;  %v848_v49 = vrot.slane %v847_v54, 1 }
 0x45d   :  { %v777_v47 = vpop.permute.xlu0 %776  ;;  %v854_v17 = vadd.f32 %v853_v46, %v852_v36  ;;  %v3148_v36 = vld [vmem:[#allocation5 + $0x18] sm:$0xff]  ;;  %v831_v55 = vadd.f32 %v830_v19, %v829_v16  ;;  %v849_v7 = vadd.f32 %v848_v49, %v847_v54  ;;  %v3217_v19 = vld [vmem:[#allocation5 + $0x130] sm:$0xff] }
 0x45e   :  { %v802_v35 = vmul.f32 %v777_v47, %v3774_v6  ;;  %3778 = vst [vmem:[#allocation12_spill] sm:$0xff] %v3148_v36  ;;  %1111 = vmatpush.msra.mxu2 %v3148_v36  ;;  %v3161_v47 = vld [vmem:[#allocation5 + $0xb0] sm:$0xff]  ;;  %1342 = vmatpush.msrb.mxu0 %v3148_v36  ;;  %v812_v6 = vrot.slane %v811_v56, 1  ;;  %v3198_v54 = vld [vmem:[#allocation5 + $0x178] sm:$0xff] }
 0x45f   :  { %v855_v42 = vrot.slane %v854_v17, 2  ;;  %1233 = vmatpush.msrb.mxu1 %v3161_v47  ;;  %v3246_v49 = vld [vmem:[#allocation5 + $0xd0] sm:$0xff] }
 0x460   :  { %v860_v9 = vsel %vm250_vm1, %v802_v35, 0.0  ;;  %v839_v35 = vrot.slane %v838_v2, 1  ;;  %1112 = vmatpush.msra.mxu2 %v3157_v48  ;;  %1343 = vmatpush.msrb.mxu0 %v3157_v48 }
 0x461   :  { %v861_v24 = vadd.f32 %v860_v9, %v859_v58  ;;  %v856_v41 = vadd.f32 %v855_v42, %v854_v17  ;;  %1234 = vmatpush.msrb.mxu1 %v3166_v53  ;;  %v822_v58 = vadd.f32 %v821_v31, %v820_v62 }
 0x462   :  { %1470 = vmatpush.msra.mxu0 %v3093_v21  ;;  %v840_v61 = vadd.f32 %v839_v35, %v838_v2  ;;  %v3192_v2 = vld [vmem:[#allocation5 + $0x20] sm:$0xff] }
 0x463   :  { %v862_v0 = vrot.slane %v861_v24, 4  ;;  %v857_v25 = vrot.slane %v856_v41, 1  ;;  %1235 = vmatpush.msrb.mxu1 %v3171_v37  ;;  %3781 = vst [vmem:[#allocation15_spill] sm:$0xff] %v3192_v2  ;;  %v3236_v35 = vld [vmem:[#allocation5 + $0x100] sm:$0xff] }
 0x464   :  { %1471 = vmatpush.msra.mxu0 %v3100_v11 }
 0x465   :  { %v863_v14 = vadd.f32 %v862_v0, %v861_v24  ;;  %v787_v1 = vpop.permute.xlu0 %786  ;;  %v813_v24 = vadd.f32 %v812_v6, %v811_v56  ;;  %1236 = vmatpush.msrb.mxu1 %v3175_v4  ;;  %v858_v26 = vadd.f32 %v857_v25, %v856_v41  ;;  %v3207_v41 = vld [vmem:[#allocation5 + $0x160] sm:$0xff]  ;;  %v3228_v6 = vld [vmem:[#allocation5 + $0x118] sm:$0xff] }
 0x466   :  { %v804_v30 = vmul.f32 %v787_v1, %v3777_v12  ;;  %1472 = vmatpush.msra.mxu0 %v3109_v43  ;;  %v3186_v1 = vld [vmem:[#allocation5 + $0x38] sm:$0xff]  ;;  %v927_v12 = vpop.permute.xlu2 %926  ;;  %v3258_v25 = vld [vmem:[#allocation5 + $0xa0] sm:$0xff] }
 0x467   :  { %v864_v57 = vrot.slane %v863_v14, 2  ;;  %v917_v0 = vsel %vm492_vm3, %v822_v58, %v813_v24  ;;  %1237 = vmatpush.msrb.mxu1 %v3180_v60  ;;  %3780 = vst [vmem:[#allocation14_spill] sm:$0xff] %v3186_v1  ;;  %v3252_v58 = vld [vmem:[#allocation5 + $0xb8] sm:$0xff]  ;;  %v3281_v24 = vld [vmem:[#allocation5 + $0x40] sm:$0xff] }
 0x468   :  { %v869_v15 = vsel %vm250_vm1, %v804_v30, 0.0  ;;  %v918_v5 = vsel %vm494_vm4, %v831_v55, %v917_v0  ;;  %1473 = vmatpush.msra.mxu0 %v3118_v50  ;;  %v3270_v55 = vld [vmem:[#allocation5 + $0x70] sm:$0xff] }
 0x469   :  { %v870_v46 = vadd.f32 %v869_v15, %v868_v28  ;;  %v865_v34 = vadd.f32 %v864_v57, %v863_v14  ;;  %v919_v14 = vsel %vm496_vm5, %v840_v61, %v918_v5  ;;  %1238 = vmatpush.msrb.mxu1 %v3186_v1  ;;  %v3200_v15 = vld [vmem:[#allocation5 + $0x8] sm:$0xff] }
 0x46a   :  { %v920_v16 = vsel %vm498_vm6, %v849_v7, %v919_v14  ;;  %1474 = vmatpush.msra.mxu0 %v3127_v27  ;;  %3782 = vst [vmem:[#allocation16_spill] sm:$0xff] %v3200_v15  ;;  %v3286_v61 = vld [vmem:[#allocation5 + $0x28] sm:$0xff]  ;;  %v979_v7 = vld [vmem:[%s3734_s12] sm:$0x7] }
 0x46b   :  { %v871_v52 = vrot.slane %v870_v46, 4  ;;  %v866_v17 = vrot.slane %v865_v34, 1  ;;  %v921_v56 = vsel %vm500_vm7, %v858_v26, %v920_v16  ;;  %1239 = vmatpush.msrb.mxu1 %v3192_v2  ;;  %3783 = vst [vmem:[#allocation17_spill] sm:$0xff] %v3286_v61  ;;  %v981_v26 = vperm.slane %v979_v7, 0 }
 0x46c   :  { %1475 = vmatpush.msra.mxu0 %v3134_v23 }
 0x46d   :  { %v872_v9 = vadd.f32 %v871_v52, %v870_v46  ;;  %v867_v62 = vadd.f32 %v866_v17, %v865_v34  ;;  %1240 = vmatpush.msrb.mxu1 %v3200_v15  ;;  %v3211_v46 = vld [vmem:[#allocation5 + $0x148] sm:$0xff]  ;;  %v3225_v34 = vld [vmem:[%s3731_s9] sm:$0x1]  ;;  %v3276_v17 = vld [vmem:[#allocation5 + $0x58] sm:$0xff] }
 0x46e   :  { %1476 = vmatpush.msra.mxu0 %v3143_v51  ;;  %v3240_v52 = vld [vmem:[#allocation5 + $0xe8] sm:$0xff] }
 0x46f   :  { %v873_v13 = vrot.slane %v872_v9, 2  ;;  %v922_v57 = vsel %vm502_vm8, %v867_v62, %v921_v56  ;;  %1368 = vmatpush.msra.mxu1 %v3198_v54  ;;  %v982_v56 = vperm.slane %v979_v7, 1 }
 0x470   :  { %1477 = vmatpush.msra.mxu0 %v3152_v32 }
 0x471   :  { %v874_v63 = vadd.f32 %v873_v13, %v872_v9  ;;  %1369 = vmatpush.msra.mxu1 %v3207_v41  ;;  %v3264_v9 = vld [vmem:[#allocation5 + $0x88] sm:$0xff]  ;;  %v3291_v13 = vld [vmem:[#allocation5 + $0x10] sm:$0xff] }
 0x472   :  { %1478 = vmatpush.msra.mxu0 %v3161_v47  ;;  %3784 = vst [vmem:[#allocation18_spill] sm:$0xff] %v3291_v13 }
 0x473   :  { %v875_v42 = vrot.slane %v874_v63, 1  ;;  %1370 = vmatpush.msra.mxu1 %v3211_v46 }
 0x474   :  { %1479 = vmatpush.msra.mxu0 %v3166_v53 }
 0x475   :  { %v876_v30 = vadd.f32 %v875_v42, %v874_v63  ;;  %1371 = vmatpush.msra.mxu1 %v3217_v19 }
 0x476   :  { %1480 = vmatpush.msra.mxu0 %v3171_v37 }
 0x477   :  { %v923_v28 = vsel %vm504_vm9, %v876_v30, %v922_v57  ;;  %1372 = vmatpush.msra.mxu1 %v3228_v6 }
 0x478   :  { %v929_v31 = vsel %vm250_vm1, %v923_v28, %v927_v12  ;;  %1481 = vmatpush.msra.mxu0 %v3175_v4 }
 0x479   :  { %2109 = vmatmul.msk.f32.vlgmr.msra.gmra.mxu3 %vm112_vm0, %v929_v31  ;;  %2110 = vmatmul.msk.f32.vlgmr.msrb.gmra.mxu2 %vm112_vm0, %v929_v31 }
 0x47a   :  { %1117 = vmatpush.msra.mxu3 %v3093_v21  ;;  %1137 = vmatpush.msrb.mxu2 %v3198_v54 }
 0x47b   :  { %1373 = vmatpush.msra.mxu1 %v3236_v35  ;;  %1482 = vmatpush.msra.mxu0 %v3180_v60 }
 0x47c   :  { %1118 = vmatpush.msra.mxu3 %v3100_v11  ;;  %1138 = vmatpush.msrb.mxu2 %v3207_v41 }
 0x47d   :  { %1374 = vmatpush.msra.mxu1 %v3240_v52  ;;  %1483 = vmatpush.msra.mxu0 %v3186_v1 }
 0x47e   :  { %1119 = vmatpush.msra.mxu3 %v3109_v43  ;;  %1139 = vmatpush.msrb.mxu2 %v3211_v46 }
 0x47f   :  { %1375 = vmatpush.msra.mxu1 %v3246_v49  ;;  %1484 = vmatpush.msra.mxu0 %v3192_v2 }
 0x480   :  { %1120 = vmatpush.msra.mxu3 %v3118_v50  ;;  %1140 = vmatpush.msrb.mxu2 %v3217_v19 }
 0x481   :  { %2111 = vmatmul.msk.f32.vlgmr.msrb.gmra.mxu3 %vm112_vm0, %v929_v31  ;;  %1113 = vmatmul.f32.vlgmr.msra.gmra.mxu2 %v3225_v34 }
 0x482   :  { %1121 = vmatpush.msra.mxu3 %v3127_v27  ;;  %1141 = vmatpush.msrb.mxu2 %v3228_v6 }
 0x483   :  { %1376 = vmatpush.msra.mxu1 %v3252_v58  ;;  %1485 = vmatpush.msra.mxu0 %v3200_v15 }
 0x484   :  { %1122 = vmatpush.msra.mxu3 %v3134_v23  ;;  %1142 = vmatpush.msrb.mxu2 %v3236_v35 }
 0x485   :  { %1377 = vmatpush.msra.mxu1 %v3258_v25 }
 0x486   :  { %1123 = vmatpush.msra.mxu3 %v3143_v51  ;;  %1143 = vmatpush.msrb.mxu2 %v3240_v52 }
 0x487   :  { %1378 = vmatpush.msra.mxu1 %v3264_v9 }
 0x488   :  { %1124 = vmatpush.msra.mxu3 %v3152_v32  ;;  %1144 = vmatpush.msrb.mxu2 %v3246_v49 }
 0x489   :  { %1379 = vmatpush.msra.mxu1 %v3270_v55 }
 0x48a   :  { %1125 = vmatpush.msra.mxu3 %v3161_v47  ;;  %1145 = vmatpush.msrb.mxu2 %v3252_v58 }
 0x48b   :  { %1380 = vmatpush.msra.mxu1 %v3276_v17 }
 0x48c   :  { %1126 = vmatpush.msra.mxu3 %v3166_v53  ;;  %1146 = vmatpush.msrb.mxu2 %v3258_v25 }
 0x48d   :  { %1381 = vmatpush.msra.mxu1 %v3281_v24 }
 0x48e   :  { %1127 = vmatpush.msra.mxu3 %v3171_v37  ;;  %1147 = vmatpush.msrb.mxu2 %v3264_v9 }
 0x48f   :  { %1382 = vmatpush.msra.mxu1 %v3286_v61 }
 0x490   :  { %1128 = vmatpush.msra.mxu3 %v3175_v4  ;;  %1148 = vmatpush.msrb.mxu2 %v3270_v55 }
 0x491   :  { %1383 = vmatpush.msra.mxu1 %v3291_v13 }
 0x492   :  { %1129 = vmatpush.msra.mxu3 %v3180_v60  ;;  %1149 = vmatpush.msrb.mxu2 %v3276_v17 }
 0x494   :  { %1130 = vmatpush.msra.mxu3 %v3186_v1  ;;  %1150 = vmatpush.msrb.mxu2 %v3281_v24 }
 0x496   :  { %1131 = vmatpush.msra.mxu3 %v3192_v2  ;;  %1151 = vmatpush.msrb.mxu2 %v3286_v61 }
 0x498   :  { %1132 = vmatpush.msra.mxu3 %v3200_v15  ;;  %1152 = vmatpush.msrb.mxu2 %v3291_v13 }
 0x499   :  { %1133 = vmatmul.f32.vlgmr.msra.gmra.mxu3 %v3225_v34  ;;  %1153 = vmatmul.f32.vlgmr.msrb.gmra.mxu2 %v3225_v34 }
 0x49a   :  { %1205 = vmatpush.msrb.mxu3 %v3024_v45  ;;  %1245 = vmatpush.msra.mxu2 %v3198_v54 }
 0x49c   :  { %1206 = vmatpush.msrb.mxu3 %v3027_v39  ;;  %1246 = vmatpush.msra.mxu2 %v3207_v41 }
 0x49e   :  { %1207 = vmatpush.msrb.mxu3 %v3032_v59  ;;  %1247 = vmatpush.msra.mxu2 %v3211_v46 }
 0x4a0   :  { %1208 = vmatpush.msrb.mxu3 %v3046_v18  ;;  %1248 = vmatpush.msra.mxu2 %v3217_v19 }
 0x4a2   :  { %1209 = vmatpush.msrb.mxu3 %v3065_v22  ;;  %1249 = vmatpush.msra.mxu2 %v3228_v6 }
 0x4a4   :  { %1210 = vmatpush.msrb.mxu3 %v3073_v33  ;;  %1250 = vmatpush.msra.mxu2 %v3236_v35 }
 0x4a6   :  { %1211 = vmatpush.msrb.mxu3 %v3083_v38  ;;  %1251 = vmatpush.msra.mxu2 %v3240_v52 }
 0x4a8   :  { %1212 = vmatpush.msrb.mxu3 %v3090_v3  ;;  %1252 = vmatpush.msra.mxu2 %v3246_v49 }
 0x4aa   :  { %1213 = vmatpush.msrb.mxu3 %v3096_v20  ;;  %1253 = vmatpush.msra.mxu2 %v3252_v58 }
 0x4ac   :  { %1214 = vmatpush.msrb.mxu3 %v3105_v40  ;;  %1254 = vmatpush.msra.mxu2 %v3258_v25 }
 0x4ae   :  { %1215 = vmatpush.msrb.mxu3 %v3114_v44  ;;  %1255 = vmatpush.msra.mxu2 %v3264_v9 }
 0x4b0   :  { %1216 = vmatpush.msrb.mxu3 %v3123_v29  ;;  %1256 = vmatpush.msra.mxu2 %v3270_v55 }
 0x4b2   :  { %1217 = vmatpush.msrb.mxu3 %v3130_v10  ;;  %1257 = vmatpush.msra.mxu2 %v3276_v17 }
 0x4b4   :  { %1218 = vmatpush.msrb.mxu3 %v3139_v8  ;;  %1258 = vmatpush.msra.mxu2 %v3281_v24 }
 0x4b6   :  { %1219 = vmatpush.msrb.mxu3 %v3148_v36  ;;  %1259 = vmatpush.msra.mxu2 %v3286_v61 }
 0x4b8   :  { %1220 = vmatpush.msrb.mxu3 %v3157_v48  ;;  %1260 = vmatpush.msra.mxu2 %v3291_v13 }
 0x4ba   :  { %1348 = vmatpush.msra.mxu3 %v3093_v21  ;;  %1450 = vmatpush.msrb.mxu2 %v3024_v45 }
 0x4bc   :  { %1349 = vmatpush.msra.mxu3 %v3100_v11  ;;  %1451 = vmatpush.msrb.mxu2 %v3027_v39 }
 0x4be   :  { %1350 = vmatpush.msra.mxu3 %v3109_v43  ;;  %1452 = vmatpush.msrb.mxu2 %v3032_v59 }
 0x4c0   :  { %1351 = vmatpush.msra.mxu3 %v3118_v50  ;;  %1453 = vmatpush.msrb.mxu2 %v3046_v18 }
 0x4c2   :  { %1352 = vmatpush.msra.mxu3 %v3127_v27  ;;  %1454 = vmatpush.msrb.mxu2 %v3065_v22 }
 0x4c4   :  { %1353 = vmatpush.msra.mxu3 %v3134_v23  ;;  %1455 = vmatpush.msrb.mxu2 %v3073_v33 }
 0x4c6   :  { %1354 = vmatpush.msra.mxu3 %v3143_v51  ;;  %1456 = vmatpush.msrb.mxu2 %v3083_v38 }
 0x4c8   :  { %1355 = vmatpush.msra.mxu3 %v3152_v32  ;;  %1457 = vmatpush.msrb.mxu2 %v3090_v3 }
 0x4ca   :  { %1356 = vmatpush.msra.mxu3 %v3161_v47  ;;  %1458 = vmatpush.msrb.mxu2 %v3096_v20 }
 0x4cc   :  { %1357 = vmatpush.msra.mxu3 %v3166_v53  ;;  %1459 = vmatpush.msrb.mxu2 %v3105_v40 }
 0x4ce   :  { %1358 = vmatpush.msra.mxu3 %v3171_v37  ;;  %1460 = vmatpush.msrb.mxu2 %v3114_v44 }
 0x4d0   :  { %1359 = vmatpush.msra.mxu3 %v3175_v4  ;;  %1461 = vmatpush.msrb.mxu2 %v3123_v29 }
 0x4d2   :  { %1360 = vmatpush.msra.mxu3 %v3180_v60  ;;  %1462 = vmatpush.msrb.mxu2 %v3130_v10 }
 0x4d4   :  { %1361 = vmatpush.msra.mxu3 %v3186_v1  ;;  %1463 = vmatpush.msrb.mxu2 %v3139_v8 }
 0x4d6   :  { %1362 = vmatpush.msra.mxu3 %v3192_v2  ;;  %1464 = vmatpush.msrb.mxu2 %v3148_v36 }
 0x4d8   :  { %1363 = vmatpush.msra.mxu3 %v3200_v15  ;;  %1465 = vmatpush.msrb.mxu2 %v3157_v48 }
 0x4fc   :  { %v1024_v0 = vpop.f32.mrf.mxu2  ;;  %v1004_v63 = vpop.f32.mrf.mxu3 }
 0x4fd   :  { %v3370_v5 = vadd.f32 %v1004_v63, %v981_v26  ;;  %v3373_v31 = vadd.f32 %v1024_v0, %v982_v56 }
 0x4ff   :  { %3785 = vst [vmem:[#allocation19_spill] sm:$0xff] %v3370_v5 }
 0x500   :  { %3786 = vst [vmem:[#allocation20_spill] sm:$0xff] %v3373_v31 }
 0x504   :  { %v1114_v62 = vpop.f32.mrf.mxu2  ;;  %v1044_v30 = vpop.f32.mrf.mxu3 }
 0x505   :  { %v1157_v42 = vadd.f32 %v1114_v62, %v3370_v5 }
 0x507   :  { %v2112_v14 = vmul.f32 -1.442695, %v1157_v42 }
 0x509   :  { %2208 = vpow2.f32 %v2112_v14 }
 0x50f   :  { %v2209_v16 = vpop.eup %2208 }
 0x510   :  { %v1161_v12 = vadd.f32 1.0, %v2209_v16  ;;  %v3379_v16 = vld [vmem:[%s3735_s13] sm:$0x1] }
 0x512   :  { %2210 = vrcp.f32 %v1161_v12  ;;  %v1173_v62 = vand.u32 2147483648, %v1161_v12  ;;  %vm1167_vm12 = vweird.f32 %v1161_v12  ;;  %v1171_v42 = vand.u32 2147483647, %v1161_v12 }
 0x514   :  { %v1174_v5 = vor.u32 1.1754944e-38, %v1173_v62  ;;  %vm1172_vm14 = vcmp.eq.f32.partialorder %v1171_v42, 8.507059e+37 }
 0x518   :  { %v2211_v57 = vpop.eup %2210 }
 0x519   :  { %v1163_v28 = vmul.f32 %v2211_v57, %v1161_v12  ;;  %vm1168_vm11 = vweird.f32 %v2211_v57 }
 0x51a   :  { %vm1169_vm13 = vmor %vm1167_vm12, %vm1168_vm11 }
 0x51b   :  { %v1164_v48 = vsub.f32 1.0, %v1163_v28 }
 0x51c   :  { %v1134_v15 = vpop.f32.mrf.mxu3  ;;  %v1154_v0 = vpop.f32.mrf.mxu2 }
 0x51d   :  { %v1177_v13 = vadd.f32 %v1134_v15, %v3373_v31  ;;  %v1165_v63 = vmul.f32 %v2211_v57, %v1164_v48  ;;  %v1197_v48 = vadd.f32 %v1154_v0, %v3379_v16 }
 0x51f   :  { %v2113_v26 = vmul.f32 -1.442695, %v1177_v13  ;;  %v1166_v2 = vadd.f32 %v2211_v57, %v1165_v63  ;;  %v983_v13 = vperm.slane %v979_v7, 2 }
 0x521   :  { %2212 = vpow2.f32 %v2113_v26  ;;  %v1170_v28 = vsel %vm1169_vm13, %v2211_v57, %v1166_v2  ;;  %v3382_v12 = vadd.f32 %v1044_v30, %v983_v13 }
 0x522   :  { %v1175_v15 = vsel %vm1172_vm14, %v1174_v5, %v1170_v28 }
 0x523   :  { %v1198_v26 = vmul.f32 %v1197_v48, %v1175_v15 }
 0x525   :  { %v1199_v36 = vadd.f32 %v1198_v26, %v3382_v12  ;;  %v3796_v26 = vld [vmem:[#allocation19_spill] sm:$0xff] }
 0x527   :  { %v2213_v14 = vpop.eup %2212 }
 0x528   :  { %v1181_v56 = vadd.f32 1.0, %v2213_v14 }
 0x52a   :  { %2214 = vrcp.f32 %v1181_v56  ;;  %v1193_v1 = vand.u32 2147483648, %v1181_v56  ;;  %v1191_v14 = vand.u32 2147483647, %v1181_v56  ;;  %vm1187_vm0 = vweird.f32 %v1181_v56 }
 0x52b   :  { %2216 = vtanh.f32 %v1199_v36  ;;  %v3793_v36 = vld [vmem:[#allocation13_spill] sm:$0xff] }
 0x52c   :  { %v1194_v57 = vor.u32 1.1754944e-38, %v1193_v1  ;;  %vm1192_vm2 = vcmp.eq.f32.partialorder %v1191_v14, 8.507059e+37  ;;  %v3794_v1 = vld [vmem:[#allocation16_spill] sm:$0xff] }
 0x530   :  { %v2215_v63 = vpop.eup %2214 }
 0x531   :  { %v1183_v31 = vmul.f32 %v2215_v63, %v1181_v56  ;;  %vm1188_vm15 = vweird.f32 %v2215_v63  ;;  %v2217_v42 = vpop.eup %2216 }
 0x532   :  { %vm1189_vm1 = vmor %vm1187_vm0, %vm1188_vm15 }
 0x533   :  { %v1184_v61 = vsub.f32 1.0, %v1183_v31  ;;  %v3795_v31 = vld [vmem:[#allocation20_spill] sm:$0xff] }
 0x535   :  { %v1185_v8 = vmul.f32 %v2215_v63, %v1184_v61 }
 0x537   :  { %v1186_v2 = vadd.f32 %v2215_v63, %v1185_v8  ;;  %v3792_v8 = vld [vmem:[#allocation18_spill] sm:$0xff] }
 0x539   :  { %v1190_v62 = vsel %vm1189_vm1, %v2215_v63, %v1186_v2 }
 0x53a   :  { %v1195_v7 = vsel %vm1192_vm2, %v1194_v57, %v1190_v62 }
 0x53b   :  { %v1201_v5 = vsub.f32 1.0, %v1195_v7  ;;  %v1203_v0 = vmul.f32 %v1195_v7, %v3225_v34 }
 0x53d   :  { %v1202_v30 = vmul.f32 %v2217_v42, %v1201_v5 }
 0x53f   :  { %v3386_v28 = vadd.f32 %v1203_v0, %v1202_v30 }
 0x541   :  { %1221 = vmatmul.f32.vlgmr.msrb.gmra.mxu3 %v3386_v28  ;;  %1241 = vmatmul.f32.vlgmr.msrb.gmra.mxu1 %v3386_v28 }
 0x542   :  { %1261 = vmatmul.f32.vlgmr.msra.gmra.mxu2 %v3386_v28  ;;  %1490 = vmatpush.msrb.mxu3 %v3198_v54 }
 0x543   :  { %1572 = vmatpush.msrb.mxu1 %v3024_v45  ;;  %1592 = vmatpush.msra.mxu2 %v3093_v21  ;;  %v3787_v45 = vld [vmem:[#allocation11_spill] sm:$0xff] }
 0x544   :  { %1491 = vmatpush.msrb.mxu3 %v3207_v41 }
 0x545   :  { %1573 = vmatpush.msrb.mxu1 %v3027_v39  ;;  %1593 = vmatpush.msra.mxu2 %v3100_v11  ;;  %v3788_v39 = vld [vmem:[#allocation14_spill] sm:$0xff] }
 0x546   :  { %1492 = vmatpush.msrb.mxu3 %v3211_v46 }
 0x547   :  { %1574 = vmatpush.msrb.mxu1 %v3032_v59  ;;  %1594 = vmatpush.msra.mxu2 %v3109_v43  ;;  %v3789_v59 = vld [vmem:[#allocation17_spill] sm:$0xff] }
 0x548   :  { %1493 = vmatpush.msrb.mxu3 %v3217_v19 }
 0x549   :  { %1575 = vmatpush.msrb.mxu1 %v3046_v18  ;;  %1595 = vmatpush.msra.mxu2 %v3118_v50  ;;  %v3790_v18 = vld [vmem:[#allocation12_spill] sm:$0xff] }
 0x54a   :  { %1494 = vmatpush.msrb.mxu3 %v3228_v6 }
 0x54b   :  { %1576 = vmatpush.msrb.mxu1 %v3065_v22  ;;  %1596 = vmatpush.msra.mxu2 %v3127_v27  ;;  %v3791_v22 = vld [vmem:[#allocation15_spill] sm:$0xff] }
 0x54c   :  { %1495 = vmatpush.msrb.mxu3 %v3236_v35 }
 0x54d   :  { %1577 = vmatpush.msrb.mxu1 %v3073_v33  ;;  %1597 = vmatpush.msra.mxu2 %v3134_v23 }
 0x54e   :  { %1496 = vmatpush.msrb.mxu3 %v3240_v52 }
 0x54f   :  { %1578 = vmatpush.msrb.mxu1 %v3083_v38  ;;  %1598 = vmatpush.msra.mxu2 %v3143_v51 }
 0x550   :  { %1497 = vmatpush.msrb.mxu3 %v3246_v49 }
 0x551   :  { %1579 = vmatpush.msrb.mxu1 %v3090_v3  ;;  %1599 = vmatpush.msra.mxu2 %v3152_v32 }
 0x552   :  { %1498 = vmatpush.msrb.mxu3 %v3252_v58 }
 0x553   :  { %1580 = vmatpush.msrb.mxu1 %v3096_v20  ;;  %1600 = vmatpush.msra.mxu2 %v3161_v47 }
 0x554   :  { %1499 = vmatpush.msrb.mxu3 %v3258_v25 }
 0x555   :  { %1581 = vmatpush.msrb.mxu1 %v3105_v40  ;;  %1601 = vmatpush.msra.mxu2 %v3166_v53 }
 0x556   :  { %1500 = vmatpush.msrb.mxu3 %v3264_v9 }
 0x557   :  { %1582 = vmatpush.msrb.mxu1 %v3114_v44  ;;  %1602 = vmatpush.msra.mxu2 %v3171_v37 }
 0x558   :  { %1501 = vmatpush.msrb.mxu3 %v3270_v55 }
 0x559   :  { %1583 = vmatpush.msrb.mxu1 %v3123_v29  ;;  %1603 = vmatpush.msra.mxu2 %v3175_v4 }
 0x55a   :  { %1502 = vmatpush.msrb.mxu3 %v3276_v17 }
 0x55b   :  { %1584 = vmatpush.msrb.mxu1 %v3130_v10  ;;  %1604 = vmatpush.msra.mxu2 %v3180_v60 }
 0x55c   :  { %1503 = vmatpush.msrb.mxu3 %v3281_v24 }
 0x55d   :  { %1585 = vmatpush.msrb.mxu1 %v3787_v45  ;;  %1605 = vmatpush.msra.mxu2 %v3788_v39 }
 0x55e   :  { %1504 = vmatpush.msrb.mxu3 %v3789_v59 }
 0x55f   :  { %1586 = vmatpush.msrb.mxu1 %v3790_v18  ;;  %1606 = vmatpush.msra.mxu2 %v3791_v22 }
 0x560   :  { %1505 = vmatpush.msrb.mxu3 %v3792_v8 }
 0x561   :  { %1587 = vmatpush.msrb.mxu1 %v3793_v36  ;;  %1607 = vmatpush.msra.mxu2 %v3794_v1 }
 0x5be   :  { %v1242_v34 = vpop.f32.mrf.mxu1 }
 0x5bf   :  { %v1289_v61 = vrot.slane %v1242_v34, 7 }
 0x5c1   :  { %v1291_v56 = vadd.f32 %v1289_v61, %v3795_v31 }
 0x5c3   :  { %v2115_v48 = vmul.f32 -1.442695, %v1291_v56 }
 0x5c4   :  { %v1222_v15 = vpop.f32.mrf.mxu3 }
 0x5c5   :  { %2218 = vpow2.f32 %v2115_v48  ;;  %v1266_v13 = vrot.slane %v1222_v15, 7  ;;  %v1262_v61 = vpop.f32.mrf.mxu2 }
 0x5c7   :  { %v1268_v63 = vadd.f32 %v1266_v13, %v3796_v26  ;;  %v1311_v13 = vadd.f32 %v1262_v61, %v3379_v16 }
 0x5c9   :  { %v2114_v14 = vmul.f32 -1.442695, %v1268_v63  ;;  %v1313_v26 = vrot.slane %v1311_v13, 7 }
 0x5cb   :  { %v2219_v2 = vpop.eup %2218  ;;  %2220 = vpow2.f32 %v2114_v14 }
 0x5cc   :  { %v1295_v57 = vadd.f32 1.0, %v2219_v2 }
 0x5ce   :  { %2222 = vrcp.f32 %v1295_v57  ;;  %v1307_v8 = vand.u32 2147483648, %v1295_v57  ;;  %vm1301_vm8 = vweird.f32 %v1295_v57 }
 0x5d1   :  { %v2221_v62 = vpop.eup %2220 }
 0x5d2   :  { %v1272_v7 = vadd.f32 1.0, %v2221_v62 }
 0x5d4   :  { %2224 = vrcp.f32 %v1272_v7  ;;  %v2223_v5 = vpop.eup %2222  ;;  %v1284_v31 = vand.u32 2147483648, %v1272_v7  ;;  %v1282_v15 = vand.u32 2147483647, %v1272_v7  ;;  %vm1278_vm4 = vweird.f32 %v1272_v7 }
 0x5d5   :  { %v1297_v42 = vmul.f32 %v2223_v5, %v1295_v57  ;;  %vm1302_vm7 = vweird.f32 %v2223_v5 }
 0x5d6   :  { %v1285_v2 = vor.u32 1.1754944e-38, %v1284_v31  ;;  %vm1283_vm6 = vcmp.eq.f32.partialorder %v1282_v15, 8.507059e+37  ;;  %vm1303_vm9 = vmor %vm1301_vm8, %vm1302_vm7  ;;  %v1321_v31 = vrot.slane %v3386_v28, 7  ;;  %v3453_v28 = vld [vmem:[#allocation5 + $0x150] sm:$0xff] }
 0x5d7   :  { %v1298_v34 = vsub.f32 1.0, %v1297_v42 }
 0x5d9   :  { %v1299_v63 = vmul.f32 %v2223_v5, %v1298_v34  ;;  %v1308_v34 = vor.u32 1.1754944e-38, %v1307_v8  ;;  %v3463_v8 = vld [vmem:[#allocation5 + $0x120] sm:$0xff] }
 0x5da   :  { %v2225_v30 = vpop.eup %2224 }
 0x5db   :  { %v1274_v0 = vmul.f32 %v2225_v30, %v1272_v7  ;;  %vm1279_vm3 = vweird.f32 %v2225_v30  ;;  %v1300_v36 = vadd.f32 %v2223_v5, %v1299_v63 }
 0x5dc   :  { %vm1280_vm5 = vmor %vm1278_vm4, %vm1279_vm3 }
 0x5dd   :  { %v1275_v56 = vsub.f32 1.0, %v1274_v0  ;;  %v1305_v0 = vand.u32 2147483647, %v1295_v57  ;;  %v1304_v22 = vsel %vm1303_vm9, %v2223_v5, %v1300_v36  ;;  %v3448_v36 = vld [vmem:[#allocation5 + $0x168] sm:$0xff] }
 0x5df   :  { %v1276_v48 = vmul.f32 %v2225_v30, %v1275_v56  ;;  %vm1306_vm10 = vcmp.eq.f32.partialorder %v1305_v0, 8.507059e+37 }
 0x5e0   :  { %v1309_v7 = vsel %vm1306_vm10, %v1308_v34, %v1304_v22  ;;  %v3458_v22 = vld [vmem:[#allocation5 + $0x138] sm:$0xff] }
 0x5e1   :  { %v1277_v14 = vadd.f32 %v2225_v30, %v1276_v48  ;;  %v1318_v61 = vsub.f32 1.0, %v1309_v7  ;;  %v1323_v15 = vmul.f32 %v1321_v31, %v1309_v7 }
 0x5e3   :  { %v1281_v62 = vsel %vm1280_vm5, %v2225_v30, %v1277_v14 }
 0x5e4   :  { %v1286_v1 = vsel %vm1283_vm6, %v1285_v2, %v1281_v62 }
 0x5e5   :  { %v1315_v42 = vmul.f32 %v1313_v26, %v1286_v1 }
 0x5e7   :  { %v1316_v56 = vadd.f32 %v1315_v42, %v3382_v12 }
 0x5e9   :  { %2226 = vtanh.f32 %v1316_v56 }
 0x5ef   :  { %v2227_v30 = vpop.eup %2226 }
 0x5f0   :  { %v1319_v48 = vmul.f32 %v2227_v30, %v1318_v61 }
 0x5f2   :  { %v3444_v13 = vadd.f32 %v1323_v15, %v1319_v48 }
 0x5f4   :  { %v1326_v1 = vrot.slane %v3444_v13, 1 }
 0x5f6   :  { %1344 = vmatmul.f32.vlgmr.msrb.gmra.mxu0 %v1326_v1  ;;  %1364 = vmatmul.f32.vlgmr.msra.gmra.mxu3 %v1326_v1 }
 0x5f7   :  { %1384 = vmatmul.f32.vlgmr.msra.gmra.mxu1 %v1326_v1  ;;  %1612 = vmatpush.msrb.mxu0 %v3198_v54 }
 0x5f8   :  { %1694 = vmatpush.msra.mxu3 %v3448_v36  ;;  %1714 = vmatpush.msra.mxu1 %v3093_v21  ;;  %v3468_v21 = vld [vmem:[#allocation5 + $0x108] sm:$0xff] }
 0x5f9   :  { %1613 = vmatpush.msrb.mxu0 %v3207_v41 }
 0x5fa   :  { %1695 = vmatpush.msra.mxu3 %v3453_v28  ;;  %1715 = vmatpush.msra.mxu1 %v3100_v11 }
 0x5fb   :  { %1614 = vmatpush.msrb.mxu0 %v3211_v46 }
 0x5fc   :  { %1696 = vmatpush.msra.mxu3 %v3458_v22  ;;  %1716 = vmatpush.msra.mxu1 %v3109_v43  ;;  %v3801_v43 = vld [vmem:[#allocation19_spill] sm:$0xff] }
 0x5fd   :  { %1615 = vmatpush.msrb.mxu0 %v3217_v19 }
 0x5fe   :  { %1697 = vmatpush.msra.mxu3 %v3463_v8  ;;  %1717 = vmatpush.msra.mxu1 %v3118_v50 }
 0x5ff   :  { %1616 = vmatpush.msrb.mxu0 %v3228_v6 }
 0x600   :  { %1698 = vmatpush.msra.mxu3 %v3468_v21  ;;  %1718 = vmatpush.msra.mxu1 %v3127_v27 }
 0x601   :  { %1617 = vmatpush.msrb.mxu0 %v3236_v35 }
 0x602   :  { %1699 = vmatpush.msra.mxu3 %v3073_v33  ;;  %1719 = vmatpush.msra.mxu1 %v3134_v23  ;;  %v3797_v33 = vld [vmem:[#allocation15_spill] sm:$0xff] }
 0x603   :  { %1618 = vmatpush.msrb.mxu0 %v3240_v52 }
 0x604   :  { %1700 = vmatpush.msra.mxu3 %v3083_v38  ;;  %1720 = vmatpush.msra.mxu1 %v3143_v51  ;;  %v3798_v38 = vld [vmem:[#allocation18_spill] sm:$0xff] }
 0x605   :  { %1619 = vmatpush.msrb.mxu0 %v3246_v49 }
 0x606   :  { %1701 = vmatpush.msra.mxu3 %v3090_v3  ;;  %1721 = vmatpush.msra.mxu1 %v3152_v32  ;;  %v3799_v3 = vld [vmem:[#allocation13_spill] sm:$0xff] }
 0x607   :  { %1620 = vmatpush.msrb.mxu0 %v3252_v58 }
 0x608   :  { %1702 = vmatpush.msra.mxu3 %v3096_v20  ;;  %1722 = vmatpush.msra.mxu1 %v3161_v47  ;;  %v3800_v20 = vld [vmem:[#allocation16_spill] sm:$0xff] }
 0x609   :  { %1621 = vmatpush.msrb.mxu0 %v3258_v25 }
 0x60a   :  { %1703 = vmatpush.msra.mxu3 %v3105_v40  ;;  %1723 = vmatpush.msra.mxu1 %v3166_v53 }
 0x60b   :  { %1622 = vmatpush.msrb.mxu0 %v3264_v9 }
 0x60c   :  { %1704 = vmatpush.msra.mxu3 %v3114_v44  ;;  %1724 = vmatpush.msra.mxu1 %v3171_v37 }
 0x60d   :  { %1623 = vmatpush.msrb.mxu0 %v3270_v55 }
 0x60e   :  { %1705 = vmatpush.msra.mxu3 %v3123_v29  ;;  %1725 = vmatpush.msra.mxu1 %v3175_v4 }
 0x60f   :  { %1624 = vmatpush.msrb.mxu0 %v3276_v17 }
 0x610   :  { %1706 = vmatpush.msra.mxu3 %v3130_v10  ;;  %1726 = vmatpush.msra.mxu1 %v3180_v60  ;;  %v3802_v10 = vld [vmem:[#allocation20_spill] sm:$0xff] }
 0x611   :  { %1625 = vmatpush.msrb.mxu0 %v3281_v24 }
 0x612   :  { %1707 = vmatpush.msra.mxu3 %v3787_v45  ;;  %1727 = vmatpush.msra.mxu1 %v3788_v39 }
 0x613   :  { %1626 = vmatpush.msrb.mxu0 %v3789_v59 }
 0x614   :  { %1708 = vmatpush.msra.mxu3 %v3790_v18  ;;  %1728 = vmatpush.msra.mxu1 %v3797_v33 }
 0x615   :  { %1627 = vmatpush.msrb.mxu0 %v3798_v38 }
 0x616   :  { %1709 = vmatpush.msra.mxu3 %v3799_v3  ;;  %1729 = vmatpush.msra.mxu1 %v3800_v20 }
 0x673   :  { %v1345_v11 = vpop.f32.mrf.mxu0 }
 0x674   :  { %v1389_v40 = vrot.slane %v1345_v11, 6  ;;  %v1385_v63 = vpop.f32.mrf.mxu1 }
 0x675   :  { %v1434_v0 = vadd.f32 %v1385_v63, %v3379_v16 }
 0x676   :  { %v1391_v44 = vadd.f32 %v1389_v40, %v3801_v43 }
 0x677   :  { %v1436_v30 = vrot.slane %v1434_v0, 6 }
 0x678   :  { %v2116_v50 = vmul.f32 -1.442695, %v1391_v44 }
 0x679   :  { %v1365_v29 = vpop.f32.mrf.mxu3 }
 0x67a   :  { %2228 = vpow2.f32 %v2116_v50  ;;  %v1412_v27 = vrot.slane %v1365_v29, 6 }
 0x67c   :  { %v1414_v23 = vadd.f32 %v1412_v27, %v3802_v10 }
 0x67e   :  { %v2117_v51 = vmul.f32 -1.442695, %v1414_v23 }
 0x680   :  { %v2229_v32 = vpop.eup %2228  ;;  %2230 = vpow2.f32 %v2117_v51  ;;  %v1443_v51 = vrot.slane %v3444_v13, 7  ;;  %v3520_v13 = vld [vmem:[#allocation5 + $0x158] sm:$0xff] }
 0x681   :  { %v1395_v45 = vadd.f32 1.0, %v2229_v32 }
 0x683   :  { %2232 = vrcp.f32 %v1395_v45  ;;  %v1407_v2 = vand.u32 2147483648, %v1395_v45  ;;  %v1405_v42 = vand.u32 2147483647, %v1395_v45  ;;  %vm1401_vm12 = vweird.f32 %v1395_v45 }
 0x685   :  { %v1408_v61 = vor.u32 1.1754944e-38, %v1407_v2  ;;  %vm1406_vm14 = vcmp.eq.f32.partialorder %v1405_v42, 8.507059e+37  ;;  %v3546_v2 = vld [vmem:[#allocation5 + $0xd8] sm:$0xff]  ;;  %v3565_v42 = vld [vmem:[#allocation5 + $0x90] sm:$0xff] }
 0x686   :  { %v2231_v18 = vpop.eup %2230 }
 0x687   :  { %v1418_v26 = vadd.f32 1.0, %v2231_v18 }
 0x689   :  { %v2233_v57 = vpop.eup %2232  ;;  %2234 = vrcp.f32 %v1418_v26  ;;  %v1430_v11 = vand.u32 2147483648, %v1418_v26  ;;  %v1428_v40 = vand.u32 2147483647, %v1418_v26  ;;  %vm1424_vm0 = vweird.f32 %v1418_v26 }
 0x68a   :  { %v1397_v5 = vmul.f32 %v2233_v57, %v1395_v45  ;;  %vm1402_vm11 = vweird.f32 %v2233_v57 }
 0x68b   :  { %vm1403_vm13 = vmor %vm1401_vm12, %vm1402_vm11  ;;  %v1431_v27 = vor.u32 1.1754944e-38, %v1430_v11  ;;  %vm1429_vm2 = vcmp.eq.f32.partialorder %v1428_v40, 8.507059e+37 }
 0x68c   :  { %v1398_v14 = vsub.f32 1.0, %v1397_v5 }
 0x68e   :  { %v1399_v62 = vmul.f32 %v2233_v57, %v1398_v14  ;;  %v3525_v14 = vld [vmem:[#allocation5 + $0x140] sm:$0xff] }
 0x68f   :  { %v2235_v56 = vpop.eup %2234 }
 0x690   :  { %v1400_v34 = vadd.f32 %v2233_v57, %v1399_v62  ;;  %v1420_v7 = vmul.f32 %v2235_v56, %v1418_v26  ;;  %vm1425_vm15 = vweird.f32 %v2235_v56  ;;  %v3515_v26 = vld [vmem:[#allocation5 + $0x170] sm:$0xff]  ;;  %v3556_v62 = vld [vmem:[#allocation5 + $0xc8] sm:$0xff] }
 0x691   :  { %vm1426_vm1 = vmor %vm1424_vm0, %vm1425_vm15 }
 0x692   :  { %v1404_v31 = vsel %vm1403_vm13, %v2233_v57, %v1400_v34  ;;  %v1421_v48 = vsub.f32 1.0, %v1420_v7 }
 0x693   :  { %v1409_v15 = vsel %vm1406_vm14, %v1408_v61, %v1404_v31 }
 0x694   :  { %v1438_v1 = vmul.f32 %v1436_v30, %v1409_v15  ;;  %v1422_v3 = vmul.f32 %v2235_v56, %v1421_v48 }
 0x696   :  { %v1439_v44 = vadd.f32 %v1438_v1, %v3382_v12  ;;  %v1423_v50 = vadd.f32 %v2235_v56, %v1422_v3 }
 0x698   :  { %2236 = vtanh.f32 %v1439_v44  ;;  %v1427_v29 = vsel %vm1426_vm1, %v2235_v56, %v1423_v50 }
 0x699   :  { %v1432_v23 = vsel %vm1429_vm2, %v1431_v27, %v1427_v29 }
 0x69a   :  { %v1441_v32 = vsub.f32 1.0, %v1432_v23  ;;  %v1445_v57 = vmul.f32 %v1443_v51, %v1432_v23 }
 0x69e   :  { %v2237_v45 = vpop.eup %2236 }
 0x69f   :  { %v1442_v18 = vmul.f32 %v2237_v45, %v1441_v32 }
 0x6a1   :  { %v3510_v5 = vadd.f32 %v1445_v57, %v1442_v18 }
 0x6a3   :  { %v1448_v63 = vrot.slane %v3510_v5, 2 }
 0x6a5   :  { %1466 = vmatmul.f32.vlgmr.msrb.gmra.mxu2 %v1448_v63  ;;  %1486 = vmatmul.f32.vlgmr.msra.gmra.mxu0 %v1448_v63 }
 0x6a6   :  { %1506 = vmatmul.f32.vlgmr.msrb.gmra.mxu3 %v1448_v63  ;;  %1734 = vmatpush.msrb.mxu2 %v3198_v54  ;;  %v3530_v54 = vld [vmem:[#allocation5 + $0x128] sm:$0xff] }
 0x6a7   :  { %1816 = vmatpush.msra.mxu0 %v3448_v36  ;;  %1836 = vmatpush.msrb.mxu3 %v3515_v26 }
 0x6a8   :  { %1735 = vmatpush.msrb.mxu2 %v3207_v41  ;;  %v3535_v41 = vld [vmem:[#allocation5 + $0x110] sm:$0xff] }
 0x6a9   :  { %1817 = vmatpush.msra.mxu0 %v3453_v28  ;;  %1837 = vmatpush.msrb.mxu3 %v3520_v13 }
 0x6aa   :  { %1736 = vmatpush.msrb.mxu2 %v3211_v46  ;;  %v3539_v46 = vld [vmem:[#allocation5 + $0xf0] sm:$0xff] }
 0x6ab   :  { %1818 = vmatpush.msra.mxu0 %v3458_v22  ;;  %1838 = vmatpush.msrb.mxu3 %v3525_v14 }
 0x6ac   :  { %1737 = vmatpush.msrb.mxu2 %v3217_v19  ;;  %v3542_v19 = vld [vmem:[#allocation5 + $0xf8] sm:$0xff] }
 0x6ad   :  { %1819 = vmatpush.msra.mxu0 %v3463_v8  ;;  %1839 = vmatpush.msrb.mxu3 %v3530_v54 }
 0x6ae   :  { %1738 = vmatpush.msrb.mxu2 %v3228_v6  ;;  %v3549_v6 = vld [vmem:[#allocation5 + $0xe0] sm:$0xff] }
 0x6af   :  { %1820 = vmatpush.msra.mxu0 %v3468_v21  ;;  %1840 = vmatpush.msrb.mxu3 %v3535_v41 }
 0x6b0   :  { %1739 = vmatpush.msrb.mxu2 %v3236_v35  ;;  %v3553_v35 = vld [vmem:[#allocation5 + $0xc0] sm:$0xff] }
 0x6b1   :  { %1821 = vmatpush.msra.mxu0 %v3539_v46  ;;  %1841 = vmatpush.msrb.mxu3 %v3542_v19 }
 0x6b2   :  { %1740 = vmatpush.msrb.mxu2 %v3240_v52  ;;  %v3560_v52 = vld [vmem:[#allocation5 + $0xa8] sm:$0xff] }
 0x6b3   :  { %1822 = vmatpush.msra.mxu0 %v3546_v2  ;;  %1842 = vmatpush.msrb.mxu3 %v3549_v6 }
 0x6b4   :  { %1741 = vmatpush.msrb.mxu2 %v3246_v49  ;;  %v3570_v49 = vld [vmem:[#allocation5 + $0x78] sm:$0xff] }
 0x6b5   :  { %1823 = vmatpush.msra.mxu0 %v3553_v35  ;;  %1843 = vmatpush.msrb.mxu3 %v3556_v62 }
 0x6b6   :  { %1742 = vmatpush.msrb.mxu2 %v3252_v58  ;;  %v3575_v58 = vld [vmem:[#allocation5 + $0x60] sm:$0xff] }
 0x6b7   :  { %1824 = vmatpush.msra.mxu0 %v3560_v52  ;;  %1844 = vmatpush.msrb.mxu3 %v3161_v47  ;;  %v3580_v47 = vld [vmem:[#allocation5 + $0x48] sm:$0xff] }
 0x6b8   :  { %1743 = vmatpush.msrb.mxu2 %v3258_v25 }
 0x6b9   :  { %1825 = vmatpush.msra.mxu0 %v3565_v42  ;;  %1845 = vmatpush.msrb.mxu3 %v3166_v53  ;;  %v3585_v53 = vld [vmem:[#allocation5 + $0x30] sm:$0xff] }
 0x6ba   :  { %1744 = vmatpush.msrb.mxu2 %v3264_v9 }
 0x6bb   :  { %1826 = vmatpush.msra.mxu0 %v3570_v49  ;;  %1846 = vmatpush.msrb.mxu3 %v3171_v37  ;;  %v3590_v37 = vld [vmem:[#allocation5 + $0x18] sm:$0xff] }
 0x6bc   :  { %1745 = vmatpush.msrb.mxu2 %v3270_v55 }
 0x6bd   :  { %1827 = vmatpush.msra.mxu0 %v3575_v58  ;;  %1847 = vmatpush.msrb.mxu3 %v3175_v4  ;;  %v3595_v4 = vld [vmem:[#allocation5] sm:$0xff] }
 0x6be   :  { %1746 = vmatpush.msrb.mxu2 %v3276_v17 }
 0x6bf   :  { %1828 = vmatpush.msra.mxu0 %v3580_v47  ;;  %1848 = vmatpush.msrb.mxu3 %v3180_v60 }
 0x6c0   :  { %1747 = vmatpush.msrb.mxu2 %v3281_v24 }
 0x6c1   :  { %1829 = vmatpush.msra.mxu0 %v3585_v53  ;;  %1849 = vmatpush.msrb.mxu3 %v3788_v39 }
 0x6c2   :  { %1748 = vmatpush.msrb.mxu2 %v3789_v59 }
 0x6c3   :  { %1830 = vmatpush.msra.mxu0 %v3590_v37  ;;  %1850 = vmatpush.msrb.mxu3 %v3797_v33 }
 0x6c4   :  { %1749 = vmatpush.msrb.mxu2 %v3798_v38 }
 0x6c5   :  { %1831 = vmatpush.msra.mxu0 %v3595_v4  ;;  %1851 = vmatpush.msrb.mxu3 %v3800_v20 }
 0x722   :  { %v1487_v60 = vpop.f32.mrf.mxu0 }
 0x723   :  { %v1534_v25 = vrot.slane %v1487_v60, 5 }
 0x725   :  { %v1536_v9 = vadd.f32 %v1534_v25, %v3802_v10 }
 0x727   :  { %v2119_v55 = vmul.f32 -1.442695, %v1536_v9 }
 0x728   :  { %v1467_v17 = vpop.f32.mrf.mxu2 }
 0x729   :  { %2238 = vpow2.f32 %v2119_v55  ;;  %v1511_v24 = vrot.slane %v1467_v17, 5  ;;  %v1507_v15 = vpop.f32.mrf.mxu3  ;;  %v1565_v17 = vrot.slane %v3510_v5, 7  ;;  %v3612_v5 = vld [vmem:[#allocation5 + $0x160] sm:$0xff] }
 0x72a   :  { %v1556_v44 = vadd.f32 %v1507_v15, %v3379_v16 }
 0x72b   :  { %v1513_v39 = vadd.f32 %v1511_v24, %v3801_v43 }
 0x72c   :  { %v1558_v51 = vrot.slane %v1556_v44, 5 }
 0x72d   :  { %v2118_v0 = vmul.f32 -1.442695, %v1513_v39 }
 0x72f   :  { %v2239_v33 = vpop.eup %2238  ;;  %2240 = vpow2.f32 %v2118_v0 }
 0x730   :  { %v1540_v56 = vadd.f32 1.0, %v2239_v33 }
 0x732   :  { %2242 = vrcp.f32 %v1540_v56  ;;  %v1552_v57 = vand.u32 2147483648, %v1540_v56  ;;  %vm1546_vm8 = vweird.f32 %v1540_v56  ;;  %v1550_v63 = vand.u32 2147483647, %v1540_v56 }
 0x734   :  { %v1553_v9 = vor.u32 1.1754944e-38, %v1552_v57  ;;  %vm1551_vm10 = vcmp.eq.f32.partialorder %v1550_v63, 8.507059e+37 }
 0x735   :  { %v2241_v34 = vpop.eup %2240 }
 0x736   :  { %v1517_v7 = vadd.f32 1.0, %v2241_v34 }
 0x738   :  { %2244 = vrcp.f32 %v1517_v7  ;;  %v2243_v61 = vpop.eup %2242  ;;  %v1529_v3 = vand.u32 2147483648, %v1517_v7  ;;  %v1527_v40 = vand.u32 2147483647, %v1517_v7  ;;  %vm1523_vm4 = vweird.f32 %v1517_v7 }
 0x739   :  { %v1542_v20 = vmul.f32 %v2243_v61, %v1540_v56  ;;  %vm1547_vm7 = vweird.f32 %v2243_v61  ;;  %v3607_v56 = vld [vmem:[#allocation5 + $0x178] sm:$0xff] }
 0x73a   :  { %v1530_v27 = vor.u32 1.1754944e-38, %v1529_v3  ;;  %vm1528_vm6 = vcmp.eq.f32.partialorder %v1527_v40, 8.507059e+37  ;;  %vm1548_vm9 = vmor %vm1546_vm8, %vm1547_vm7 }
 0x73b   :  { %v1543_v48 = vsub.f32 1.0, %v1542_v20  ;;  %v3622_v20 = vld [vmem:[#allocation5 + $0x130] sm:$0xff] }
 0x73d   :  { %v1544_v50 = vmul.f32 %v2243_v61, %v1543_v48 }
 0x73e   :  { %v2245_v31 = vpop.eup %2244 }
 0x73f   :  { %v1519_v30 = vmul.f32 %v2245_v31, %v1517_v7  ;;  %vm1524_vm3 = vweird.f32 %v2245_v31  ;;  %v1545_v45 = vadd.f32 %v2243_v61, %v1544_v50 }
 0x740   :  { %vm1525_vm5 = vmor %vm1523_vm4, %vm1524_vm3 }
 0x741   :  { %v1520_v1 = vsub.f32 1.0, %v1519_v30  ;;  %v1549_v25 = vsel %vm1548_vm9, %v2243_v61, %v1545_v45  ;;  %v3617_v61 = vld [vmem:[#allocation5 + $0x148] sm:$0xff] }
 0x742   :  { %v1554_v55 = vsel %vm1551_vm10, %v1553_v9, %v1549_v25 }
 0x743   :  { %v1521_v11 = vmul.f32 %v2245_v31, %v1520_v1  ;;  %v1563_v24 = vsub.f32 1.0, %v1554_v55  ;;  %v1567_v33 = vmul.f32 %v1565_v17, %v1554_v55 }
 0x745   :  { %v1522_v29 = vadd.f32 %v2245_v31, %v1521_v11 }
 0x747   :  { %v1526_v23 = vsel %vm1525_vm5, %v2245_v31, %v1522_v29 }
 0x748   :  { %v1531_v32 = vsel %vm1528_vm6, %v1530_v27, %v1526_v23 }
 0x749   :  { %v1560_v18 = vmul.f32 %v1558_v51, %v1531_v32 }
 0x74b   :  { %v1561_v60 = vadd.f32 %v1560_v18, %v3382_v12 }
 0x74d   :  { %2246 = vtanh.f32 %v1561_v60 }
 0x753   :  { %v2247_v39 = vpop.eup %2246 }
 0x754   :  { %v1564_v0 = vmul.f32 %v2247_v39, %v1563_v24 }
 0x756   :  { %v3604_v34 = vadd.f32 %v1567_v33, %v1564_v0 }
 0x758   :  { %v1570_v7 = vrot.slane %v3604_v34, 3 }
 0x75a   :  { %1588 = vmatmul.f32.vlgmr.msrb.gmra.mxu1 %v1570_v7  ;;  %1608 = vmatmul.f32.vlgmr.msra.gmra.mxu2 %v1570_v7 }
 0x75b   :  { %1628 = vmatmul.f32.vlgmr.msrb.gmra.mxu0 %v1570_v7  ;;  %1856 = vmatpush.msrb.mxu1 %v3607_v56  ;;  %v1687_v7 = vrot.slane %v3604_v34, 7  ;;  %v2334_v34 = vld [vmem:[#allocation5 + $0x28] sm:$0xff] }
 0x75c   :  { %1938 = vmatpush.msra.mxu2 %v3448_v36  ;;  %1958 = vmatpush.msrb.mxu0 %v3515_v26  ;;  %v3627_v36 = vld [vmem:[#allocation5 + $0x118] sm:$0xff]  ;;  %v2321_v26 = vld [vmem:[#allocation5 + $0xb0] sm:$0xff] }
 0x75d   :  { %1857 = vmatpush.msrb.mxu1 %v3612_v5 }
 0x75e   :  { %1939 = vmatpush.msra.mxu2 %v3453_v28  ;;  %1959 = vmatpush.msrb.mxu0 %v3520_v13  ;;  %v3632_v28 = vld [vmem:[#allocation5 + $0x100] sm:$0xff] }
 0x75f   :  { %1858 = vmatpush.msrb.mxu1 %v3617_v61  ;;  %v3651_v13 = vld [vmem:[#allocation5 + $0xa0] sm:$0xff] }
 0x760   :  { %1940 = vmatpush.msra.mxu2 %v3458_v22  ;;  %1960 = vmatpush.msrb.mxu0 %v3525_v14  ;;  %v3637_v22 = vld [vmem:[#allocation5 + $0xe8] sm:$0xff]  ;;  %v2323_v14 = vld [vmem:[#allocation5 + $0x98] sm:$0xff] }
 0x761   :  { %1859 = vmatpush.msrb.mxu1 %v3622_v20 }
 0x762   :  { %1941 = vmatpush.msra.mxu2 %v3463_v8  ;;  %1961 = vmatpush.msrb.mxu0 %v3530_v54  ;;  %v3642_v8 = vld [vmem:[#allocation5 + $0xd0] sm:$0xff]  ;;  %v3655_v54 = vld [vmem:[#allocation5 + $0x88] sm:$0xff] }
 0x763   :  { %1860 = vmatpush.msrb.mxu1 %v3627_v36 }
 0x764   :  { %1942 = vmatpush.msra.mxu2 %v3468_v21  ;;  %1962 = vmatpush.msrb.mxu0 %v3535_v41  ;;  %v3647_v21 = vld [vmem:[#allocation5 + $0xb8] sm:$0xff]  ;;  %v2325_v41 = vld [vmem:[#allocation5 + $0x80] sm:$0xff] }
 0x765   :  { %1861 = vmatpush.msrb.mxu1 %v3632_v28 }
 0x766   :  { %1943 = vmatpush.msra.mxu2 %v3539_v46  ;;  %1963 = vmatpush.msrb.mxu0 %v3542_v19  ;;  %v3659_v46 = vld [vmem:[#allocation5 + $0x70] sm:$0xff]  ;;  %v2327_v19 = vld [vmem:[#allocation5 + $0x68] sm:$0xff] }
 0x767   :  { %1862 = vmatpush.msrb.mxu1 %v3637_v22 }
 0x768   :  { %1944 = vmatpush.msra.mxu2 %v3546_v2  ;;  %1964 = vmatpush.msrb.mxu0 %v3549_v6  ;;  %v3663_v2 = vld [vmem:[#allocation5 + $0x58] sm:$0xff]  ;;  %v2329_v6 = vld [vmem:[#allocation5 + $0x50] sm:$0xff] }
 0x769   :  { %1863 = vmatpush.msrb.mxu1 %v3642_v8 }
 0x76a   :  { %1945 = vmatpush.msra.mxu2 %v3553_v35  ;;  %1965 = vmatpush.msrb.mxu0 %v3556_v62  ;;  %v3667_v35 = vld [vmem:[#allocation5 + $0x40] sm:$0xff]  ;;  %v2331_v62 = vld [vmem:[#allocation5 + $0x38] sm:$0xff] }
 0x76b   :  { %1864 = vmatpush.msrb.mxu1 %v3647_v21 }
 0x76c   :  { %1946 = vmatpush.msra.mxu2 %v3560_v52  ;;  %1966 = vmatpush.msrb.mxu0 %v2321_v26  ;;  %v2332_v52 = vld [vmem:[#allocation5 + $0x20] sm:$0xff] }
 0x76d   :  { %1865 = vmatpush.msrb.mxu1 %v3651_v13 }
 0x76e   :  { %1947 = vmatpush.msra.mxu2 %v3565_v42  ;;  %1967 = vmatpush.msrb.mxu0 %v2323_v14  ;;  %v2333_v42 = vld [vmem:[#allocation5 + $0x8] sm:$0xff] }
 0x76f   :  { %1866 = vmatpush.msrb.mxu1 %v3655_v54 }
 0x770   :  { %1948 = vmatpush.msra.mxu2 %v3570_v49  ;;  %1968 = vmatpush.msrb.mxu0 %v2325_v41 }
 0x771   :  { %1867 = vmatpush.msrb.mxu1 %v3659_v46 }
 0x772   :  { %1949 = vmatpush.msra.mxu2 %v3575_v58  ;;  %1969 = vmatpush.msrb.mxu0 %v2327_v19 }
 0x773   :  { %1868 = vmatpush.msrb.mxu1 %v3663_v2 }
 0x774   :  { %1950 = vmatpush.msra.mxu2 %v3580_v47  ;;  %1970 = vmatpush.msrb.mxu0 %v2329_v6 }
 0x775   :  { %1869 = vmatpush.msrb.mxu1 %v3667_v35 }
 0x776   :  { %1951 = vmatpush.msra.mxu2 %v3585_v53  ;;  %1971 = vmatpush.msrb.mxu0 %v2331_v62 }
 0x777   :  { %1870 = vmatpush.msrb.mxu1 %v3789_v59 }
 0x778   :  { %1952 = vmatpush.msra.mxu2 %v3590_v37  ;;  %1972 = vmatpush.msrb.mxu0 %v2332_v52 }
 0x779   :  { %1871 = vmatpush.msrb.mxu1 %v3798_v38 }
 0x77a   :  { %1953 = vmatpush.msra.mxu2 %v3595_v4  ;;  %1973 = vmatpush.msrb.mxu0 %v2333_v42 }
 0x7d7   :  { %v1589_v49 = vpop.f32.mrf.mxu1 }
 0x7d8   :  { %v1633_v58 = vrot.slane %v1589_v49, 4  ;;  %v1629_v11 = vpop.f32.mrf.mxu0 }
 0x7d9   :  { %v1678_v27 = vadd.f32 %v1629_v11, %v3379_v16 }
 0x7da   :  { %v1635_v47 = vadd.f32 %v1633_v58, %v3801_v43 }
 0x7db   :  { %v1680_v57 = vrot.slane %v1678_v27, 4 }
 0x7dc   :  { %v2120_v31 = vmul.f32 -1.442695, %v1635_v47 }
 0x7dd   :  { %v1609_v53 = vpop.f32.mrf.mxu2 }
 0x7de   :  { %2248 = vpow2.f32 %v2120_v31  ;;  %v1656_v30 = vrot.slane %v1609_v53, 4 }
 0x7e0   :  { %v1658_v59 = vadd.f32 %v1656_v30, %v3802_v10 }
 0x7e2   :  { %v2121_v48 = vmul.f32 -1.442695, %v1658_v59 }
 0x7e4   :  { %v2249_v37 = vpop.eup %2248  ;;  %2250 = vpow2.f32 %v2121_v48  ;;  %v3702_v48 = vld [vmem:[%s3735_s13] sm:$0x1]  ;;  %s2421_s13 = smov [#allocation7]  }
 0x7e5   :  { %v1639_v15 = vadd.f32 1.0, %v2249_v37  ;;  %s2063_s29 = sshll.u32 %s2421_s13, 4  ;;  %s2064_s29 = int_to_ptr.vmem [resolvable:$true] %s2063_s29 }
 0x7e7   :  { %2252 = vrcp.f32 %v1639_v15  ;;  %v1651_v44 = vand.u32 2147483648, %v1639_v15  ;;  %v1649_v29 = vand.u32 2147483647, %v1639_v15  ;;  %vm1645_vm12 = vweird.f32 %v1639_v15 }
 0x7e9   :  { %v1652_v45 = vor.u32 1.1754944e-38, %v1651_v44  ;;  %vm1650_vm14 = vcmp.eq.f32.partialorder %v1649_v29, 8.507059e+37 }
 0x7ea   :  { %v2251_v38 = vpop.eup %2250 }
 0x7eb   :  { %v1662_v1 = vadd.f32 1.0, %v2251_v38 }
 0x7ed   :  { %v2253_v4 = vpop.eup %2252  ;;  %2254 = vrcp.f32 %v1662_v1  ;;  %v1674_v55 = vand.u32 2147483648, %v1662_v1  ;;  %v1672_v17 = vand.u32 2147483647, %v1662_v1  ;;  %vm1668_vm0 = vweird.f32 %v1662_v1 }
 0x7ee   :  { %v1641_v3 = vmul.f32 %v2253_v4, %v1639_v15  ;;  %vm1646_vm11 = vweird.f32 %v2253_v4 }
 0x7ef   :  { %vm1647_vm13 = vmor %vm1645_vm12, %vm1646_vm11  ;;  %v1675_v0 = vor.u32 1.1754944e-38, %v1674_v55  ;;  %vm1673_vm2 = vcmp.eq.f32.partialorder %v1672_v17, 8.507059e+37 }
 0x7f0   :  { %v1642_v40 = vsub.f32 1.0, %v1641_v3 }
 0x7f2   :  { %v1643_v50 = vmul.f32 %v2253_v4, %v1642_v40 }
 0x7f3   :  { %v2255_v23 = vpop.eup %2254 }
 0x7f4   :  { %v1644_v51 = vadd.f32 %v2253_v4, %v1643_v50  ;;  %v1664_v32 = vmul.f32 %v2255_v23, %v1662_v1  ;;  %vm1669_vm15 = vweird.f32 %v2255_v23 }
 0x7f5   :  { %vm1670_vm1 = vmor %vm1668_vm0, %vm1669_vm15 }
 0x7f6   :  { %v1648_v18 = vsel %vm1647_vm13, %v2253_v4, %v1644_v51  ;;  %v1665_v63 = vsub.f32 1.0, %v1664_v32 }
 0x7f7   :  { %v1653_v60 = vsel %vm1650_vm14, %v1652_v45, %v1648_v18 }
 0x7f8   :  { %v1682_v25 = vmul.f32 %v1680_v57, %v1653_v60  ;;  %v1666_v9 = vmul.f32 %v2255_v23, %v1665_v63 }
 0x7fa   :  { %v1683_v24 = vadd.f32 %v1682_v25, %v3382_v12  ;;  %v1667_v16 = vadd.f32 %v2255_v23, %v1666_v9 }
 0x7fc   :  { %2256 = vtanh.f32 %v1683_v24  ;;  %v1671_v39 = vsel %vm1670_vm1, %v2255_v23, %v1667_v16 }
 0x7fd   :  { %v1676_v33 = vsel %vm1673_vm2, %v1675_v0, %v1671_v39 }
 0x7fe   :  { %v1685_v26 = vsub.f32 1.0, %v1676_v33  ;;  %v1689_v19 = vmul.f32 %v1687_v7, %v1676_v33 }
 0x802   :  { %v2257_v14 = vpop.eup %2256 }
 0x803   :  { %v1686_v41 = vmul.f32 %v2257_v14, %v1685_v26 }
 0x805   :  { %v3680_v6 = vadd.f32 %v1689_v19, %v1686_v41 }
 0x807   :  { %v1692_v62 = vrot.slane %v3680_v6, 4  ;;  %v1809_v45 = vrot.slane %v3680_v6, 7 }
 0x809   :  { %1710 = vmatmul.f32.vlgmr.msra.gmra.mxu3 %v1692_v62  ;;  %1730 = vmatmul.f32.vlgmr.msra.gmra.mxu1 %v1692_v62 }
 0x80a   :  { %1750 = vmatmul.f32.vlgmr.msrb.gmra.mxu2 %v1692_v62  ;;  %1978 = vmatpush.msra.mxu3 %v3607_v56  ;;  %v2335_v56 = vld [vmem:[#allocation5 + $0x10] sm:$0xff] }
 0x80c   :  { %1979 = vmatpush.msra.mxu3 %v3612_v5 }
 0x80e   :  { %1980 = vmatpush.msra.mxu3 %v3617_v61 }
 0x810   :  { %1981 = vmatpush.msra.mxu3 %v3622_v20 }
 0x812   :  { %1982 = vmatpush.msra.mxu3 %v3627_v36 }
 0x814   :  { %1983 = vmatpush.msra.mxu3 %v3632_v28 }
 0x816   :  { %1984 = vmatpush.msra.mxu3 %v3637_v22 }
 0x818   :  { %1985 = vmatpush.msra.mxu3 %v3642_v8 }
 0x81a   :  { %1986 = vmatpush.msra.mxu3 %v3647_v21 }
 0x81c   :  { %1987 = vmatpush.msra.mxu3 %v3651_v13 }
 0x81e   :  { %1988 = vmatpush.msra.mxu3 %v3655_v54 }
 0x820   :  { %1989 = vmatpush.msra.mxu3 %v3659_v46 }
 0x822   :  { %1990 = vmatpush.msra.mxu3 %v3663_v2 }
 0x824   :  { %1991 = vmatpush.msra.mxu3 %v3667_v35 }
 0x826   :  { %1992 = vmatpush.msra.mxu3 %v2334_v34 }
 0x828   :  { %1993 = vmatpush.msra.mxu3 %v2335_v56 }
 0x886   :  { %v1731_v5 = vpop.f32.mrf.mxu1 }
 0x887   :  { %v1778_v61 = vrot.slane %v1731_v5, 3 }
 0x889   :  { %v1780_v20 = vadd.f32 %v1778_v61, %v3802_v10 }
 0x88b   :  { %v2123_v36 = vmul.f32 -1.442695, %v1780_v20 }
 0x88c   :  { %v1711_v28 = vpop.f32.mrf.mxu3 }
 0x88d   :  { %2258 = vpow2.f32 %v2123_v36  ;;  %v1755_v22 = vrot.slane %v1711_v28, 3  ;;  %v1751_v47 = vpop.f32.mrf.mxu2 }
 0x88e   :  { %v1800_v37 = vadd.f32 %v3702_v48, %v1751_v47 }
 0x88f   :  { %v1757_v8 = vadd.f32 %v1755_v22, %v3801_v43 }
 0x890   :  { %v1802_v3 = vrot.slane %v1800_v37, 3 }
 0x891   :  { %v2122_v21 = vmul.f32 -1.442695, %v1757_v8 }
 0x893   :  { %v2259_v13 = vpop.eup %2258  ;;  %2260 = vpow2.f32 %v2122_v21 }
 0x894   :  { %v1784_v54 = vadd.f32 1.0, %v2259_v13 }
 0x896   :  { %2262 = vrcp.f32 %v1784_v54  ;;  %v1796_v50 = vand.u32 2147483648, %v1784_v54  ;;  %vm1790_vm8 = vweird.f32 %v1784_v54  ;;  %v1794_v29 = vand.u32 2147483647, %v1784_v54 }
 0x898   :  { %v1797_v51 = vor.u32 1.1754944e-38, %v1796_v50  ;;  %vm1795_vm10 = vcmp.eq.f32.partialorder %v1794_v29, 8.507059e+37 }
 0x899   :  { %v2261_v46 = vpop.eup %2260 }
 0x89a   :  { %v1761_v2 = vadd.f32 1.0, %v2261_v46 }
 0x89c   :  { %2264 = vrcp.f32 %v1761_v2  ;;  %v2263_v35 = vpop.eup %2262  ;;  %v1773_v53 = vand.u32 2147483648, %v1761_v2  ;;  %v1771_v59 = vand.u32 2147483647, %v1761_v2  ;;  %vm1767_vm4 = vweird.f32 %v1761_v2 }
 0x89d   :  { %v1786_v52 = vmul.f32 %v2263_v35, %v1784_v54  ;;  %vm1791_vm7 = vweird.f32 %v2263_v35 }
 0x89e   :  { %v1774_v1 = vor.u32 1.1754944e-38, %v1773_v53  ;;  %vm1772_vm6 = vcmp.eq.f32.partialorder %v1771_v59, 8.507059e+37  ;;  %vm1792_vm9 = vmor %vm1790_vm8, %vm1791_vm7 }
 0x89f   :  { %v1787_v58 = vsub.f32 1.0, %v1786_v52 }
 0x8a1   :  { %v1788_v15 = vmul.f32 %v2263_v35, %v1787_v58 }
 0x8a2   :  { %v2265_v42 = vpop.eup %2264 }
 0x8a3   :  { %v1763_v49 = vmul.f32 %v2265_v42, %v1761_v2  ;;  %vm1768_vm3 = vweird.f32 %v2265_v42  ;;  %v1789_v40 = vadd.f32 %v2263_v35, %v1788_v15 }
 0x8a4   :  { %vm1769_vm5 = vmor %vm1767_vm4, %vm1768_vm3 }
 0x8a5   :  { %v1764_v31 = vsub.f32 1.0, %v1763_v49  ;;  %v1793_v23 = vsel %vm1792_vm9, %v2263_v35, %v1789_v40 }
 0x8a6   :  { %v1798_v32 = vsel %vm1795_vm10, %v1797_v51, %v1793_v23 }
 0x8a7   :  { %v1765_v30 = vmul.f32 %v2265_v42, %v1764_v31  ;;  %v1807_v18 = vsub.f32 1.0, %v1798_v32  ;;  %v1811_v60 = vmul.f32 %v1809_v45, %v1798_v32 }
 0x8a9   :  { %v1766_v38 = vadd.f32 %v2265_v42, %v1765_v30 }
 0x8ab   :  { %v1770_v4 = vsel %vm1769_vm5, %v2265_v42, %v1766_v38 }
 0x8ac   :  { %v1775_v11 = vsel %vm1772_vm6, %v1774_v1, %v1770_v4 }
 0x8ad   :  { %v1804_v44 = vmul.f32 %v1802_v3, %v1775_v11 }
 0x8af   :  { %v1805_v27 = vadd.f32 %v1804_v44, %v3382_v12 }
 0x8b1   :  { %2266 = vtanh.f32 %v1805_v27 }
 0x8b7   :  { %v2267_v57 = vpop.eup %2266 }
 0x8b8   :  { %v1808_v63 = vmul.f32 %v2267_v57, %v1807_v18 }
 0x8ba   :  { %v1812_v25 = vadd.f32 %v1811_v60, %v1808_v63 }
 0x8bc   :  { %v1814_v9 = vrot.slane %v1812_v25, 5  ;;  %v1931_v59 = vrot.slane %v1812_v25, 7 }
 0x8be   :  { %1832 = vmatmul.f32.vlgmr.msra.gmra.mxu0 %v1814_v9  ;;  %1852 = vmatmul.f32.vlgmr.msrb.gmra.mxu3 %v1814_v9 }
 0x8bf   :  { %1872 = vmatmul.f32.vlgmr.msrb.gmra.mxu1 %v1814_v9 }
 0x93b   :  { %v1833_v55 = vpop.f32.mrf.mxu0 }
 0x93c   :  { %v1877_v17 = vrot.slane %v1833_v55, 2  ;;  %v1873_v34 = vpop.f32.mrf.mxu1 }
 0x93d   :  { %v1922_v36 = vadd.f32 %v3702_v48, %v1873_v34 }
 0x93e   :  { %v1879_v24 = vadd.f32 %v1877_v17, %v3801_v43 }
 0x93f   :  { %v1924_v54 = vrot.slane %v1922_v36, 2 }
 0x940   :  { %v2124_v16 = vmul.f32 -1.442695, %v1879_v24 }
 0x941   :  { %v1853_v39 = vpop.f32.mrf.mxu3 }
 0x942   :  { %2268 = vpow2.f32 %v2124_v16  ;;  %v1900_v0 = vrot.slane %v1853_v39, 2 }
 0x944   :  { %v1902_v33 = vadd.f32 %v1900_v0, %v3802_v10 }
 0x946   :  { %v2125_v7 = vmul.f32 -1.442695, %v1902_v33 }
 0x948   :  { %v2269_v26 = vpop.eup %2268  ;;  %2270 = vpow2.f32 %v2125_v7 }
 0x949   :  { %v1883_v14 = vadd.f32 1.0, %v2269_v26 }
 0x94b   :  { %2272 = vrcp.f32 %v1883_v14  ;;  %v1895_v5 = vand.u32 2147483648, %v1883_v14  ;;  %v1893_v20 = vand.u32 2147483647, %v1883_v14  ;;  %vm1889_vm12 = vweird.f32 %v1883_v14 }
 0x94d   :  { %v1896_v21 = vor.u32 1.1754944e-38, %v1895_v5  ;;  %vm1894_vm14 = vcmp.eq.f32.partialorder %v1893_v20, 8.507059e+37 }
 0x94e   :  { %v2271_v41 = vpop.eup %2270 }
 0x94f   :  { %v1906_v19 = vadd.f32 1.0, %v2271_v41 }
 0x951   :  { %v2273_v6 = vpop.eup %2272  ;;  %2274 = vrcp.f32 %v1906_v19  ;;  %v1918_v42 = vand.u32 2147483648, %v1906_v19  ;;  %v1916_v49 = vand.u32 2147483647, %v1906_v19  ;;  %vm1912_vm0 = vweird.f32 %v1906_v19 }
 0x952   :  { %v1885_v62 = vmul.f32 %v2273_v6, %v1883_v14  ;;  %vm1890_vm11 = vweird.f32 %v2273_v6 }
 0x953   :  { %vm1891_vm13 = vmor %vm1889_vm12, %vm1890_vm11  ;;  %v1919_v53 = vor.u32 1.1754944e-38, %v1918_v42  ;;  %vm1917_vm2 = vcmp.eq.f32.partialorder %v1916_v49, 8.507059e+37 }
 0x954   :  { %v1886_v56 = vsub.f32 1.0, %v1885_v62 }
 0x956   :  { %v1887_v61 = vmul.f32 %v2273_v6, %v1886_v56 }
 0x957   :  { %v2275_v28 = vpop.eup %2274 }
 0x958   :  { %v1888_v22 = vadd.f32 %v2273_v6, %v1887_v61  ;;  %v1908_v8 = vmul.f32 %v2275_v28, %v1906_v19  ;;  %vm1913_vm15 = vweird.f32 %v2275_v28 }
 0x959   :  { %vm1914_vm1 = vmor %vm1912_vm0, %vm1913_vm15 }
 0x95a   :  { %v1892_v13 = vsel %vm1891_vm13, %v2273_v6, %v1888_v22  ;;  %v1909_v46 = vsub.f32 1.0, %v1908_v8 }
 0x95b   :  { %v1897_v2 = vsel %vm1894_vm14, %v1896_v21, %v1892_v13 }
 0x95c   :  { %v1926_v35 = vmul.f32 %v1924_v54, %v1897_v2  ;;  %v1910_v52 = vmul.f32 %v2275_v28, %v1909_v46 }
 0x95e   :  { %v1927_v58 = vadd.f32 %v1926_v35, %v3382_v12  ;;  %v1911_v47 = vadd.f32 %v2275_v28, %v1910_v52 }
 0x960   :  { %2276 = vtanh.f32 %v1927_v58  ;;  %v1915_v31 = vsel %vm1914_vm1, %v2275_v28, %v1911_v47 }
 0x961   :  { %v1920_v30 = vsel %vm1917_vm2, %v1919_v53, %v1915_v31 }
 0x962   :  { %v1929_v37 = vsub.f32 1.0, %v1920_v30  ;;  %v1933_v1 = vmul.f32 %v1931_v59, %v1920_v30 }
 0x966   :  { %v2277_v15 = vpop.eup %2276 }
 0x967   :  { %v1930_v38 = vmul.f32 %v2277_v15, %v1929_v37 }
 0x969   :  { %v3711_v4 = vadd.f32 %v1933_v1, %v1930_v38 }
 0x96b   :  { %v1936_v3 = vrot.slane %v3711_v4, 6  ;;  %v2053_v36 = vrot.slane %v3711_v4, 7 }
 0x96d   :  { %1954 = vmatmul.f32.vlgmr.msra.gmra.mxu2 %v1936_v3  ;;  %1974 = vmatmul.f32.vlgmr.msrb.gmra.mxu0 %v1936_v3 }
 0x96e   :  { %1994 = vmatmul.f32.vlgmr.msra.gmra.mxu3 %v1936_v3 }
 0x9ea   :  { %v1975_v11 = vpop.f32.mrf.mxu0 }
 0x9eb   :  { %v2022_v40 = vrot.slane %v1975_v11, 1 }
 0x9ed   :  { %v2024_v44 = vadd.f32 %v2022_v40, %v3802_v10 }
 0x9ef   :  { %v2127_v50 = vmul.f32 -1.442695, %v2024_v44 }
 0x9f0   :  { %v1955_v29 = vpop.f32.mrf.mxu2 }
 0x9f1   :  { %2278 = vpow2.f32 %v2127_v50  ;;  %v1999_v27 = vrot.slane %v1955_v29, 1  ;;  %v1995_v10 = vpop.f32.mrf.mxu3 }
 0x9f3   :  { %v2001_v23 = vadd.f32 %v1999_v27, %v3801_v43  ;;  %v2044_v43 = vadd.f32 %v3702_v48, %v1995_v10 }
 0x9f5   :  { %v2126_v51 = vmul.f32 -1.442695, %v2001_v23  ;;  %v2046_v14 = vrot.slane %v2044_v43, 1 }
 0x9f7   :  { %v2279_v32 = vpop.eup %2278  ;;  %2280 = vpow2.f32 %v2126_v51 }
 0x9f8   :  { %v2028_v45 = vadd.f32 1.0, %v2279_v32 }
 0x9fa   :  { %2282 = vrcp.f32 %v2028_v45  ;;  %v2040_v62 = vand.u32 2147483648, %v2028_v45  ;;  %vm2034_vm8 = vweird.f32 %v2028_v45  ;;  %v2038_v34 = vand.u32 2147483647, %v2028_v45 }
 0x9fc   :  { %v2041_v48 = vor.u32 1.1754944e-38, %v2040_v62  ;;  %vm2039_vm10 = vcmp.eq.f32.partialorder %v2038_v34, 8.507059e+37 }
 0x9fd   :  { %v2281_v18 = vpop.eup %2280 }
 0x9fe   :  { %v2005_v57 = vadd.f32 1.0, %v2281_v18 }
 0xa00   :  { %2284 = vrcp.f32 %v2005_v57  ;;  %v2283_v63 = vpop.eup %2282  ;;  %v2017_v24 = vand.u32 2147483648, %v2005_v57  ;;  %v2015_v39 = vand.u32 2147483647, %v2005_v57  ;;  %vm2011_vm4 = vweird.f32 %v2005_v57 }
 0xa01   :  { %v2030_v60 = vmul.f32 %v2283_v63, %v2028_v45  ;;  %vm2035_vm7 = vweird.f32 %v2283_v63 }
 0xa02   :  { %v2018_v7 = vor.u32 1.1754944e-38, %v2017_v24  ;;  %vm2016_vm6 = vcmp.eq.f32.partialorder %v2015_v39, 8.507059e+37  ;;  %vm2036_vm9 = vmor %vm2034_vm8, %vm2035_vm7 }
 0xa03   :  { %v2031_v55 = vsub.f32 1.0, %v2030_v60 }
 0xa05   :  { %v2032_v0 = vmul.f32 %v2283_v63, %v2031_v55 }
 0xa06   :  { %v2285_v25 = vpop.eup %2284 }
 0xa07   :  { %v2007_v9 = vmul.f32 %v2285_v25, %v2005_v57  ;;  %vm2012_vm3 = vweird.f32 %v2285_v25  ;;  %v2033_v19 = vadd.f32 %v2283_v63, %v2032_v0 }
 0xa08   :  { %vm2013_vm5 = vmor %vm2011_vm4, %vm2012_vm3 }
 0xa09   :  { %v2008_v17 = vsub.f32 1.0, %v2007_v9  ;;  %v2037_v5 = vsel %vm2036_vm9, %v2283_v63, %v2033_v19 }
 0xa0a   :  { %v2042_v61 = vsel %vm2039_vm10, %v2041_v48, %v2037_v5 }
 0xa0b   :  { %v2009_v16 = vmul.f32 %v2285_v25, %v2008_v17  ;;  %v2051_v20 = vsub.f32 1.0, %v2042_v61  ;;  %v2055_v8 = vmul.f32 %v2053_v36, %v2042_v61 }
 0xa0d   :  { %v2010_v33 = vadd.f32 %v2285_v25, %v2009_v16 }
 0xa0f   :  { %v2014_v26 = vsel %vm2013_vm5, %v2285_v25, %v2010_v33 }
 0xa10   :  { %v2019_v41 = vsel %vm2016_vm6, %v2018_v7, %v2014_v26 }
 0xa11   :  { %v2048_v6 = vmul.f32 %v2046_v14, %v2019_v41 }
 0xa13   :  { %v2049_v56 = vadd.f32 %v2048_v6, %v3382_v12 }
 0xa15   :  { %2286 = vtanh.f32 %v2049_v56 }
 0xa1b   :  { %v2287_v28 = vpop.eup %2286 }
 0xa1c   :  { %v2052_v22 = vmul.f32 %v2287_v28, %v2051_v20 }
 0xa1e   :  { %v2056_v21 = vadd.f32 %v2055_v8, %v2052_v22 }
 0xa20   :  { %2057 = vst [vmem:[#allocation7 - $0x7] sm:$0x80] %v2056_v21 }
 0xa21   :  { %2068 = dma.vmem_to_hbm [thread:$0]  %s2064_s29, 16, %s2066_s15, [#allocation4]  }
 0xa22   :  { %2413 = dma.done.wait [#allocation4], 16  }
 0xa23   :  { %2414 = vsyncadd [#allocation4], 4294967280 }
 0xa24   :  { %2073 = vsyncpa [#allocation3], 1 }
 0xa25   :  { %2074 = vsyncpa [#allocation6], 1 }
 0xa26   :  { %2075 = vsyncpa [#allocation4], 1 }

</bundles_post_ra>
